<compile_context>
chip_gen: v7x
topology: tpu7x:2x2x1
jax: 0.10.0
libtpu: 0.0.40
codegen_flags: <defaults>
</compile_context>

<pallas_src>
import jax
import jax.numpy as jnp
from jax.experimental import pallas as pl
from jax.experimental.pallas import tpu as pltpu

EPS = 1e-8  # safe_norm eps, added per coordinate inside the sum -> 3*eps under the sqrt


def _round_up(x, m):
    return ((x + m - 1) // m) * m


def _pick_tiling(B, N, chunk_max=512, tile_max=2048):
    """Returns (chunk, n_pad, chunks_per_step, n_chunks)."""
    n128 = _round_up(N, 128)
    # Chunk (lane width per inner iteration): largest multiple of 128 dividing n128,
    # capped at chunk_max -> no padded compute beyond the 128-rounding of N.
    chunk = 128
    for c in range(128, min(chunk_max, n128) + 1, 128):
        if n128 % c == 0:
            chunk = c
    n_pad = n128
    n_chunks = n_pad // chunk
    # Chunks per grid step: largest divisor of n_chunks with chunk*cps <= tile_max,
    # while keeping >= 2 total grid steps (v7x megacore) whenever possible.
    cps_cap = max(1, tile_max // chunk)
    cps = 1
    for c in range(1, n_chunks + 1):
        if n_chunks % c != 0 or c > cps_cap:
            continue
        if B * (n_chunks // c) >= 2 or B * n_chunks < 2:
            cps = c
    return chunk, n_pad, cps, n_chunks


def _intra_residue_kernel(pred_ref, act_ref, am_ref, valid_ref, loss_ref, tot_ref):
    # pred_ref / act_ref : (cps, 3, A, chunk)   coordinates, residues on lanes
    # am_ref             : (cps, A, chunk)      atom mask (float)
    # valid_ref          : (cps, 1, chunk)      valid-residue mask (float)
    # loss_ref, tot_ref  : (cps, 1, chunk)
    cps, _, A, _ = pred_ref.shape
    eps3 = jnp.float32(3.0 * EPS)

    def compute_chunk(c):
        pred = pred_ref.at[c]                       # (3, A, chunk) ref view
        act = act_ref.at[c]
        am = am_ref[c]                              # (A, chunk)
        acc = jnp.zeros(am.shape, jnp.float32)
        for j in range(A):                          # static unroll over the "other atom"
            # predicted: distance from every atom i to atom j (safe_norm semantics)
            dp0 = pred[0] - pred[0, j:j + 1, :]
            dp1 = pred[1] - pred[1, j:j + 1, :]
            dp2 = pred[2] - pred[2, j:j + 1, :]
            dist_p = jnp.sqrt(dp0 * dp0 + dp1 * dp1 + dp2 * dp2 + eps3)   # (A, chunk)
            # actual
            da0 = act[0] - act[0, j:j + 1, :]
            da1 = act[1] - act[1, j:j + 1, :]
            da2 = act[2] - act[2, j:j + 1, :]
            dist_a = jnp.sqrt(da0 * da0 + da1 * da1 + da2 * da2 + eps3)   # (A, chunk)

            dev = dist_p - dist_a                   # exactly 0 on the diagonal (i == j)
            acc = acc + (dev * dev) * am[j:j + 1, :]   # j-mask only (row broadcast)

        valid = valid_ref[c]                        # (1, chunk)
        # i-mask applied once at the reduction (saves A full-size multiplies per chunk)
        loss_ref[c] = jnp.sum(acc * am, axis=0, keepdims=True) * valid
        # totals = clamp_min(sum_ij am_i*am_j*valid, 1) == clamp_min(valid*(sum_a am)^2, 1)
        s = jnp.sum(am, axis=0, keepdims=True)      # (1, chunk)
        tot_ref[c] = jnp.maximum(s * s * valid, jnp.float32(1.0))

    if cps == 1:
        compute_chunk(0)
    else:
        def body(c, carry):
            compute_chunk(c)
            return carry
        jax.lax.fori_loop(0, cps, body, 0)


def intra_residue_distance(predicted_coords, actual_coords, valid_res_mask, atom_mask,
                           chunk_max=512, tile_max=2048):
    """Returns per-residue (loss, totals), each shaped (B, N) float32."""
    B, N, A, C = predicted_coords.shape
    assert C == 3

    chunk, n_pad, cps, n_chunks = _pick_tiling(B, N, chunk_max, tile_max)
    pad = n_pad - N

    # Re-layout: residues -> lane axis (last dim), chunk index -> leading (major) axis.
    def relayout_coords(x):
        x = jnp.transpose(x.astype(jnp.float32), (0, 3, 2, 1))       # (B, C, A, N)
        if pad:
            x = jnp.pad(x, ((0, 0), (0, 0), (0, 0), (0, pad)))
        x = x.reshape(B, C, A, n_chunks, chunk)
        return jnp.transpose(x, (0, 3, 1, 2, 4))                      # (B, nc, C, A, chunk)

    pred = relayout_coords(predicted_coords)
    act = relayout_coords(actual_coords)

    am = jnp.transpose(atom_mask.astype(jnp.float32), (0, 2, 1))      # (B, A, N)
    if pad:
        am = jnp.pad(am, ((0, 0), (0, 0), (0, pad)))
    am = jnp.transpose(am.reshape(B, A, n_chunks, chunk), (0, 2, 1, 3))  # (B, nc, A, chunk)

    valid = valid_res_mask.astype(jnp.float32)                        # (B, N)
    if pad:
        valid = jnp.pad(valid, ((0, 0), (0, pad)))
    valid = valid.reshape(B, n_chunks, 1, chunk)                      # (B, nc, 1, chunk)

    grid = (B, n_chunks // cps)

    coord_spec = pl.BlockSpec((None, cps, C, A, chunk), lambda b, t: (b, t, 0, 0, 0))
    am_spec = pl.BlockSpec((None, cps, A, chunk), lambda b, t: (b, t, 0, 0))
    v_spec = pl.BlockSpec((None, cps, 1, chunk), lambda b, t: (b, t, 0, 0))
    out_spec = pl.BlockSpec((None, cps, 1, chunk), lambda b, t: (b, t, 0, 0))

    cost = pl.CostEstimate(
        flops=int(B * n_pad * A * A * 23),
        transcendentals=int(B * n_pad * A * A * 2),
        bytes_accessed=int(
            (2 * B * n_pad * A * 3 + B * n_pad * A + B * n_pad + 2 * B * n_pad) * 4),
    )

    loss, totals = pl.pallas_call(
        _intra_residue_kernel,
        grid=grid,
        in_specs=[coord_spec, coord_spec, am_spec, v_spec],
        out_specs=[out_spec, out_spec],
        out_shape=[
            jax.ShapeDtypeStruct((B, n_chunks, 1, chunk), jnp.float32),
            jax.ShapeDtypeStruct((B, n_chunks, 1, chunk), jnp.float32),
        ],
        compiler_params=pltpu.CompilerParams(
            dimension_semantics=("parallel", "parallel")),
        cost_estimate=cost,
    )(pred, act, am, valid)

    loss = loss.reshape(B, n_pad)[:, :N]
    totals = totals.reshape(B, n_pad)[:, :N]
    # TODO(synk): the torch forward has no return statement (truncated); we expose the
    # per-residue `loss` and `totals` it computes.
    return loss, totals


def _reference(pred, act, valid_res_mask, atom_mask):
    """Pure-JAX mirror of the torch forward, for correctness checking."""
    def to_intra(x):
        d = x[..., :, None, :] - x[..., None, :, :]
        return jnp.sqrt(jnp.sum(jnp.square(d) + EPS, axis=-1))

    amf = atom_mask.astype(jnp.float32)
    intra_mask = jnp.einsum('bni,bnj->bnij', amf, amf)
    intra_mask = jnp.where(valid_res_mask[..., None, None], intra_mask, 0.0)
    dev = jnp.square(to_intra(pred) - to_intra(act))
    loss = jnp.sum(dev * intra_mask, axis=(-1, -2))
    totals = jnp.maximum(jnp.sum(intra_mask, axis=(-1, -2)), 1.0)
    return loss, totals


if __name__ == "__main__":
    B, N, A, C = 2, 8, 14, 3  # batch, residues, atoms per residue, xyz
    key = jax.random.PRNGKey(0)
    k1, k2, k3, k4 = jax.random.split(key, 4)

    predicted_coords = 3.0 * jax.random.normal(k1, (B, N, A, C), dtype=jnp.float32)
    actual_coords = 3.0 * jax.random.normal(k2, (B, N, A, C), dtype=jnp.float32)
    atom_mask = jax.random.bernoulli(k3, 0.8, (B, N, A))
    valid_res_mask = jax.random.bernoulli(k4, 0.9, (B, N))

    loss, totals = jax.block_until_ready(
        intra_residue_distance(predicted_coords, actual_coords,
                               valid_res_mask, atom_mask))

    ref_loss, ref_totals = _reference(predicted_coords, actual_coords,
                                      valid_res_mask, atom_mask)
    assert jnp.allclose(loss, ref_loss, rtol=1e-4, atol=1e-3), "loss mismatch"
    assert jnp.allclose(totals, ref_totals, rtol=1e-5, atol=1e-5), "totals mismatch"

    print("KERNEL_OK")
</pallas_src>

<mosaic_0001>
module attributes {stable_mosaic.version = 11 : i64} {
  func.func @_intra_residue_kernel(%arg0: i32, %arg1: i32, %arg2: memref<1x1x3x14x128xf32, #tpu.memory_space<vmem>>, %arg3: memref<1x1x3x14x128xf32, #tpu.memory_space<vmem>>, %arg4: memref<1x1x14x128xf32, #tpu.memory_space<vmem>>, %arg5: memref<1x1x1x128xf32, #tpu.memory_space<vmem>>, %arg6: memref<1x1x1x128xf32, #tpu.memory_space<vmem>>, %arg7: memref<1x1x1x128xf32, #tpu.memory_space<vmem>>) attributes {dimension_semantics = [#tpu.dimension_semantics<parallel>, #tpu.dimension_semantics<parallel>], iteration_bounds = array<i64: 2, 1>, scalar_prefetch = 0 : i64, scratch_operands = 0 : i64, tpu.core_type = #tpu.core_type<tc>, window_params = [{transform_indices = @transform_0, window_bounds = array<i64: 1, 1, 3, 14, 128>}, {transform_indices = @transform_1, window_bounds = array<i64: 1, 1, 3, 14, 128>}, {transform_indices = @transform_2, window_bounds = array<i64: 1, 1, 14, 128>}, {transform_indices = @transform_3, window_bounds = array<i64: 1, 1, 1, 128>}, {transform_indices = @transform_4, window_bounds = array<i64: 1, 1, 1, 128>}, {transform_indices = @transform_5, window_bounds = array<i64: 1, 1, 1, 128>}]} {
    %c0 = arith.constant 0 : index
    %c0_0 = arith.constant 0 : index
    %c0_1 = arith.constant 0 : index
    %c0_2 = arith.constant 0 : index
    %0 = vector.load %arg4[%c0, %c0_0, %c0_1, %c0_2] : memref<1x1x14x128xf32, #tpu.memory_space<vmem>>, vector<1x1x14x128xf32>
    %1 = vector.shape_cast %0 : vector<1x1x14x128xf32> to vector<14x128xf32>
    %cst = arith.constant 0.000000e+00 : f32
    %2 = vector.broadcast %cst : f32 to vector<14x128xf32>
    %c0_i32 = arith.constant 0 : i32
    %c0_i32_3 = arith.constant 0 : i32
    %c0_i32_4 = arith.constant 0 : i32
    %c0_i32_5 = arith.constant 0 : i32
    %c0_i32_6 = arith.constant 0 : i32
    %3 = tpu.memref_slice %arg2[%c0_i32, %c0_i32_3, %c0_i32_4, %c0_i32_5, %c0_i32_6] : memref<1x1x3x14x128xf32, #tpu.memory_space<vmem>> -> memref<1x1x3x14x128xf32, #tpu.memory_space<vmem>>
    %4 = tpu.memref_squeeze %3 : memref<1x1x3x14x128xf32, #tpu.memory_space<vmem>> -> memref<3x14x128xf32, #tpu.memory_space<vmem>>
    %c0_7 = arith.constant 0 : index
    %c0_8 = arith.constant 0 : index
    %c0_9 = arith.constant 0 : index
    %5 = vector.load %4[%c0_7, %c0_8, %c0_9] : memref<3x14x128xf32, #tpu.memory_space<vmem>>, vector<1x14x128xf32>
    %6 = vector.shape_cast %5 : vector<1x14x128xf32> to vector<14x128xf32>
    %c0_i32_10 = arith.constant 0 : i32
    %c0_i32_11 = arith.constant 0 : i32
    %c0_i32_12 = arith.constant 0 : i32
    %c0_i32_13 = arith.constant 0 : i32
    %c0_i32_14 = arith.constant 0 : i32
    %7 = tpu.memref_slice %arg2[%c0_i32_10, %c0_i32_11, %c0_i32_12, %c0_i32_13, %c0_i32_14] : memref<1x1x3x14x128xf32, #tpu.memory_space<vmem>> -> memref<1x1x3x14x128xf32, #tpu.memory_space<vmem>>
    %8 = tpu.memref_squeeze %7 : memref<1x1x3x14x128xf32, #tpu.memory_space<vmem>> -> memref<3x14x128xf32, #tpu.memory_space<vmem>>
    %c0_15 = arith.constant 0 : index
    %c0_16 = arith.constant 0 : index
    %c0_17 = arith.constant 0 : index
    %9 = vector.load %8[%c0_15, %c0_16, %c0_17] : memref<3x14x128xf32, #tpu.memory_space<vmem>>, vector<1x1x128xf32>
    %10 = vector.shape_cast %9 : vector<1x1x128xf32> to vector<1x128xf32>
    %11 = vector.broadcast %10 : vector<1x128xf32> to vector<14x128xf32>
    %12 = arith.subf %6, %11 : vector<14x128xf32>
    %c0_i32_18 = arith.constant 0 : i32
    %c0_i32_19 = arith.constant 0 : i32
    %c0_i32_20 = arith.constant 0 : i32
    %c0_i32_21 = arith.constant 0 : i32
    %c0_i32_22 = arith.constant 0 : i32
    %13 = tpu.memref_slice %arg2[%c0_i32_18, %c0_i32_19, %c0_i32_20, %c0_i32_21, %c0_i32_22] : memref<1x1x3x14x128xf32, #tpu.memory_space<vmem>> -> memref<1x1x3x14x128xf32, #tpu.memory_space<vmem>>
    %14 = tpu.memref_squeeze %13 : memref<1x1x3x14x128xf32, #tpu.memory_space<vmem>> -> memref<3x14x128xf32, #tpu.memory_space<vmem>>
    %c1 = arith.constant 1 : index
    %c0_23 = arith.constant 0 : index
    %c0_24 = arith.constant 0 : index
    %15 = vector.load %14[%c1, %c0_23, %c0_24] : memref<3x14x128xf32, #tpu.memory_space<vmem>>, vector<1x14x128xf32>
    %16 = vector.shape_cast %15 : vector<1x14x128xf32> to vector<14x128xf32>
    %c0_i32_25 = arith.constant 0 : i32
    %c0_i32_26 = arith.constant 0 : i32
    %c0_i32_27 = arith.constant 0 : i32
    %c0_i32_28 = arith.constant 0 : i32
    %c0_i32_29 = arith.constant 0 : i32
    %17 = tpu.memref_slice %arg2[%c0_i32_25, %c0_i32_26, %c0_i32_27, %c0_i32_28, %c0_i32_29] : memref<1x1x3x14x128xf32, #tpu.memory_space<vmem>> -> memref<1x1x3x14x128xf32, #tpu.memory_space<vmem>>
    %18 = tpu.memref_squeeze %17 : memref<1x1x3x14x128xf32, #tpu.memory_space<vmem>> -> memref<3x14x128xf32, #tpu.memory_space<vmem>>
    %c1_30 = arith.constant 1 : index
    %c0_31 = arith.constant 0 : index
    %c0_32 = arith.constant 0 : index
    %19 = vector.load %18[%c1_30, %c0_31, %c0_32] : memref<3x14x128xf32, #tpu.memory_space<vmem>>, vector<1x1x128xf32>
    %20 = vector.shape_cast %19 : vector<1x1x128xf32> to vector<1x128xf32>
    %21 = vector.broadcast %20 : vector<1x128xf32> to vector<14x128xf32>
    %22 = arith.subf %16, %21 : vector<14x128xf32>
    %c0_i32_33 = arith.constant 0 : i32
    %c0_i32_34 = arith.constant 0 : i32
    %c0_i32_35 = arith.constant 0 : i32
    %c0_i32_36 = arith.constant 0 : i32
    %c0_i32_37 = arith.constant 0 : i32
    %23 = tpu.memref_slice %arg2[%c0_i32_33, %c0_i32_34, %c0_i32_35, %c0_i32_36, %c0_i32_37] : memref<1x1x3x14x128xf32, #tpu.memory_space<vmem>> -> memref<1x1x3x14x128xf32, #tpu.memory_space<vmem>>
    %24 = tpu.memref_squeeze %23 : memref<1x1x3x14x128xf32, #tpu.memory_space<vmem>> -> memref<3x14x128xf32, #tpu.memory_space<vmem>>
    %c2 = arith.constant 2 : index
    %c0_38 = arith.constant 0 : index
    %c0_39 = arith.constant 0 : index
    %25 = vector.load %24[%c2, %c0_38, %c0_39] : memref<3x14x128xf32, #tpu.memory_space<vmem>>, vector<1x14x128xf32>
    %26 = vector.shape_cast %25 : vector<1x14x128xf32> to vector<14x128xf32>
    %c0_i32_40 = arith.constant 0 : i32
    %c0_i32_41 = arith.constant 0 : i32
    %c0_i32_42 = arith.constant 0 : i32
    %c0_i32_43 = arith.constant 0 : i32
    %c0_i32_44 = arith.constant 0 : i32
    %27 = tpu.memref_slice %arg2[%c0_i32_40, %c0_i32_41, %c0_i32_42, %c0_i32_43, %c0_i32_44] : memref<1x1x3x14x128xf32, #tpu.memory_space<vmem>> -> memref<1x1x3x14x128xf32, #tpu.memory_space<vmem>>
    %28 = tpu.memref_squeeze %27 : memref<1x1x3x14x128xf32, #tpu.memory_space<vmem>> -> memref<3x14x128xf32, #tpu.memory_space<vmem>>
    %c2_45 = arith.constant 2 : index
    %c0_46 = arith.constant 0 : index
    %c0_47 = arith.constant 0 : index
    %29 = vector.load %28[%c2_45, %c0_46, %c0_47] : memref<3x14x128xf32, #tpu.memory_space<vmem>>, vector<1x1x128xf32>
    %30 = vector.shape_cast %29 : vector<1x1x128xf32> to vector<1x128xf32>
    %31 = vector.broadcast %30 : vector<1x128xf32> to vector<14x128xf32>
    %32 = arith.subf %26, %31 : vector<14x128xf32>
    %33 = arith.mulf %12, %12 : vector<14x128xf32>
    %34 = arith.mulf %22, %22 : vector<14x128xf32>
    %35 = arith.addf %33, %34 : vector<14x128xf32>
    %36 = arith.mulf %32, %32 : vector<14x128xf32>
    %37 = arith.addf %35, %36 : vector<14x128xf32>
    %cst_48 = arith.constant 3.000000e-08 : f32
    %38 = vector.broadcast %cst_48 : f32 to vector<14x128xf32>
    %39 = arith.addf %37, %38 : vector<14x128xf32>
    %40 = math.sqrt %39 : vector<14x128xf32>
    %c0_i32_49 = arith.constant 0 : i32
    %c0_i32_50 = arith.constant 0 : i32
    %c0_i32_51 = arith.constant 0 : i32
    %c0_i32_52 = arith.constant 0 : i32
    %c0_i32_53 = arith.constant 0 : i32
    %41 = tpu.memref_slice %arg3[%c0_i32_49, %c0_i32_50, %c0_i32_51, %c0_i32_52, %c0_i32_53] : memref<1x1x3x14x128xf32, #tpu.memory_space<vmem>> -> memref<1x1x3x14x128xf32, #tpu.memory_space<vmem>>
    %42 = tpu.memref_squeeze %41 : memref<1x1x3x14x128xf32, #tpu.memory_space<vmem>> -> memref<3x14x128xf32, #tpu.memory_space<vmem>>
    %c0_54 = arith.constant 0 : index
    %c0_55 = arith.constant 0 : index
    %c0_56 = arith.constant 0 : index
    %43 = vector.load %42[%c0_54, %c0_55, %c0_56] : memref<3x14x128xf32, #tpu.memory_space<vmem>>, vector<1x14x128xf32>
    %44 = vector.shape_cast %43 : vector<1x14x128xf32> to vector<14x128xf32>
    %c0_i32_57 = arith.constant 0 : i32
    %c0_i32_58 = arith.constant 0 : i32
    %c0_i32_59 = arith.constant 0 : i32
    %c0_i32_60 = arith.constant 0 : i32
    %c0_i32_61 = arith.constant 0 : i32
    %45 = tpu.memref_slice %arg3[%c0_i32_57, %c0_i32_58, %c0_i32_59, %c0_i32_60, %c0_i32_61] : memref<1x1x3x14x128xf32, #tpu.memory_space<vmem>> -> memref<1x1x3x14x128xf32, #tpu.memory_space<vmem>>
    %46 = tpu.memref_squeeze %45 : memref<1x1x3x14x128xf32, #tpu.memory_space<vmem>> -> memref<3x14x128xf32, #tpu.memory_space<vmem>>
    %c0_62 = arith.constant 0 : index
    %c0_63 = arith.constant 0 : index
    %c0_64 = arith.constant 0 : index
    %47 = vector.load %46[%c0_62, %c0_63, %c0_64] : memref<3x14x128xf32, #tpu.memory_space<vmem>>, vector<1x1x128xf32>
    %48 = vector.shape_cast %47 : vector<1x1x128xf32> to vector<1x128xf32>
    %49 = vector.broadcast %48 : vector<1x128xf32> to vector<14x128xf32>
    %50 = arith.subf %44, %49 : vector<14x128xf32>
    %c0_i32_65 = arith.constant 0 : i32
    %c0_i32_66 = arith.constant 0 : i32
    %c0_i32_67 = arith.constant 0 : i32
    %c0_i32_68 = arith.constant 0 : i32
    %c0_i32_69 = arith.constant 0 : i32
    %51 = tpu.memref_slice %arg3[%c0_i32_65, %c0_i32_66, %c0_i32_67, %c0_i32_68, %c0_i32_69] : memref<1x1x3x14x128xf32, #tpu.memory_space<vmem>> -> memref<1x1x3x14x128xf32, #tpu.memory_space<vmem>>
    %52 = tpu.memref_squeeze %51 : memref<1x1x3x14x128xf32, #tpu.memory_space<vmem>> -> memref<3x14x128xf32, #tpu.memory_space<vmem>>
    %c1_70 = arith.constant 1 : index
    %c0_71 = arith.constant 0 : index
    %c0_72 = arith.constant 0 : index
    %53 = vector.load %52[%c1_70, %c0_71, %c0_72] : memref<3x14x128xf32, #tpu.memory_space<vmem>>, vector<1x14x128xf32>
    %54 = vector.shape_cast %53 : vector<1x14x128xf32> to vector<14x128xf32>
    %c0_i32_73 = arith.constant 0 : i32
    %c0_i32_74 = arith.constant 0 : i32
    %c0_i32_75 = arith.constant 0 : i32
    %c0_i32_76 = arith.constant 0 : i32
    %c0_i32_77 = arith.constant 0 : i32
    %55 = tpu.memref_slice %arg3[%c0_i32_73, %c0_i32_74, %c0_i32_75, %c0_i32_76, %c0_i32_77] : memref<1x1x3x14x128xf32, #tpu.memory_space<vmem>> -> memref<1x1x3x14x128xf32, #tpu.memory_space<vmem>>
    %56 = tpu.memref_squeeze %55 : memref<1x1x3x14x128xf32, #tpu.memory_space<vmem>> -> memref<3x14x128xf32, #tpu.memory_space<vmem>>
    %c1_78 = arith.constant 1 : index
    %c0_79 = arith.constant 0 : index
    %c0_80 = arith.constant 0 : index
    %57 = vector.load %56[%c1_78, %c0_79, %c0_80] : memref<3x14x128xf32, #tpu.memory_space<vmem>>, vector<1x1x128xf32>
    %58 = vector.shape_cast %57 : vector<1x1x128xf32> to vector<1x128xf32>
    %59 = vector.broadcast %58 : vector<1x128xf32> to vector<14x128xf32>
    %60 = arith.subf %54, %59 : vector<14x128xf32>
    %c0_i32_81 = arith.constant 0 : i32
    %c0_i32_82 = arith.constant 0 : i32
    %c0_i32_83 = arith.constant 0 : i32
    %c0_i32_84 = arith.constant 0 : i32
    %c0_i32_85 = arith.constant 0 : i32
    %61 = tpu.memref_slice %arg3[%c0_i32_81, %c0_i32_82, %c0_i32_83, %c0_i32_84, %c0_i32_85] : memref<1x1x3x14x128xf32, #tpu.memory_space<vmem>> -> memref<1x1x3x14x128xf32, #tpu.memory_space<vmem>>
    %62 = tpu.memref_squeeze %61 : memref<1x1x3x14x128xf32, #tpu.memory_space<vmem>> -> memref<3x14x128xf32, #tpu.memory_space<vmem>>
    %c2_86 = arith.constant 2 : index
    %c0_87 = arith.constant 0 : index
    %c0_88 = arith.constant 0 : index
    %63 = vector.load %62[%c2_86, %c0_87, %c0_88] : memref<3x14x128xf32, #tpu.memory_space<vmem>>, vector<1x14x128xf32>
    %64 = vector.shape_cast %63 : vector<1x14x128xf32> to vector<14x128xf32>
    %c0_i32_89 = arith.constant 0 : i32
    %c0_i32_90 = arith.constant 0 : i32
    %c0_i32_91 = arith.constant 0 : i32
    %c0_i32_92 = arith.constant 0 : i32
    %c0_i32_93 = arith.constant 0 : i32
    %65 = tpu.memref_slice %arg3[%c0_i32_89, %c0_i32_90, %c0_i32_91, %c0_i32_92, %c0_i32_93] : memref<1x1x3x14x128xf32, #tpu.memory_space<vmem>> -> memref<1x1x3x14x128xf32, #tpu.memory_space<vmem>>
    %66 = tpu.memref_squeeze %65 : memref<1x1x3x14x128xf32, #tpu.memory_space<vmem>> -> memref<3x14x128xf32, #tpu.memory_space<vmem>>
    %c2_94 = arith.constant 2 : index
    %c0_95 = arith.constant 0 : index
    %c0_96 = arith.constant 0 : index
    %67 = vector.load %66[%c2_94, %c0_95, %c0_96] : memref<3x14x128xf32, #tpu.memory_space<vmem>>, vector<1x1x128xf32>
    %68 = vector.shape_cast %67 : vector<1x1x128xf32> to vector<1x128xf32>
    %69 = vector.broadcast %68 : vector<1x128xf32> to vector<14x128xf32>
    %70 = arith.subf %64, %69 : vector<14x128xf32>
    %71 = arith.mulf %50, %50 : vector<14x128xf32>
    %72 = arith.mulf %60, %60 : vector<14x128xf32>
    %73 = arith.addf %71, %72 : vector<14x128xf32>
    %74 = arith.mulf %70, %70 : vector<14x128xf32>
    %75 = arith.addf %73, %74 : vector<14x128xf32>
    %cst_97 = arith.constant 3.000000e-08 : f32
    %76 = vector.broadcast %cst_97 : f32 to vector<14x128xf32>
    %77 = arith.addf %75, %76 : vector<14x128xf32>
    %78 = math.sqrt %77 : vector<14x128xf32>
    %79 = arith.subf %40, %78 : vector<14x128xf32>
    %80 = arith.mulf %79, %79 : vector<14x128xf32>
    %81 = vector.extract_strided_slice %1 {offsets = [0, 0], sizes = [1, 128], strides = [1, 1]} : vector<14x128xf32> to vector<1x128xf32>
    %82 = vector.broadcast %81 : vector<1x128xf32> to vector<14x128xf32>
    %83 = arith.mulf %80, %82 : vector<14x128xf32>
    %84 = arith.addf %2, %83 : vector<14x128xf32>
    %c0_i32_98 = arith.constant 0 : i32
    %c0_i32_99 = arith.constant 0 : i32
    %c0_i32_100 = arith.constant 0 : i32
    %c0_i32_101 = arith.constant 0 : i32
    %c0_i32_102 = arith.constant 0 : i32
    %85 = tpu.memref_slice %arg2[%c0_i32_98, %c0_i32_99, %c0_i32_100, %c0_i32_101, %c0_i32_102] : memref<1x1x3x14x128xf32, #tpu.memory_space<vmem>> -> memref<1x1x3x14x128xf32, #tpu.memory_space<vmem>>
    %86 = tpu.memref_squeeze %85 : memref<1x1x3x14x128xf32, #tpu.memory_space<vmem>> -> memref<3x14x128xf32, #tpu.memory_space<vmem>>
    %c0_103 = arith.constant 0 : index
    %c0_104 = arith.constant 0 : index
    %c0_105 = arith.constant 0 : index
    %87 = vector.load %86[%c0_103, %c0_104, %c0_105] : memref<3x14x128xf32, #tpu.memory_space<vmem>>, vector<1x14x128xf32>
    %88 = vector.shape_cast %87 : vector<1x14x128xf32> to vector<14x128xf32>
    %c0_i32_106 = arith.constant 0 : i32
    %c0_i32_107 = arith.constant 0 : i32
    %c0_i32_108 = arith.constant 0 : i32
    %c0_i32_109 = arith.constant 0 : i32
    %c0_i32_110 = arith.constant 0 : i32
    %89 = tpu.memref_slice %arg2[%c0_i32_106, %c0_i32_107, %c0_i32_108, %c0_i32_109, %c0_i32_110] : memref<1x1x3x14x128xf32, #tpu.memory_space<vmem>> -> memref<1x1x3x14x128xf32, #tpu.memory_space<vmem>>
    %90 = tpu.memref_squeeze %89 : memref<1x1x3x14x128xf32, #tpu.memory_space<vmem>> -> memref<3x14x128xf32, #tpu.memory_space<vmem>>
    %c0_111 = arith.constant 0 : index
    %c1_112 = arith.constant 1 : index
    %c0_113 = arith.constant 0 : index
    %91 = vector.load %90[%c0_111, %c1_112, %c0_113] : memref<3x14x128xf32, #tpu.memory_space<vmem>>, vector<1x1x128xf32>
    %92 = vector.shape_cast %91 : vector<1x1x128xf32> to vector<1x128xf32>
    %93 = vector.broadcast %92 : vector<1x128xf32> to vector<14x128xf32>
    %94 = arith.subf %88, %93 : vector<14x128xf32>
    %c0_i32_114 = arith.constant 0 : i32
    %c0_i32_115 = arith.constant 0 : i32
    %c0_i32_116 = arith.constant 0 : i32
    %c0_i32_117 = arith.constant 0 : i32
    %c0_i32_118 = arith.constant 0 : i32
    %95 = tpu.memref_slice %arg2[%c0_i32_114, %c0_i32_115, %c0_i32_116, %c0_i32_117, %c0_i32_118] : memref<1x1x3x14x128xf32, #tpu.memory_space<vmem>> -> memref<1x1x3x14x128xf32, #tpu.memory_space<vmem>>
    %96 = tpu.memref_squeeze %95 : memref<1x1x3x14x128xf32, #tpu.memory_space<vmem>> -> memref<3x14x128xf32, #tpu.memory_space<vmem>>
    %c1_119 = arith.constant 1 : index
    %c0_120 = arith.constant 0 : index
    %c0_121 = arith.constant 0 : index
    %97 = vector.load %96[%c1_119, %c0_120, %c0_121] : memref<3x14x128xf32, #tpu.memory_space<vmem>>, vector<1x14x128xf32>
    %98 = vector.shape_cast %97 : vector<1x14x128xf32> to vector<14x128xf32>
    %c0_i32_122 = arith.constant 0 : i32
    %c0_i32_123 = arith.constant 0 : i32
    %c0_i32_124 = arith.constant 0 : i32
    %c0_i32_125 = arith.constant 0 : i32
    %c0_i32_126 = arith.constant 0 : i32
    %99 = tpu.memref_slice %arg2[%c0_i32_122, %c0_i32_123, %c0_i32_124, %c0_i32_125, %c0_i32_126] : memref<1x1x3x14x128xf32, #tpu.memory_space<vmem>> -> memref<1x1x3x14x128xf32, #tpu.memory_space<vmem>>
    %100 = tpu.memref_squeeze %99 : memref<1x1x3x14x128xf32, #tpu.memory_space<vmem>> -> memref<3x14x128xf32, #tpu.memory_space<vmem>>
    %c1_127 = arith.constant 1 : index
    %c1_128 = arith.constant 1 : index
    %c0_129 = arith.constant 0 : index
    %101 = vector.load %100[%c1_127, %c1_128, %c0_129] : memref<3x14x128xf32, #tpu.memory_space<vmem>>, vector<1x1x128xf32>
    %102 = vector.shape_cast %101 : vector<1x1x128xf32> to vector<1x128xf32>
    %103 = vector.broadcast %102 : vector<1x128xf32> to vector<14x128xf32>
    %104 = arith.subf %98, %103 : vector<14x128xf32>
    %c0_i32_130 = arith.constant 0 : i32
    %c0_i32_131 = arith.constant 0 : i32
    %c0_i32_132 = arith.constant 0 : i32
    %c0_i32_133 = arith.constant 0 : i32
    %c0_i32_134 = arith.constant 0 : i32
    %105 = tpu.memref_slice %arg2[%c0_i32_130, %c0_i32_131, %c0_i32_132, %c0_i32_133, %c0_i32_134] : memref<1x1x3x14x128xf32, #tpu.memory_space<vmem>> -> memref<1x1x3x14x128xf32, #tpu.memory_space<vmem>>
    %106 = tpu.memref_squeeze %105 : memref<1x1x3x14x128xf32, #tpu.memory_space<vmem>> -> memref<3x14x128xf32, #tpu.memory_space<vmem>>
    %c2_135 = arith.constant 2 : index
    %c0_136 = arith.constant 0 : index
    %c0_137 = arith.constant 0 : index
    %107 = vector.load %106[%c2_135, %c0_136, %c0_137] : memref<3x14x128xf32, #tpu.memory_space<vmem>>, vector<1x14x128xf32>
    %108 = vector.shape_cast %107 : vector<1x14x128xf32> to vector<14x128xf32>
    %c0_i32_138 = arith.constant 0 : i32
    %c0_i32_139 = arith.constant 0 : i32
    %c0_i32_140 = arith.constant 0 : i32
    %c0_i32_141 = arith.constant 0 : i32
    %c0_i32_142 = arith.constant 0 : i32
    %109 = tpu.memref_slice %arg2[%c0_i32_138, %c0_i32_139, %c0_i32_140, %c0_i32_141, %c0_i32_142] : memref<1x1x3x14x128xf32, #tpu.memory_space<vmem>> -> memref<1x1x3x14x128xf32, #tpu.memory_space<vmem>>
    %110 = tpu.memref_squeeze %109 : memref<1x1x3x14x128xf32, #tpu.memory_space<vmem>> -> memref<3x14x128xf32, #tpu.memory_space<vmem>>
    %c2_143 = arith.constant 2 : index
    %c1_144 = arith.constant 1 : index
    %c0_145 = arith.constant 0 : index
    %111 = vector.load %110[%c2_143, %c1_144, %c0_145] : memref<3x14x128xf32, #tpu.memory_space<vmem>>, vector<1x1x128xf32>
    %112 = vector.shape_cast %111 : vector<1x1x128xf32> to vector<1x128xf32>
    %113 = vector.broadcast %112 : vector<1x128xf32> to vector<14x128xf32>
    %114 = arith.subf %108, %113 : vector<14x128xf32>
    %115 = arith.mulf %94, %94 : vector<14x128xf32>
    %116 = arith.mulf %104, %104 : vector<14x128xf32>
    %117 = arith.addf %115, %116 : vector<14x128xf32>
    %118 = arith.mulf %114, %114 : vector<14x128xf32>
    %119 = arith.addf %117, %118 : vector<14x128xf32>
    %cst_146 = arith.constant 3.000000e-08 : f32
    %120 = vector.broadcast %cst_146 : f32 to vector<14x128xf32>
    %121 = arith.addf %119, %120 : vector<14x128xf32>
    %122 = math.sqrt %121 : vector<14x128xf32>
    %c0_i32_147 = arith.constant 0 : i32
    %c0_i32_148 = arith.constant 0 : i32
    %c0_i32_149 = arith.constant 0 : i32
    %c0_i32_150 = arith.constant 0 : i32
    %c0_i32_151 = arith.constant 0 : i32
    %123 = tpu.memref_slice %arg3[%c0_i32_147, %c0_i32_148, %c0_i32_149, %c0_i32_150, %c0_i32_151] : memref<1x1x3x14x128xf32, #tpu.memory_space<vmem>> -> memref<1x1x3x14x128xf32, #tpu.memory_space<vmem>>
    %124 = tpu.memref_squeeze %123 : memref<1x1x3x14x128xf32, #tpu.memory_space<vmem>> -> memref<3x14x128xf32, #tpu.memory_space<vmem>>
    %c0_152 = arith.constant 0 : index
    %c0_153 = arith.constant 0 : index
    %c0_154 = arith.constant 0 : index
    %125 = vector.load %124[%c0_152, %c0_153, %c0_154] : memref<3x14x128xf32, #tpu.memory_space<vmem>>, vector<1x14x128xf32>
    %126 = vector.shape_cast %125 : vector<1x14x128xf32> to vector<14x128xf32>
    %c0_i32_155 = arith.constant 0 : i32
    %c0_i32_156 = arith.constant 0 : i32
    %c0_i32_157 = arith.constant 0 : i32
    %c0_i32_158 = arith.constant 0 : i32
    %c0_i32_159 = arith.constant 0 : i32
    %127 = tpu.memref_slice %arg3[%c0_i32_155, %c0_i32_156, %c0_i32_157, %c0_i32_158, %c0_i32_159] : memref<1x1x3x14x128xf32, #tpu.memory_space<vmem>> -> memref<1x1x3x14x128xf32, #tpu.memory_space<vmem>>
    %128 = tpu.memref_squeeze %127 : memref<1x1x3x14x128xf32, #tpu.memory_space<vmem>> -> memref<3x14x128xf32, #tpu.memory_space<vmem>>
    %c0_160 = arith.constant 0 : index
    %c1_161 = arith.constant 1 : index
    %c0_162 = arith.constant 0 : index
    %129 = vector.load %128[%c0_160, %c1_161, %c0_162] : memref<3x14x128xf32, #tpu.memory_space<vmem>>, vector<1x1x128xf32>
    %130 = vector.shape_cast %129 : vector<1x1x128xf32> to vector<1x128xf32>
    %131 = vector.broadcast %130 : vector<1x128xf32> to vector<14x128xf32>
    %132 = arith.subf %126, %131 : vector<14x128xf32>
    %c0_i32_163 = arith.constant 0 : i32
    %c0_i32_164 = arith.constant 0 : i32
    %c0_i32_165 = arith.constant 0 : i32
    %c0_i32_166 = arith.constant 0 : i32
    %c0_i32_167 = arith.constant 0 : i32
    %133 = tpu.memref_slice %arg3[%c0_i32_163, %c0_i32_164, %c0_i32_165, %c0_i32_166, %c0_i32_167] : memref<1x1x3x14x128xf32, #tpu.memory_space<vmem>> -> memref<1x1x3x14x128xf32, #tpu.memory_space<vmem>>
    %134 = tpu.memref_squeeze %133 : memref<1x1x3x14x128xf32, #tpu.memory_space<vmem>> -> memref<3x14x128xf32, #tpu.memory_space<vmem>>
    %c1_168 = arith.constant 1 : index
    %c0_169 = arith.constant 0 : index
    %c0_170 = arith.constant 0 : index
    %135 = vector.load %134[%c1_168, %c0_169, %c0_170] : memref<3x14x128xf32, #tpu.memory_space<vmem>>, vector<1x14x128xf32>
    %136 = vector.shape_cast %135 : vector<1x14x128xf32> to vector<14x128xf32>
    %c0_i32_171 = arith.constant 0 : i32
    %c0_i32_172 = arith.constant 0 : i32
    %c0_i32_173 = arith.constant 0 : i32
    %c0_i32_174 = arith.constant 0 : i32
    %c0_i32_175 = arith.constant 0 : i32
    %137 = tpu.memref_slice %arg3[%c0_i32_171, %c0_i32_172, %c0_i32_173, %c0_i32_174, %c0_i32_175] : memref<1x1x3x14x128xf32, #tpu.memory_space<vmem>> -> memref<1x1x3x14x128xf32, #tpu.memory_space<vmem>>
    %138 = tpu.memref_squeeze %137 : memref<1x1x3x14x128xf32, #tpu.memory_space<vmem>> -> memref<3x14x128xf32, #tpu.memory_space<vmem>>
    %c1_176 = arith.constant 1 : index
    %c1_177 = arith.constant 1 : index
    %c0_178 = arith.constant 0 : index
    %139 = vector.load %138[%c1_176, %c1_177, %c0_178] : memref<3x14x128xf32, #tpu.memory_space<vmem>>, vector<1x1x128xf32>
    %140 = vector.shape_cast %139 : vector<1x1x128xf32> to vector<1x128xf32>
    %141 = vector.broadcast %140 : vector<1x128xf32> to vector<14x128xf32>
    %142 = arith.subf %136, %141 : vector<14x128xf32>
    %c0_i32_179 = arith.constant 0 : i32
    %c0_i32_180 = arith.constant 0 : i32
    %c0_i32_181 = arith.constant 0 : i32
    %c0_i32_182 = arith.constant 0 : i32
    %c0_i32_183 = arith.constant 0 : i32
    %143 = tpu.memref_slice %arg3[%c0_i32_179, %c0_i32_180, %c0_i32_181, %c0_i32_182, %c0_i32_183] : memref<1x1x3x14x128xf32, #tpu.memory_space<vmem>> -> memref<1x1x3x14x128xf32, #tpu.memory_space<vmem>>
    %144 = tpu.memref_squeeze %143 : memref<1x1x3x14x128xf32, #tpu.memory_space<vmem>> -> memref<3x14x128xf32, #tpu.memory_space<vmem>>
    %c2_184 = arith.constant 2 : index
    %c0_185 = arith.constant 0 : index
    %c0_186 = arith.constant 0 : index
    %145 = vector.load %144[%c2_184, %c0_185, %c0_186] : memref<3x14x128xf32, #tpu.memory_space<vmem>>, vector<1x14x128xf32>
    %146 = vector.shape_cast %145 : vector<1x14x128xf32> to vector<14x128xf32>
    %c0_i32_187 = arith.constant 0 : i32
    %c0_i32_188 = arith.constant 0 : i32
    %c0_i32_189 = arith.constant 0 : i32
    %c0_i32_190 = arith.constant 0 : i32
    %c0_i32_191 = arith.constant 0 : i32
    %147 = tpu.memref_slice %arg3[%c0_i32_187, %c0_i32_188, %c0_i32_189, %c0_i32_190, %c0_i32_191] : memref<1x1x3x14x128xf32, #tpu.memory_space<vmem>> -> memref<1x1x3x14x128xf32, #tpu.memory_space<vmem>>
    %148 = tpu.memref_squeeze %147 : memref<1x1x3x14x128xf32, #tpu.memory_space<vmem>> -> memref<3x14x128xf32, #tpu.memory_space<vmem>>
    %c2_192 = arith.constant 2 : index
    %c1_193 = arith.constant 1 : index
    %c0_194 = arith.constant 0 : index
    %149 = vector.load %148[%c2_192, %c1_193, %c0_194] : memref<3x14x128xf32, #tpu.memory_space<vmem>>, vector<1x1x128xf32>
    %150 = vector.shape_cast %149 : vector<1x1x128xf32> to vector<1x128xf32>
    %151 = vector.broadcast %150 : vector<1x128xf32> to vector<14x128xf32>
    %152 = arith.subf %146, %151 : vector<14x128xf32>
    %153 = arith.mulf %132, %132 : vector<14x128xf32>
    %154 = arith.mulf %142, %142 : vector<14x128xf32>
    %155 = arith.addf %153, %154 : vector<14x128xf32>
    %156 = arith.mulf %152, %152 : vector<14x128xf32>
    %157 = arith.addf %155, %156 : vector<14x128xf32>
    %cst_195 = arith.constant 3.000000e-08 : f32
    %158 = vector.broadcast %cst_195 : f32 to vector<14x128xf32>
    %159 = arith.addf %157, %158 : vector<14x128xf32>
    %160 = math.sqrt %159 : vector<14x128xf32>
    %161 = arith.subf %122, %160 : vector<14x128xf32>
    %162 = arith.mulf %161, %161 : vector<14x128xf32>
    %163 = vector.extract_strided_slice %1 {offsets = [1, 0], sizes = [1, 128], strides = [1, 1]} : vector<14x128xf32> to vector<1x128xf32>
    %164 = vector.broadcast %163 : vector<1x128xf32> to vector<14x128xf32>
    %165 = arith.mulf %162, %164 : vector<14x128xf32>
    %166 = arith.addf %84, %165 : vector<14x128xf32>
    %c0_i32_196 = arith.constant 0 : i32
    %c0_i32_197 = arith.constant 0 : i32
    %c0_i32_198 = arith.constant 0 : i32
    %c0_i32_199 = arith.constant 0 : i32
    %c0_i32_200 = arith.constant 0 : i32
    %167 = tpu.memref_slice %arg2[%c0_i32_196, %c0_i32_197, %c0_i32_198, %c0_i32_199, %c0_i32_200] : memref<1x1x3x14x128xf32, #tpu.memory_space<vmem>> -> memref<1x1x3x14x128xf32, #tpu.memory_space<vmem>>
    %168 = tpu.memref_squeeze %167 : memref<1x1x3x14x128xf32, #tpu.memory_space<vmem>> -> memref<3x14x128xf32, #tpu.memory_space<vmem>>
    %c0_201 = arith.constant 0 : index
    %c0_202 = arith.constant 0 : index
    %c0_203 = arith.constant 0 : index
    %169 = vector.load %168[%c0_201, %c0_202, %c0_203] : memref<3x14x128xf32, #tpu.memory_space<vmem>>, vector<1x14x128xf32>
    %170 = vector.shape_cast %169 : vector<1x14x128xf32> to vector<14x128xf32>
    %c0_i32_204 = arith.constant 0 : i32
    %c0_i32_205 = arith.constant 0 : i32
    %c0_i32_206 = arith.constant 0 : i32
    %c0_i32_207 = arith.constant 0 : i32
    %c0_i32_208 = arith.constant 0 : i32
    %171 = tpu.memref_slice %arg2[%c0_i32_204, %c0_i32_205, %c0_i32_206, %c0_i32_207, %c0_i32_208] : memref<1x1x3x14x128xf32, #tpu.memory_space<vmem>> -> memref<1x1x3x14x128xf32, #tpu.memory_space<vmem>>
    %172 = tpu.memref_squeeze %171 : memref<1x1x3x14x128xf32, #tpu.memory_space<vmem>> -> memref<3x14x128xf32, #tpu.memory_space<vmem>>
    %c0_209 = arith.constant 0 : index
    %c2_210 = arith.constant 2 : index
    %c0_211 = arith.constant 0 : index
    %173 = vector.load %172[%c0_209, %c2_210, %c0_211] : memref<3x14x128xf32, #tpu.memory_space<vmem>>, vector<1x1x128xf32>
    %174 = vector.shape_cast %173 : vector<1x1x128xf32> to vector<1x128xf32>
    %175 = vector.broadcast %174 : vector<1x128xf32> to vector<14x128xf32>
    %176 = arith.subf %170, %175 : vector<14x128xf32>
    %c0_i32_212 = arith.constant 0 : i32
    %c0_i32_213 = arith.constant 0 : i32
    %c0_i32_214 = arith.constant 0 : i32
    %c0_i32_215 = arith.constant 0 : i32
    %c0_i32_216 = arith.constant 0 : i32
    %177 = tpu.memref_slice %arg2[%c0_i32_212, %c0_i32_213, %c0_i32_214, %c0_i32_215, %c0_i32_216] : memref<1x1x3x14x128xf32, #tpu.memory_space<vmem>> -> memref<1x1x3x14x128xf32, #tpu.memory_space<vmem>>
    %178 = tpu.memref_squeeze %177 : memref<1x1x3x14x128xf32, #tpu.memory_space<vmem>> -> memref<3x14x128xf32, #tpu.memory_space<vmem>>
    %c1_217 = arith.constant 1 : index
    %c0_218 = arith.constant 0 : index
    %c0_219 = arith.constant 0 : index
    %179 = vector.load %178[%c1_217, %c0_218, %c0_219] : memref<3x14x128xf32, #tpu.memory_space<vmem>>, vector<1x14x128xf32>
    %180 = vector.shape_cast %179 : vector<1x14x128xf32> to vector<14x128xf32>
    %c0_i32_220 = arith.constant 0 : i32
    %c0_i32_221 = arith.constant 0 : i32
    %c0_i32_222 = arith.constant 0 : i32
    %c0_i32_223 = arith.constant 0 : i32
    %c0_i32_224 = arith.constant 0 : i32
    %181 = tpu.memref_slice %arg2[%c0_i32_220, %c0_i32_221, %c0_i32_222, %c0_i32_223, %c0_i32_224] : memref<1x1x3x14x128xf32, #tpu.memory_space<vmem>> -> memref<1x1x3x14x128xf32, #tpu.memory_space<vmem>>
    %182 = tpu.memref_squeeze %181 : memref<1x1x3x14x128xf32, #tpu.memory_space<vmem>> -> memref<3x14x128xf32, #tpu.memory_space<vmem>>
    %c1_225 = arith.constant 1 : index
    %c2_226 = arith.constant 2 : index
    %c0_227 = arith.constant 0 : index
    %183 = vector.load %182[%c1_225, %c2_226, %c0_227] : memref<3x14x128xf32, #tpu.memory_space<vmem>>, vector<1x1x128xf32>
    %184 = vector.shape_cast %183 : vector<1x1x128xf32> to vector<1x128xf32>
    %185 = vector.broadcast %184 : vector<1x128xf32> to vector<14x128xf32>
    %186 = arith.subf %180, %185 : vector<14x128xf32>
    %c0_i32_228 = arith.constant 0 : i32
    %c0_i32_229 = arith.constant 0 : i32
    %c0_i32_230 = arith.constant 0 : i32
    %c0_i32_231 = arith.constant 0 : i32
    %c0_i32_232 = arith.constant 0 : i32
    %187 = tpu.memref_slice %arg2[%c0_i32_228, %c0_i32_229, %c0_i32_230, %c0_i32_231, %c0_i32_232] : memref<1x1x3x14x128xf32, #tpu.memory_space<vmem>> -> memref<1x1x3x14x128xf32, #tpu.memory_space<vmem>>
    %188 = tpu.memref_squeeze %187 : memref<1x1x3x14x128xf32, #tpu.memory_space<vmem>> -> memref<3x14x128xf32, #tpu.memory_space<vmem>>
    %c2_233 = arith.constant 2 : index
    %c0_234 = arith.constant 0 : index
    %c0_235 = arith.constant 0 : index
    %189 = vector.load %188[%c2_233, %c0_234, %c0_235] : memref<3x14x128xf32, #tpu.memory_space<vmem>>, vector<1x14x128xf32>
    %190 = vector.shape_cast %189 : vector<1x14x128xf32> to vector<14x128xf32>
    %c0_i32_236 = arith.constant 0 : i32
    %c0_i32_237 = arith.constant 0 : i32
    %c0_i32_238 = arith.constant 0 : i32
    %c0_i32_239 = arith.constant 0 : i32
    %c0_i32_240 = arith.constant 0 : i32
    %191 = tpu.memref_slice %arg2[%c0_i32_236, %c0_i32_237, %c0_i32_238, %c0_i32_239, %c0_i32_240] : memref<1x1x3x14x128xf32, #tpu.memory_space<vmem>> -> memref<1x1x3x14x128xf32, #tpu.memory_space<vmem>>
    %192 = tpu.memref_squeeze %191 : memref<1x1x3x14x128xf32, #tpu.memory_space<vmem>> -> memref<3x14x128xf32, #tpu.memory_space<vmem>>
    %c2_241 = arith.constant 2 : index
    %c2_242 = arith.constant 2 : index
    %c0_243 = arith.constant 0 : index
    %193 = vector.load %192[%c2_241, %c2_242, %c0_243] : memref<3x14x128xf32, #tpu.memory_space<vmem>>, vector<1x1x128xf32>
    %194 = vector.shape_cast %193 : vector<1x1x128xf32> to vector<1x128xf32>
    %195 = vector.broadcast %194 : vector<1x128xf32> to vector<14x128xf32>
    %196 = arith.subf %190, %195 : vector<14x128xf32>
    %197 = arith.mulf %176, %176 : vector<14x128xf32>
    %198 = arith.mulf %186, %186 : vector<14x128xf32>
    %199 = arith.addf %197, %198 : vector<14x128xf32>
    %200 = arith.mulf %196, %196 : vector<14x128xf32>
    %201 = arith.addf %199, %200 : vector<14x128xf32>
    %cst_244 = arith.constant 3.000000e-08 : f32
    %202 = vector.broadcast %cst_244 : f32 to vector<14x128xf32>
    %203 = arith.addf %201, %202 : vector<14x128xf32>
    %204 = math.sqrt %203 : vector<14x128xf32>
    %c0_i32_245 = arith.constant 0 : i32
    %c0_i32_246 = arith.constant 0 : i32
    %c0_i32_247 = arith.constant 0 : i32
    %c0_i32_248 = arith.constant 0 : i32
    %c0_i32_249 = arith.constant 0 : i32
    %205 = tpu.memref_slice %arg3[%c0_i32_245, %c0_i32_246, %c0_i32_247, %c0_i32_248, %c0_i32_249] : memref<1x1x3x14x128xf32, #tpu.memory_space<vmem>> -> memref<1x1x3x14x128xf32, #tpu.memory_space<vmem>>
    %206 = tpu.memref_squeeze %205 : memref<1x1x3x14x128xf32, #tpu.memory_space<vmem>> -> memref<3x14x128xf32, #tpu.memory_space<vmem>>
    %c0_250 = arith.constant 0 : index
    %c0_251 = arith.constant 0 : index
    %c0_252 = arith.constant 0 : index
    %207 = vector.load %206[%c0_250, %c0_251, %c0_252] : memref<3x14x128xf32, #tpu.memory_space<vmem>>, vector<1x14x128xf32>
    %208 = vector.shape_cast %207 : vector<1x14x128xf32> to vector<14x128xf32>
    %c0_i32_253 = arith.constant 0 : i32
    %c0_i32_254 = arith.constant 0 : i32
    %c0_i32_255 = arith.constant 0 : i32
    %c0_i32_256 = arith.constant 0 : i32
    %c0_i32_257 = arith.constant 0 : i32
    %209 = tpu.memref_slice %arg3[%c0_i32_253, %c0_i32_254, %c0_i32_255, %c0_i32_256, %c0_i32_257] : memref<1x1x3x14x128xf32, #tpu.memory_space<vmem>> -> memref<1x1x3x14x128xf32, #tpu.memory_space<vmem>>
    %210 = tpu.memref_squeeze %209 : memref<1x1x3x14x128xf32, #tpu.memory_space<vmem>> -> memref<3x14x128xf32, #tpu.memory_space<vmem>>
    %c0_258 = arith.constant 0 : index
    %c2_259 = arith.constant 2 : index
    %c0_260 = arith.constant 0 : index
    %211 = vector.load %210[%c0_258, %c2_259, %c0_260] : memref<3x14x128xf32, #tpu.memory_space<vmem>>, vector<1x1x128xf32>
    %212 = vector.shape_cast %211 : vector<1x1x128xf32> to vector<1x128xf32>
    %213 = vector.broadcast %212 : vector<1x128xf32> to vector<14x128xf32>
    %214 = arith.subf %208, %213 : vector<14x128xf32>
    %c0_i32_261 = arith.constant 0 : i32
    %c0_i32_262 = arith.constant 0 : i32
    %c0_i32_263 = arith.constant 0 : i32
    %c0_i32_264 = arith.constant 0 : i32
    %c0_i32_265 = arith.constant 0 : i32
    %215 = tpu.memref_slice %arg3[%c0_i32_261, %c0_i32_262, %c0_i32_263, %c0_i32_264, %c0_i32_265] : memref<1x1x3x14x128xf32, #tpu.memory_space<vmem>> -> memref<1x1x3x14x128xf32, #tpu.memory_space<vmem>>
    %216 = tpu.memref_squeeze %215 : memref<1x1x3x14x128xf32, #tpu.memory_space<vmem>> -> memref<3x14x128xf32, #tpu.memory_space<vmem>>
    %c1_266 = arith.constant 1 : index
    %c0_267 = arith.constant 0 : index
    %c0_268 = arith.constant 0 : index
    %217 = vector.load %216[%c1_266, %c0_267, %c0_268] : memref<3x14x128xf32, #tpu.memory_space<vmem>>, vector<1x14x128xf32>
    %218 = vector.shape_cast %217 : vector<1x14x128xf32> to vector<14x128xf32>
    %c0_i32_269 = arith.constant 0 : i32
    %c0_i32_270 = arith.constant 0 : i32
    %c0_i32_271 = arith.constant 0 : i32
    %c0_i32_272 = arith.constant 0 : i32
    %c0_i32_273 = arith.constant 0 : i32
    %219 = tpu.memref_slice %arg3[%c0_i32_269, %c0_i32_270, %c0_i32_271, %c0_i32_272, %c0_i32_273] : memref<1x1x3x14x128xf32, #tpu.memory_space<vmem>> -> memref<1x1x3x14x128xf32, #tpu.memory_space<vmem>>
    %220 = tpu.memref_squeeze %219 : memref<1x1x3x14x128xf32, #tpu.memory_space<vmem>> -> memref<3x14x128xf32, #tpu.memory_space<vmem>>
    %c1_274 = arith.constant 1 : index
    %c2_275 = arith.constant 2 : index
    %c0_276 = arith.constant 0 : index
    %221 = vector.load %220[%c1_274, %c2_275, %c0_276] : memref<3x14x128xf32, #tpu.memory_space<vmem>>, vector<1x1x128xf32>
    %222 = vector.shape_cast %221 : vector<1x1x128xf32> to vector<1x128xf32>
    %223 = vector.broadcast %222 : vector<1x128xf32> to vector<14x128xf32>
    %224 = arith.subf %218, %223 : vector<14x128xf32>
    %c0_i32_277 = arith.constant 0 : i32
    %c0_i32_278 = arith.constant 0 : i32
    %c0_i32_279 = arith.constant 0 : i32
    %c0_i32_280 = arith.constant 0 : i32
    %c0_i32_281 = arith.constant 0 : i32
    %225 = tpu.memref_slice %arg3[%c0_i32_277, %c0_i32_278, %c0_i32_279, %c0_i32_280, %c0_i32_281] : memref<1x1x3x14x128xf32, #tpu.memory_space<vmem>> -> memref<1x1x3x14x128xf32, #tpu.memory_space<vmem>>
    %226 = tpu.memref_squeeze %225 : memref<1x1x3x14x128xf32, #tpu.memory_space<vmem>> -> memref<3x14x128xf32, #tpu.memory_space<vmem>>
    %c2_282 = arith.constant 2 : index
    %c0_283 = arith.constant 0 : index
    %c0_284 = arith.constant 0 : index
    %227 = vector.load %226[%c2_282, %c0_283, %c0_284] : memref<3x14x128xf32, #tpu.memory_space<vmem>>, vector<1x14x128xf32>
    %228 = vector.shape_cast %227 : vector<1x14x128xf32> to vector<14x128xf32>
    %c0_i32_285 = arith.constant 0 : i32
    %c0_i32_286 = arith.constant 0 : i32
    %c0_i32_287 = arith.constant 0 : i32
    %c0_i32_288 = arith.constant 0 : i32
    %c0_i32_289 = arith.constant 0 : i32
    %229 = tpu.memref_slice %arg3[%c0_i32_285, %c0_i32_286, %c0_i32_287, %c0_i32_288, %c0_i32_289] : memref<1x1x3x14x128xf32, #tpu.memory_space<vmem>> -> memref<1x1x3x14x128xf32, #tpu.memory_space<vmem>>
    %230 = tpu.memref_squeeze %229 : memref<1x1x3x14x128xf32, #tpu.memory_space<vmem>> -> memref<3x14x128xf32, #tpu.memory_space<vmem>>
    %c2_290 = arith.constant 2 : index
    %c2_291 = arith.constant 2 : index
    %c0_292 = arith.constant 0 : index
    %231 = vector.load %230[%c2_290, %c2_291, %c0_292] : memref<3x14x128xf32, #tpu.memory_space<vmem>>, vector<1x1x128xf32>
    %232 = vector.shape_cast %231 : vector<1x1x128xf32> to vector<1x128xf32>
    %233 = vector.broadcast %232 : vector<1x128xf32> to vector<14x128xf32>
    %234 = arith.subf %228, %233 : vector<14x128xf32>
    %235 = arith.mulf %214, %214 : vector<14x128xf32>
    %236 = arith.mulf %224, %224 : vector<14x128xf32>
    %237 = arith.addf %235, %236 : vector<14x128xf32>
    %238 = arith.mulf %234, %234 : vector<14x128xf32>
    %239 = arith.addf %237, %238 : vector<14x128xf32>
    %cst_293 = arith.constant 3.000000e-08 : f32
    %240 = vector.broadcast %cst_293 : f32 to vector<14x128xf32>
    %241 = arith.addf %239, %240 : vector<14x128xf32>
    %242 = math.sqrt %241 : vector<14x128xf32>
    %243 = arith.subf %204, %242 : vector<14x128xf32>
    %244 = arith.mulf %243, %243 : vector<14x128xf32>
    %245 = vector.extract_strided_slice %1 {offsets = [2, 0], sizes = [1, 128], strides = [1, 1]} : vector<14x128xf32> to vector<1x128xf32>
    %246 = vector.broadcast %245 : vector<1x128xf32> to vector<14x128xf32>
    %247 = arith.mulf %244, %246 : vector<14x128xf32>
    %248 = arith.addf %166, %247 : vector<14x128xf32>
    %c0_i32_294 = arith.constant 0 : i32
    %c0_i32_295 = arith.constant 0 : i32
    %c0_i32_296 = arith.constant 0 : i32
    %c0_i32_297 = arith.constant 0 : i32
    %c0_i32_298 = arith.constant 0 : i32
    %249 = tpu.memref_slice %arg2[%c0_i32_294, %c0_i32_295, %c0_i32_296, %c0_i32_297, %c0_i32_298] : memref<1x1x3x14x128xf32, #tpu.memory_space<vmem>> -> memref<1x1x3x14x128xf32, #tpu.memory_space<vmem>>
    %250 = tpu.memref_squeeze %249 : memref<1x1x3x14x128xf32, #tpu.memory_space<vmem>> -> memref<3x14x128xf32, #tpu.memory_space<vmem>>
    %c0_299 = arith.constant 0 : index
    %c0_300 = arith.constant 0 : index
    %c0_301 = arith.constant 0 : index
    %251 = vector.load %250[%c0_299, %c0_300, %c0_301] : memref<3x14x128xf32, #tpu.memory_space<vmem>>, vector<1x14x128xf32>
    %252 = vector.shape_cast %251 : vector<1x14x128xf32> to vector<14x128xf32>
    %c0_i32_302 = arith.constant 0 : i32
    %c0_i32_303 = arith.constant 0 : i32
    %c0_i32_304 = arith.constant 0 : i32
    %c0_i32_305 = arith.constant 0 : i32
    %c0_i32_306 = arith.constant 0 : i32
    %253 = tpu.memref_slice %arg2[%c0_i32_302, %c0_i32_303, %c0_i32_304, %c0_i32_305, %c0_i32_306] : memref<1x1x3x14x128xf32, #tpu.memory_space<vmem>> -> memref<1x1x3x14x128xf32, #tpu.memory_space<vmem>>
    %254 = tpu.memref_squeeze %253 : memref<1x1x3x14x128xf32, #tpu.memory_space<vmem>> -> memref<3x14x128xf32, #tpu.memory_space<vmem>>
    %c0_307 = arith.constant 0 : index
    %c3 = arith.constant 3 : index
    %c0_308 = arith.constant 0 : index
    %255 = vector.load %254[%c0_307, %c3, %c0_308] : memref<3x14x128xf32, #tpu.memory_space<vmem>>, vector<1x1x128xf32>
    %256 = vector.shape_cast %255 : vector<1x1x128xf32> to vector<1x128xf32>
    %257 = vector.broadcast %256 : vector<1x128xf32> to vector<14x128xf32>
    %258 = arith.subf %252, %257 : vector<14x128xf32>
    %c0_i32_309 = arith.constant 0 : i32
    %c0_i32_310 = arith.constant 0 : i32
    %c0_i32_311 = arith.constant 0 : i32
    %c0_i32_312 = arith.constant 0 : i32
    %c0_i32_313 = arith.constant 0 : i32
    %259 = tpu.memref_slice %arg2[%c0_i32_309, %c0_i32_310, %c0_i32_311, %c0_i32_312, %c0_i32_313] : memref<1x1x3x14x128xf32, #tpu.memory_space<vmem>> -> memref<1x1x3x14x128xf32, #tpu.memory_space<vmem>>
    %260 = tpu.memref_squeeze %259 : memref<1x1x3x14x128xf32, #tpu.memory_space<vmem>> -> memref<3x14x128xf32, #tpu.memory_space<vmem>>
    %c1_314 = arith.constant 1 : index
    %c0_315 = arith.constant 0 : index
    %c0_316 = arith.constant 0 : index
    %261 = vector.load %260[%c1_314, %c0_315, %c0_316] : memref<3x14x128xf32, #tpu.memory_space<vmem>>, vector<1x14x128xf32>
    %262 = vector.shape_cast %261 : vector<1x14x128xf32> to vector<14x128xf32>
    %c0_i32_317 = arith.constant 0 : i32
    %c0_i32_318 = arith.constant 0 : i32
    %c0_i32_319 = arith.constant 0 : i32
    %c0_i32_320 = arith.constant 0 : i32
    %c0_i32_321 = arith.constant 0 : i32
    %263 = tpu.memref_slice %arg2[%c0_i32_317, %c0_i32_318, %c0_i32_319, %c0_i32_320, %c0_i32_321] : memref<1x1x3x14x128xf32, #tpu.memory_space<vmem>> -> memref<1x1x3x14x128xf32, #tpu.memory_space<vmem>>
    %264 = tpu.memref_squeeze %263 : memref<1x1x3x14x128xf32, #tpu.memory_space<vmem>> -> memref<3x14x128xf32, #tpu.memory_space<vmem>>
    %c1_322 = arith.constant 1 : index
    %c3_323 = arith.constant 3 : index
    %c0_324 = arith.constant 0 : index
    %265 = vector.load %264[%c1_322, %c3_323, %c0_324] : memref<3x14x128xf32, #tpu.memory_space<vmem>>, vector<1x1x128xf32>
    %266 = vector.shape_cast %265 : vector<1x1x128xf32> to vector<1x128xf32>
    %267 = vector.broadcast %266 : vector<1x128xf32> to vector<14x128xf32>
    %268 = arith.subf %262, %267 : vector<14x128xf32>
    %c0_i32_325 = arith.constant 0 : i32
    %c0_i32_326 = arith.constant 0 : i32
    %c0_i32_327 = arith.constant 0 : i32
    %c0_i32_328 = arith.constant 0 : i32
    %c0_i32_329 = arith.constant 0 : i32
    %269 = tpu.memref_slice %arg2[%c0_i32_325, %c0_i32_326, %c0_i32_327, %c0_i32_328, %c0_i32_329] : memref<1x1x3x14x128xf32, #tpu.memory_space<vmem>> -> memref<1x1x3x14x128xf32, #tpu.memory_space<vmem>>
    %270 = tpu.memref_squeeze %269 : memref<1x1x3x14x128xf32, #tpu.memory_space<vmem>> -> memref<3x14x128xf32, #tpu.memory_space<vmem>>
    %c2_330 = arith.constant 2 : index
    %c0_331 = arith.constant 0 : index
    %c0_332 = arith.constant 0 : index
    %271 = vector.load %270[%c2_330, %c0_331, %c0_332] : memref<3x14x128xf32, #tpu.memory_space<vmem>>, vector<1x14x128xf32>
    %272 = vector.shape_cast %271 : vector<1x14x128xf32> to vector<14x128xf32>
    %c0_i32_333 = arith.constant 0 : i32
    %c0_i32_334 = arith.constant 0 : i32
    %c0_i32_335 = arith.constant 0 : i32
    %c0_i32_336 = arith.constant 0 : i32
    %c0_i32_337 = arith.constant 0 : i32
    %273 = tpu.memref_slice %arg2[%c0_i32_333, %c0_i32_334, %c0_i32_335, %c0_i32_336, %c0_i32_337] : memref<1x1x3x14x128xf32, #tpu.memory_space<vmem>> -> memref<1x1x3x14x128xf32, #tpu.memory_space<vmem>>
    %274 = tpu.memref_squeeze %273 : memref<1x1x3x14x128xf32, #tpu.memory_space<vmem>> -> memref<3x14x128xf32, #tpu.memory_space<vmem>>
    %c2_338 = arith.constant 2 : index
    %c3_339 = arith.constant 3 : index
    %c0_340 = arith.constant 0 : index
    %275 = vector.load %274[%c2_338, %c3_339, %c0_340] : memref<3x14x128xf32, #tpu.memory_space<vmem>>, vector<1x1x128xf32>
    %276 = vector.shape_cast %275 : vector<1x1x128xf32> to vector<1x128xf32>
    %277 = vector.broadcast %276 : vector<1x128xf32> to vector<14x128xf32>
    %278 = arith.subf %272, %277 : vector<14x128xf32>
    %279 = arith.mulf %258, %258 : vector<14x128xf32>
    %280 = arith.mulf %268, %268 : vector<14x128xf32>
    %281 = arith.addf %279, %280 : vector<14x128xf32>
    %282 = arith.mulf %278, %278 : vector<14x128xf32>
    %283 = arith.addf %281, %282 : vector<14x128xf32>
    %cst_341 = arith.constant 3.000000e-08 : f32
    %284 = vector.broadcast %cst_341 : f32 to vector<14x128xf32>
    %285 = arith.addf %283, %284 : vector<14x128xf32>
    %286 = math.sqrt %285 : vector<14x128xf32>
    %c0_i32_342 = arith.constant 0 : i32
    %c0_i32_343 = arith.constant 0 : i32
    %c0_i32_344 = arith.constant 0 : i32
    %c0_i32_345 = arith.constant 0 : i32
    %c0_i32_346 = arith.constant 0 : i32
    %287 = tpu.memref_slice %arg3[%c0_i32_342, %c0_i32_343, %c0_i32_344, %c0_i32_345, %c0_i32_346] : memref<1x1x3x14x128xf32, #tpu.memory_space<vmem>> -> memref<1x1x3x14x128xf32, #tpu.memory_space<vmem>>
    %288 = tpu.memref_squeeze %287 : memref<1x1x3x14x128xf32, #tpu.memory_space<vmem>> -> memref<3x14x128xf32, #tpu.memory_space<vmem>>
    %c0_347 = arith.constant 0 : index
    %c0_348 = arith.constant 0 : index
    %c0_349 = arith.constant 0 : index
    %289 = vector.load %288[%c0_347, %c0_348, %c0_349] : memref<3x14x128xf32, #tpu.memory_space<vmem>>, vector<1x14x128xf32>
    %290 = vector.shape_cast %289 : vector<1x14x128xf32> to vector<14x128xf32>
    %c0_i32_350 = arith.constant 0 : i32
    %c0_i32_351 = arith.constant 0 : i32
    %c0_i32_352 = arith.constant 0 : i32
    %c0_i32_353 = arith.constant 0 : i32
    %c0_i32_354 = arith.constant 0 : i32
    %291 = tpu.memref_slice %arg3[%c0_i32_350, %c0_i32_351, %c0_i32_352, %c0_i32_353, %c0_i32_354] : memref<1x1x3x14x128xf32, #tpu.memory_space<vmem>> -> memref<1x1x3x14x128xf32, #tpu.memory_space<vmem>>
    %292 = tpu.memref_squeeze %291 : memref<1x1x3x14x128xf32, #tpu.memory_space<vmem>> -> memref<3x14x128xf32, #tpu.memory_space<vmem>>
    %c0_355 = arith.constant 0 : index
    %c3_356 = arith.constant 3 : index
    %c0_357 = arith.constant 0 : index
    %293 = vector.load %292[%c0_355, %c3_356, %c0_357] : memref<3x14x128xf32, #tpu.memory_space<vmem>>, vector<1x1x128xf32>
    %294 = vector.shape_cast %293 : vector<1x1x128xf32> to vector<1x128xf32>
    %295 = vector.broadcast %294 : vector<1x128xf32> to vector<14x128xf32>
    %296 = arith.subf %290, %295 : vector<14x128xf32>
    %c0_i32_358 = arith.constant 0 : i32
    %c0_i32_359 = arith.constant 0 : i32
    %c0_i32_360 = arith.constant 0 : i32
    %c0_i32_361 = arith.constant 0 : i32
    %c0_i32_362 = arith.constant 0 : i32
    %297 = tpu.memref_slice %arg3[%c0_i32_358, %c0_i32_359, %c0_i32_360, %c0_i32_361, %c0_i32_362] : memref<1x1x3x14x128xf32, #tpu.memory_space<vmem>> -> memref<1x1x3x14x128xf32, #tpu.memory_space<vmem>>
    %298 = tpu.memref_squeeze %297 : memref<1x1x3x14x128xf32, #tpu.memory_space<vmem>> -> memref<3x14x128xf32, #tpu.memory_space<vmem>>
    %c1_363 = arith.constant 1 : index
    %c0_364 = arith.constant 0 : index
    %c0_365 = arith.constant 0 : index
    %299 = vector.load %298[%c1_363, %c0_364, %c0_365] : memref<3x14x128xf32, #tpu.memory_space<vmem>>, vector<1x14x128xf32>
    %300 = vector.shape_cast %299 : vector<1x14x128xf32> to vector<14x128xf32>
    %c0_i32_366 = arith.constant 0 : i32
    %c0_i32_367 = arith.constant 0 : i32
    %c0_i32_368 = arith.constant 0 : i32
    %c0_i32_369 = arith.constant 0 : i32
    %c0_i32_370 = arith.constant 0 : i32
    %301 = tpu.memref_slice %arg3[%c0_i32_366, %c0_i32_367, %c0_i32_368, %c0_i32_369, %c0_i32_370] : memref<1x1x3x14x128xf32, #tpu.memory_space<vmem>> -> memref<1x1x3x14x128xf32, #tpu.memory_space<vmem>>
    %302 = tpu.memref_squeeze %301 : memref<1x1x3x14x128xf32, #tpu.memory_space<vmem>> -> memref<3x14x128xf32, #tpu.memory_space<vmem>>
    %c1_371 = arith.constant 1 : index
    %c3_372 = arith.constant 3 : index
    %c0_373 = arith.constant 0 : index
    %303 = vector.load %302[%c1_371, %c3_372, %c0_373] : memref<3x14x128xf32, #tpu.memory_space<vmem>>, vector<1x1x128xf32>
    %304 = vector.shape_cast %303 : vector<1x1x128xf32> to vector<1x128xf32>
    %305 = vector.broadcast %304 : vector<1x128xf32> to vector<14x128xf32>
    %306 = arith.subf %300, %305 : vector<14x128xf32>
    %c0_i32_374 = arith.constant 0 : i32
    %c0_i32_375 = arith.constant 0 : i32
    %c0_i32_376 = arith.constant 0 : i32
    %c0_i32_377 = arith.constant 0 : i32
    %c0_i32_378 = arith.constant 0 : i32
    %307 = tpu.memref_slice %arg3[%c0_i32_374, %c0_i32_375, %c0_i32_376, %c0_i32_377, %c0_i32_378] : memref<1x1x3x14x128xf32, #tpu.memory_space<vmem>> -> memref<1x1x3x14x128xf32, #tpu.memory_space<vmem>>
    %308 = tpu.memref_squeeze %307 : memref<1x1x3x14x128xf32, #tpu.memory_space<vmem>> -> memref<3x14x128xf32, #tpu.memory_space<vmem>>
    %c2_379 = arith.constant 2 : index
    %c0_380 = arith.constant 0 : index
    %c0_381 = arith.constant 0 : index
    %309 = vector.load %308[%c2_379, %c0_380, %c0_381] : memref<3x14x128xf32, #tpu.memory_space<vmem>>, vector<1x14x128xf32>
    %310 = vector.shape_cast %309 : vector<1x14x128xf32> to vector<14x128xf32>
    %c0_i32_382 = arith.constant 0 : i32
    %c0_i32_383 = arith.constant 0 : i32
    %c0_i32_384 = arith.constant 0 : i32
    %c0_i32_385 = arith.constant 0 : i32
    %c0_i32_386 = arith.constant 0 : i32
    %311 = tpu.memref_slice %arg3[%c0_i32_382, %c0_i32_383, %c0_i32_384, %c0_i32_385, %c0_i32_386] : memref<1x1x3x14x128xf32, #tpu.memory_space<vmem>> -> memref<1x1x3x14x128xf32, #tpu.memory_space<vmem>>
    %312 = tpu.memref_squeeze %311 : memref<1x1x3x14x128xf32, #tpu.memory_space<vmem>> -> memref<3x14x128xf32, #tpu.memory_space<vmem>>
    %c2_387 = arith.constant 2 : index
    %c3_388 = arith.constant 3 : index
    %c0_389 = arith.constant 0 : index
    %313 = vector.load %312[%c2_387, %c3_388, %c0_389] : memref<3x14x128xf32, #tpu.memory_space<vmem>>, vector<1x1x128xf32>
    %314 = vector.shape_cast %313 : vector<1x1x128xf32> to vector<1x128xf32>
    %315 = vector.broadcast %314 : vector<1x128xf32> to vector<14x128xf32>
    %316 = arith.subf %310, %315 : vector<14x128xf32>
    %317 = arith.mulf %296, %296 : vector<14x128xf32>
    %318 = arith.mulf %306, %306 : vector<14x128xf32>
    %319 = arith.addf %317, %318 : vector<14x128xf32>
    %320 = arith.mulf %316, %316 : vector<14x128xf32>
    %321 = arith.addf %319, %320 : vector<14x128xf32>
    %cst_390 = arith.constant 3.000000e-08 : f32
    %322 = vector.broadcast %cst_390 : f32 to vector<14x128xf32>
    %323 = arith.addf %321, %322 : vector<14x128xf32>
    %324 = math.sqrt %323 : vector<14x128xf32>
    %325 = arith.subf %286, %324 : vector<14x128xf32>
    %326 = arith.mulf %325, %325 : vector<14x128xf32>
    %327 = vector.extract_strided_slice %1 {offsets = [3, 0], sizes = [1, 128], strides = [1, 1]} : vector<14x128xf32> to vector<1x128xf32>
    %328 = vector.broadcast %327 : vector<1x128xf32> to vector<14x128xf32>
    %329 = arith.mulf %326, %328 : vector<14x128xf32>
    %330 = arith.addf %248, %329 : vector<14x128xf32>
    %c0_i32_391 = arith.constant 0 : i32
    %c0_i32_392 = arith.constant 0 : i32
    %c0_i32_393 = arith.constant 0 : i32
    %c0_i32_394 = arith.constant 0 : i32
    %c0_i32_395 = arith.constant 0 : i32
    %331 = tpu.memref_slice %arg2[%c0_i32_391, %c0_i32_392, %c0_i32_393, %c0_i32_394, %c0_i32_395] : memref<1x1x3x14x128xf32, #tpu.memory_space<vmem>> -> memref<1x1x3x14x128xf32, #tpu.memory_space<vmem>>
    %332 = tpu.memref_squeeze %331 : memref<1x1x3x14x128xf32, #tpu.memory_space<vmem>> -> memref<3x14x128xf32, #tpu.memory_space<vmem>>
    %c0_396 = arith.constant 0 : index
    %c0_397 = arith.constant 0 : index
    %c0_398 = arith.constant 0 : index
    %333 = vector.load %332[%c0_396, %c0_397, %c0_398] : memref<3x14x128xf32, #tpu.memory_space<vmem>>, vector<1x14x128xf32>
    %334 = vector.shape_cast %333 : vector<1x14x128xf32> to vector<14x128xf32>
    %c0_i32_399 = arith.constant 0 : i32
    %c0_i32_400 = arith.constant 0 : i32
    %c0_i32_401 = arith.constant 0 : i32
    %c0_i32_402 = arith.constant 0 : i32
    %c0_i32_403 = arith.constant 0 : i32
    %335 = tpu.memref_slice %arg2[%c0_i32_399, %c0_i32_400, %c0_i32_401, %c0_i32_402, %c0_i32_403] : memref<1x1x3x14x128xf32, #tpu.memory_space<vmem>> -> memref<1x1x3x14x128xf32, #tpu.memory_space<vmem>>
    %336 = tpu.memref_squeeze %335 : memref<1x1x3x14x128xf32, #tpu.memory_space<vmem>> -> memref<3x14x128xf32, #tpu.memory_space<vmem>>
    %c0_404 = arith.constant 0 : index
    %c4 = arith.constant 4 : index
    %c0_405 = arith.constant 0 : index
    %337 = vector.load %336[%c0_404, %c4, %c0_405] : memref<3x14x128xf32, #tpu.memory_space<vmem>>, vector<1x1x128xf32>
    %338 = vector.shape_cast %337 : vector<1x1x128xf32> to vector<1x128xf32>
    %339 = vector.broadcast %338 : vector<1x128xf32> to vector<14x128xf32>
    %340 = arith.subf %334, %339 : vector<14x128xf32>
    %c0_i32_406 = arith.constant 0 : i32
    %c0_i32_407 = arith.constant 0 : i32
    %c0_i32_408 = arith.constant 0 : i32
    %c0_i32_409 = arith.constant 0 : i32
    %c0_i32_410 = arith.constant 0 : i32
    %341 = tpu.memref_slice %arg2[%c0_i32_406, %c0_i32_407, %c0_i32_408, %c0_i32_409, %c0_i32_410] : memref<1x1x3x14x128xf32, #tpu.memory_space<vmem>> -> memref<1x1x3x14x128xf32, #tpu.memory_space<vmem>>
    %342 = tpu.memref_squeeze %341 : memref<1x1x3x14x128xf32, #tpu.memory_space<vmem>> -> memref<3x14x128xf32, #tpu.memory_space<vmem>>
    %c1_411 = arith.constant 1 : index
    %c0_412 = arith.constant 0 : index
    %c0_413 = arith.constant 0 : index
    %343 = vector.load %342[%c1_411, %c0_412, %c0_413] : memref<3x14x128xf32, #tpu.memory_space<vmem>>, vector<1x14x128xf32>
    %344 = vector.shape_cast %343 : vector<1x14x128xf32> to vector<14x128xf32>
    %c0_i32_414 = arith.constant 0 : i32
    %c0_i32_415 = arith.constant 0 : i32
    %c0_i32_416 = arith.constant 0 : i32
    %c0_i32_417 = arith.constant 0 : i32
    %c0_i32_418 = arith.constant 0 : i32
    %345 = tpu.memref_slice %arg2[%c0_i32_414, %c0_i32_415, %c0_i32_416, %c0_i32_417, %c0_i32_418] : memref<1x1x3x14x128xf32, #tpu.memory_space<vmem>> -> memref<1x1x3x14x128xf32, #tpu.memory_space<vmem>>
    %346 = tpu.memref_squeeze %345 : memref<1x1x3x14x128xf32, #tpu.memory_space<vmem>> -> memref<3x14x128xf32, #tpu.memory_space<vmem>>
    %c1_419 = arith.constant 1 : index
    %c4_420 = arith.constant 4 : index
    %c0_421 = arith.constant 0 : index
    %347 = vector.load %346[%c1_419, %c4_420, %c0_421] : memref<3x14x128xf32, #tpu.memory_space<vmem>>, vector<1x1x128xf32>
    %348 = vector.shape_cast %347 : vector<1x1x128xf32> to vector<1x128xf32>
    %349 = vector.broadcast %348 : vector<1x128xf32> to vector<14x128xf32>
    %350 = arith.subf %344, %349 : vector<14x128xf32>
    %c0_i32_422 = arith.constant 0 : i32
    %c0_i32_423 = arith.constant 0 : i32
    %c0_i32_424 = arith.constant 0 : i32
    %c0_i32_425 = arith.constant 0 : i32
    %c0_i32_426 = arith.constant 0 : i32
    %351 = tpu.memref_slice %arg2[%c0_i32_422, %c0_i32_423, %c0_i32_424, %c0_i32_425, %c0_i32_426] : memref<1x1x3x14x128xf32, #tpu.memory_space<vmem>> -> memref<1x1x3x14x128xf32, #tpu.memory_space<vmem>>
    %352 = tpu.memref_squeeze %351 : memref<1x1x3x14x128xf32, #tpu.memory_space<vmem>> -> memref<3x14x128xf32, #tpu.memory_space<vmem>>
    %c2_427 = arith.constant 2 : index
    %c0_428 = arith.constant 0 : index
    %c0_429 = arith.constant 0 : index
    %353 = vector.load %352[%c2_427, %c0_428, %c0_429] : memref<3x14x128xf32, #tpu.memory_space<vmem>>, vector<1x14x128xf32>
    %354 = vector.shape_cast %353 : vector<1x14x128xf32> to vector<14x128xf32>
    %c0_i32_430 = arith.constant 0 : i32
    %c0_i32_431 = arith.constant 0 : i32
    %c0_i32_432 = arith.constant 0 : i32
    %c0_i32_433 = arith.constant 0 : i32
    %c0_i32_434 = arith.constant 0 : i32
    %355 = tpu.memref_slice %arg2[%c0_i32_430, %c0_i32_431, %c0_i32_432, %c0_i32_433, %c0_i32_434] : memref<1x1x3x14x128xf32, #tpu.memory_space<vmem>> -> memref<1x1x3x14x128xf32, #tpu.memory_space<vmem>>
    %356 = tpu.memref_squeeze %355 : memref<1x1x3x14x128xf32, #tpu.memory_space<vmem>> -> memref<3x14x128xf32, #tpu.memory_space<vmem>>
    %c2_435 = arith.constant 2 : index
    %c4_436 = arith.constant 4 : index
    %c0_437 = arith.constant 0 : index
    %357 = vector.load %356[%c2_435, %c4_436, %c0_437] : memref<3x14x128xf32, #tpu.memory_space<vmem>>, vector<1x1x128xf32>
    %358 = vector.shape_cast %357 : vector<1x1x128xf32> to vector<1x128xf32>
    %359 = vector.broadcast %358 : vector<1x128xf32> to vector<14x128xf32>
    %360 = arith.subf %354, %359 : vector<14x128xf32>
    %361 = arith.mulf %340, %340 : vector<14x128xf32>
    %362 = arith.mulf %350, %350 : vector<14x128xf32>
    %363 = arith.addf %361, %362 : vector<14x128xf32>
    %364 = arith.mulf %360, %360 : vector<14x128xf32>
    %365 = arith.addf %363, %364 : vector<14x128xf32>
    %cst_438 = arith.constant 3.000000e-08 : f32
    %366 = vector.broadcast %cst_438 : f32 to vector<14x128xf32>
    %367 = arith.addf %365, %366 : vector<14x128xf32>
    %368 = math.sqrt %367 : vector<14x128xf32>
    %c0_i32_439 = arith.constant 0 : i32
    %c0_i32_440 = arith.constant 0 : i32
    %c0_i32_441 = arith.constant 0 : i32
    %c0_i32_442 = arith.constant 0 : i32
    %c0_i32_443 = arith.constant 0 : i32
    %369 = tpu.memref_slice %arg3[%c0_i32_439, %c0_i32_440, %c0_i32_441, %c0_i32_442, %c0_i32_443] : memref<1x1x3x14x128xf32, #tpu.memory_space<vmem>> -> memref<1x1x3x14x128xf32, #tpu.memory_space<vmem>>
    %370 = tpu.memref_squeeze %369 : memref<1x1x3x14x128xf32, #tpu.memory_space<vmem>> -> memref<3x14x128xf32, #tpu.memory_space<vmem>>
    %c0_444 = arith.constant 0 : index
    %c0_445 = arith.constant 0 : index
    %c0_446 = arith.constant 0 : index
    %371 = vector.load %370[%c0_444, %c0_445, %c0_446] : memref<3x14x128xf32, #tpu.memory_space<vmem>>, vector<1x14x128xf32>
    %372 = vector.shape_cast %371 : vector<1x14x128xf32> to vector<14x128xf32>
    %c0_i32_447 = arith.constant 0 : i32
    %c0_i32_448 = arith.constant 0 : i32
    %c0_i32_449 = arith.constant 0 : i32
    %c0_i32_450 = arith.constant 0 : i32
    %c0_i32_451 = arith.constant 0 : i32
    %373 = tpu.memref_slice %arg3[%c0_i32_447, %c0_i32_448, %c0_i32_449, %c0_i32_450, %c0_i32_451] : memref<1x1x3x14x128xf32, #tpu.memory_space<vmem>> -> memref<1x1x3x14x128xf32, #tpu.memory_space<vmem>>
    %374 = tpu.memref_squeeze %373 : memref<1x1x3x14x128xf32, #tpu.memory_space<vmem>> -> memref<3x14x128xf32, #tpu.memory_space<vmem>>
    %c0_452 = arith.constant 0 : index
    %c4_453 = arith.constant 4 : index
    %c0_454 = arith.constant 0 : index
    %375 = vector.load %374[%c0_452, %c4_453, %c0_454] : memref<3x14x128xf32, #tpu.memory_space<vmem>>, vector<1x1x128xf32>
    %376 = vector.shape_cast %375 : vector<1x1x128xf32> to vector<1x128xf32>
    %377 = vector.broadcast %376 : vector<1x128xf32> to vector<14x128xf32>
    %378 = arith.subf %372, %377 : vector<14x128xf32>
    %c0_i32_455 = arith.constant 0 : i32
    %c0_i32_456 = arith.constant 0 : i32
    %c0_i32_457 = arith.constant 0 : i32
    %c0_i32_458 = arith.constant 0 : i32
    %c0_i32_459 = arith.constant 0 : i32
    %379 = tpu.memref_slice %arg3[%c0_i32_455, %c0_i32_456, %c0_i32_457, %c0_i32_458, %c0_i32_459] : memref<1x1x3x14x128xf32, #tpu.memory_space<vmem>> -> memref<1x1x3x14x128xf32, #tpu.memory_space<vmem>>
    %380 = tpu.memref_squeeze %379 : memref<1x1x3x14x128xf32, #tpu.memory_space<vmem>> -> memref<3x14x128xf32, #tpu.memory_space<vmem>>
    %c1_460 = arith.constant 1 : index
    %c0_461 = arith.constant 0 : index
    %c0_462 = arith.constant 0 : index
    %381 = vector.load %380[%c1_460, %c0_461, %c0_462] : memref<3x14x128xf32, #tpu.memory_space<vmem>>, vector<1x14x128xf32>
    %382 = vector.shape_cast %381 : vector<1x14x128xf32> to vector<14x128xf32>
    %c0_i32_463 = arith.constant 0 : i32
    %c0_i32_464 = arith.constant 0 : i32
    %c0_i32_465 = arith.constant 0 : i32
    %c0_i32_466 = arith.constant 0 : i32
    %c0_i32_467 = arith.constant 0 : i32
    %383 = tpu.memref_slice %arg3[%c0_i32_463, %c0_i32_464, %c0_i32_465, %c0_i32_466, %c0_i32_467] : memref<1x1x3x14x128xf32, #tpu.memory_space<vmem>> -> memref<1x1x3x14x128xf32, #tpu.memory_space<vmem>>
    %384 = tpu.memref_squeeze %383 : memref<1x1x3x14x128xf32, #tpu.memory_space<vmem>> -> memref<3x14x128xf32, #tpu.memory_space<vmem>>
    %c1_468 = arith.constant 1 : index
    %c4_469 = arith.constant 4 : index
    %c0_470 = arith.constant 0 : index
    %385 = vector.load %384[%c1_468, %c4_469, %c0_470] : memref<3x14x128xf32, #tpu.memory_space<vmem>>, vector<1x1x128xf32>
    %386 = vector.shape_cast %385 : vector<1x1x128xf32> to vector<1x128xf32>
    %387 = vector.broadcast %386 : vector<1x128xf32> to vector<14x128xf32>
    %388 = arith.subf %382, %387 : vector<14x128xf32>
    %c0_i32_471 = arith.constant 0 : i32
    %c0_i32_472 = arith.constant 0 : i32
    %c0_i32_473 = arith.constant 0 : i32
    %c0_i32_474 = arith.constant 0 : i32
    %c0_i32_475 = arith.constant 0 : i32
    %389 = tpu.memref_slice %arg3[%c0_i32_471, %c0_i32_472, %c0_i32_473, %c0_i32_474, %c0_i32_475] : memref<1x1x3x14x128xf32, #tpu.memory_space<vmem>> -> memref<1x1x3x14x128xf32, #tpu.memory_space<vmem>>
    %390 = tpu.memref_squeeze %389 : memref<1x1x3x14x128xf32, #tpu.memory_space<vmem>> -> memref<3x14x128xf32, #tpu.memory_space<vmem>>
    %c2_476 = arith.constant 2 : index
    %c0_477 = arith.constant 0 : index
    %c0_478 = arith.constant 0 : index
    %391 = vector.load %390[%c2_476, %c0_477, %c0_478] : memref<3x14x128xf32, #tpu.memory_space<vmem>>, vector<1x14x128xf32>
    %392 = vector.shape_cast %391 : vector<1x14x128xf32> to vector<14x128xf32>
    %c0_i32_479 = arith.constant 0 : i32
    %c0_i32_480 = arith.constant 0 : i32
    %c0_i32_481 = arith.constant 0 : i32
    %c0_i32_482 = arith.constant 0 : i32
    %c0_i32_483 = arith.constant 0 : i32
    %393 = tpu.memref_slice %arg3[%c0_i32_479, %c0_i32_480, %c0_i32_481, %c0_i32_482, %c0_i32_483] : memref<1x1x3x14x128xf32, #tpu.memory_space<vmem>> -> memref<1x1x3x14x128xf32, #tpu.memory_space<vmem>>
    %394 = tpu.memref_squeeze %393 : memref<1x1x3x14x128xf32, #tpu.memory_space<vmem>> -> memref<3x14x128xf32, #tpu.memory_space<vmem>>
    %c2_484 = arith.constant 2 : index
    %c4_485 = arith.constant 4 : index
    %c0_486 = arith.constant 0 : index
    %395 = vector.load %394[%c2_484, %c4_485, %c0_486] : memref<3x14x128xf32, #tpu.memory_space<vmem>>, vector<1x1x128xf32>
    %396 = vector.shape_cast %395 : vector<1x1x128xf32> to vector<1x128xf32>
    %397 = vector.broadcast %396 : vector<1x128xf32> to vector<14x128xf32>
    %398 = arith.subf %392, %397 : vector<14x128xf32>
    %399 = arith.mulf %378, %378 : vector<14x128xf32>
    %400 = arith.mulf %388, %388 : vector<14x128xf32>
    %401 = arith.addf %399, %400 : vector<14x128xf32>
    %402 = arith.mulf %398, %398 : vector<14x128xf32>
    %403 = arith.addf %401, %402 : vector<14x128xf32>
    %cst_487 = arith.constant 3.000000e-08 : f32
    %404 = vector.broadcast %cst_487 : f32 to vector<14x128xf32>
    %405 = arith.addf %403, %404 : vector<14x128xf32>
    %406 = math.sqrt %405 : vector<14x128xf32>
    %407 = arith.subf %368, %406 : vector<14x128xf32>
    %408 = arith.mulf %407, %407 : vector<14x128xf32>
    %409 = vector.extract_strided_slice %1 {offsets = [4, 0], sizes = [1, 128], strides = [1, 1]} : vector<14x128xf32> to vector<1x128xf32>
    %410 = vector.broadcast %409 : vector<1x128xf32> to vector<14x128xf32>
    %411 = arith.mulf %408, %410 : vector<14x128xf32>
    %412 = arith.addf %330, %411 : vector<14x128xf32>
    %c0_i32_488 = arith.constant 0 : i32
    %c0_i32_489 = arith.constant 0 : i32
    %c0_i32_490 = arith.constant 0 : i32
    %c0_i32_491 = arith.constant 0 : i32
    %c0_i32_492 = arith.constant 0 : i32
    %413 = tpu.memref_slice %arg2[%c0_i32_488, %c0_i32_489, %c0_i32_490, %c0_i32_491, %c0_i32_492] : memref<1x1x3x14x128xf32, #tpu.memory_space<vmem>> -> memref<1x1x3x14x128xf32, #tpu.memory_space<vmem>>
    %414 = tpu.memref_squeeze %413 : memref<1x1x3x14x128xf32, #tpu.memory_space<vmem>> -> memref<3x14x128xf32, #tpu.memory_space<vmem>>
    %c0_493 = arith.constant 0 : index
    %c0_494 = arith.constant 0 : index
    %c0_495 = arith.constant 0 : index
    %415 = vector.load %414[%c0_493, %c0_494, %c0_495] : memref<3x14x128xf32, #tpu.memory_space<vmem>>, vector<1x14x128xf32>
    %416 = vector.shape_cast %415 : vector<1x14x128xf32> to vector<14x128xf32>
    %c0_i32_496 = arith.constant 0 : i32
    %c0_i32_497 = arith.constant 0 : i32
    %c0_i32_498 = arith.constant 0 : i32
    %c0_i32_499 = arith.constant 0 : i32
    %c0_i32_500 = arith.constant 0 : i32
    %417 = tpu.memref_slice %arg2[%c0_i32_496, %c0_i32_497, %c0_i32_498, %c0_i32_499, %c0_i32_500] : memref<1x1x3x14x128xf32, #tpu.memory_space<vmem>> -> memref<1x1x3x14x128xf32, #tpu.memory_space<vmem>>
    %418 = tpu.memref_squeeze %417 : memref<1x1x3x14x128xf32, #tpu.memory_space<vmem>> -> memref<3x14x128xf32, #tpu.memory_space<vmem>>
    %c0_501 = arith.constant 0 : index
    %c5 = arith.constant 5 : index
    %c0_502 = arith.constant 0 : index
    %419 = vector.load %418[%c0_501, %c5, %c0_502] : memref<3x14x128xf32, #tpu.memory_space<vmem>>, vector<1x1x128xf32>
    %420 = vector.shape_cast %419 : vector<1x1x128xf32> to vector<1x128xf32>
    %421 = vector.broadcast %420 : vector<1x128xf32> to vector<14x128xf32>
    %422 = arith.subf %416, %421 : vector<14x128xf32>
    %c0_i32_503 = arith.constant 0 : i32
    %c0_i32_504 = arith.constant 0 : i32
    %c0_i32_505 = arith.constant 0 : i32
    %c0_i32_506 = arith.constant 0 : i32
    %c0_i32_507 = arith.constant 0 : i32
    %423 = tpu.memref_slice %arg2[%c0_i32_503, %c0_i32_504, %c0_i32_505, %c0_i32_506, %c0_i32_507] : memref<1x1x3x14x128xf32, #tpu.memory_space<vmem>> -> memref<1x1x3x14x128xf32, #tpu.memory_space<vmem>>
    %424 = tpu.memref_squeeze %423 : memref<1x1x3x14x128xf32, #tpu.memory_space<vmem>> -> memref<3x14x128xf32, #tpu.memory_space<vmem>>
    %c1_508 = arith.constant 1 : index
    %c0_509 = arith.constant 0 : index
    %c0_510 = arith.constant 0 : index
    %425 = vector.load %424[%c1_508, %c0_509, %c0_510] : memref<3x14x128xf32, #tpu.memory_space<vmem>>, vector<1x14x128xf32>
    %426 = vector.shape_cast %425 : vector<1x14x128xf32> to vector<14x128xf32>
    %c0_i32_511 = arith.constant 0 : i32
    %c0_i32_512 = arith.constant 0 : i32
    %c0_i32_513 = arith.constant 0 : i32
    %c0_i32_514 = arith.constant 0 : i32
    %c0_i32_515 = arith.constant 0 : i32
    %427 = tpu.memref_slice %arg2[%c0_i32_511, %c0_i32_512, %c0_i32_513, %c0_i32_514, %c0_i32_515] : memref<1x1x3x14x128xf32, #tpu.memory_space<vmem>> -> memref<1x1x3x14x128xf32, #tpu.memory_space<vmem>>
    %428 = tpu.memref_squeeze %427 : memref<1x1x3x14x128xf32, #tpu.memory_space<vmem>> -> memref<3x14x128xf32, #tpu.memory_space<vmem>>
    %c1_516 = arith.constant 1 : index
    %c5_517 = arith.constant 5 : index
    %c0_518 = arith.constant 0 : index
    %429 = vector.load %428[%c1_516, %c5_517, %c0_518] : memref<3x14x128xf32, #tpu.memory_space<vmem>>, vector<1x1x128xf32>
    %430 = vector.shape_cast %429 : vector<1x1x128xf32> to vector<1x128xf32>
    %431 = vector.broadcast %430 : vector<1x128xf32> to vector<14x128xf32>
    %432 = arith.subf %426, %431 : vector<14x128xf32>
    %c0_i32_519 = arith.constant 0 : i32
    %c0_i32_520 = arith.constant 0 : i32
    %c0_i32_521 = arith.constant 0 : i32
    %c0_i32_522 = arith.constant 0 : i32
    %c0_i32_523 = arith.constant 0 : i32
    %433 = tpu.memref_slice %arg2[%c0_i32_519, %c0_i32_520, %c0_i32_521, %c0_i32_522, %c0_i32_523] : memref<1x1x3x14x128xf32, #tpu.memory_space<vmem>> -> memref<1x1x3x14x128xf32, #tpu.memory_space<vmem>>
    %434 = tpu.memref_squeeze %433 : memref<1x1x3x14x128xf32, #tpu.memory_space<vmem>> -> memref<3x14x128xf32, #tpu.memory_space<vmem>>
    %c2_524 = arith.constant 2 : index
    %c0_525 = arith.constant 0 : index
    %c0_526 = arith.constant 0 : index
    %435 = vector.load %434[%c2_524, %c0_525, %c0_526] : memref<3x14x128xf32, #tpu.memory_space<vmem>>, vector<1x14x128xf32>
    %436 = vector.shape_cast %435 : vector<1x14x128xf32> to vector<14x128xf32>
    %c0_i32_527 = arith.constant 0 : i32
    %c0_i32_528 = arith.constant 0 : i32
    %c0_i32_529 = arith.constant 0 : i32
    %c0_i32_530 = arith.constant 0 : i32
    %c0_i32_531 = arith.constant 0 : i32
    %437 = tpu.memref_slice %arg2[%c0_i32_527, %c0_i32_528, %c0_i32_529, %c0_i32_530, %c0_i32_531] : memref<1x1x3x14x128xf32, #tpu.memory_space<vmem>> -> memref<1x1x3x14x128xf32, #tpu.memory_space<vmem>>
    %438 = tpu.memref_squeeze %437 : memref<1x1x3x14x128xf32, #tpu.memory_space<vmem>> -> memref<3x14x128xf32, #tpu.memory_space<vmem>>
    %c2_532 = arith.constant 2 : index
    %c5_533 = arith.constant 5 : index
    %c0_534 = arith.constant 0 : index
    %439 = vector.load %438[%c2_532, %c5_533, %c0_534] : memref<3x14x128xf32, #tpu.memory_space<vmem>>, vector<1x1x128xf32>
    %440 = vector.shape_cast %439 : vector<1x1x128xf32> to vector<1x128xf32>
    %441 = vector.broadcast %440 : vector<1x128xf32> to vector<14x128xf32>
    %442 = arith.subf %436, %441 : vector<14x128xf32>
    %443 = arith.mulf %422, %422 : vector<14x128xf32>
    %444 = arith.mulf %432, %432 : vector<14x128xf32>
    %445 = arith.addf %443, %444 : vector<14x128xf32>
    %446 = arith.mulf %442, %442 : vector<14x128xf32>
    %447 = arith.addf %445, %446 : vector<14x128xf32>
    %cst_535 = arith.constant 3.000000e-08 : f32
    %448 = vector.broadcast %cst_535 : f32 to vector<14x128xf32>
    %449 = arith.addf %447, %448 : vector<14x128xf32>
    %450 = math.sqrt %449 : vector<14x128xf32>
    %c0_i32_536 = arith.constant 0 : i32
    %c0_i32_537 = arith.constant 0 : i32
    %c0_i32_538 = arith.constant 0 : i32
    %c0_i32_539 = arith.constant 0 : i32
    %c0_i32_540 = arith.constant 0 : i32
    %451 = tpu.memref_slice %arg3[%c0_i32_536, %c0_i32_537, %c0_i32_538, %c0_i32_539, %c0_i32_540] : memref<1x1x3x14x128xf32, #tpu.memory_space<vmem>> -> memref<1x1x3x14x128xf32, #tpu.memory_space<vmem>>
    %452 = tpu.memref_squeeze %451 : memref<1x1x3x14x128xf32, #tpu.memory_space<vmem>> -> memref<3x14x128xf32, #tpu.memory_space<vmem>>
    %c0_541 = arith.constant 0 : index
    %c0_542 = arith.constant 0 : index
    %c0_543 = arith.constant 0 : index
    %453 = vector.load %452[%c0_541, %c0_542, %c0_543] : memref<3x14x128xf32, #tpu.memory_space<vmem>>, vector<1x14x128xf32>
    %454 = vector.shape_cast %453 : vector<1x14x128xf32> to vector<14x128xf32>
    %c0_i32_544 = arith.constant 0 : i32
    %c0_i32_545 = arith.constant 0 : i32
    %c0_i32_546 = arith.constant 0 : i32
    %c0_i32_547 = arith.constant 0 : i32
    %c0_i32_548 = arith.constant 0 : i32
    %455 = tpu.memref_slice %arg3[%c0_i32_544, %c0_i32_545, %c0_i32_546, %c0_i32_547, %c0_i32_548] : memref<1x1x3x14x128xf32, #tpu.memory_space<vmem>> -> memref<1x1x3x14x128xf32, #tpu.memory_space<vmem>>
    %456 = tpu.memref_squeeze %455 : memref<1x1x3x14x128xf32, #tpu.memory_space<vmem>> -> memref<3x14x128xf32, #tpu.memory_space<vmem>>
    %c0_549 = arith.constant 0 : index
    %c5_550 = arith.constant 5 : index
    %c0_551 = arith.constant 0 : index
    %457 = vector.load %456[%c0_549, %c5_550, %c0_551] : memref<3x14x128xf32, #tpu.memory_space<vmem>>, vector<1x1x128xf32>
    %458 = vector.shape_cast %457 : vector<1x1x128xf32> to vector<1x128xf32>
    %459 = vector.broadcast %458 : vector<1x128xf32> to vector<14x128xf32>
    %460 = arith.subf %454, %459 : vector<14x128xf32>
    %c0_i32_552 = arith.constant 0 : i32
    %c0_i32_553 = arith.constant 0 : i32
    %c0_i32_554 = arith.constant 0 : i32
    %c0_i32_555 = arith.constant 0 : i32
    %c0_i32_556 = arith.constant 0 : i32
    %461 = tpu.memref_slice %arg3[%c0_i32_552, %c0_i32_553, %c0_i32_554, %c0_i32_555, %c0_i32_556] : memref<1x1x3x14x128xf32, #tpu.memory_space<vmem>> -> memref<1x1x3x14x128xf32, #tpu.memory_space<vmem>>
    %462 = tpu.memref_squeeze %461 : memref<1x1x3x14x128xf32, #tpu.memory_space<vmem>> -> memref<3x14x128xf32, #tpu.memory_space<vmem>>
    %c1_557 = arith.constant 1 : index
    %c0_558 = arith.constant 0 : index
    %c0_559 = arith.constant 0 : index
    %463 = vector.load %462[%c1_557, %c0_558, %c0_559] : memref<3x14x128xf32, #tpu.memory_space<vmem>>, vector<1x14x128xf32>
    %464 = vector.shape_cast %463 : vector<1x14x128xf32> to vector<14x128xf32>
    %c0_i32_560 = arith.constant 0 : i32
    %c0_i32_561 = arith.constant 0 : i32
    %c0_i32_562 = arith.constant 0 : i32
    %c0_i32_563 = arith.constant 0 : i32
    %c0_i32_564 = arith.constant 0 : i32
    %465 = tpu.memref_slice %arg3[%c0_i32_560, %c0_i32_561, %c0_i32_562, %c0_i32_563, %c0_i32_564] : memref<1x1x3x14x128xf32, #tpu.memory_space<vmem>> -> memref<1x1x3x14x128xf32, #tpu.memory_space<vmem>>
    %466 = tpu.memref_squeeze %465 : memref<1x1x3x14x128xf32, #tpu.memory_space<vmem>> -> memref<3x14x128xf32, #tpu.memory_space<vmem>>
    %c1_565 = arith.constant 1 : index
    %c5_566 = arith.constant 5 : index
    %c0_567 = arith.constant 0 : index
    %467 = vector.load %466[%c1_565, %c5_566, %c0_567] : memref<3x14x128xf32, #tpu.memory_space<vmem>>, vector<1x1x128xf32>
    %468 = vector.shape_cast %467 : vector<1x1x128xf32> to vector<1x128xf32>
    %469 = vector.broadcast %468 : vector<1x128xf32> to vector<14x128xf32>
    %470 = arith.subf %464, %469 : vector<14x128xf32>
    %c0_i32_568 = arith.constant 0 : i32
    %c0_i32_569 = arith.constant 0 : i32
    %c0_i32_570 = arith.constant 0 : i32
    %c0_i32_571 = arith.constant 0 : i32
    %c0_i32_572 = arith.constant 0 : i32
    %471 = tpu.memref_slice %arg3[%c0_i32_568, %c0_i32_569, %c0_i32_570, %c0_i32_571, %c0_i32_572] : memref<1x1x3x14x128xf32, #tpu.memory_space<vmem>> -> memref<1x1x3x14x128xf32, #tpu.memory_space<vmem>>
    %472 = tpu.memref_squeeze %471 : memref<1x1x3x14x128xf32, #tpu.memory_space<vmem>> -> memref<3x14x128xf32, #tpu.memory_space<vmem>>
    %c2_573 = arith.constant 2 : index
    %c0_574 = arith.constant 0 : index
    %c0_575 = arith.constant 0 : index
    %473 = vector.load %472[%c2_573, %c0_574, %c0_575] : memref<3x14x128xf32, #tpu.memory_space<vmem>>, vector<1x14x128xf32>
    %474 = vector.shape_cast %473 : vector<1x14x128xf32> to vector<14x128xf32>
    %c0_i32_576 = arith.constant 0 : i32
    %c0_i32_577 = arith.constant 0 : i32
    %c0_i32_578 = arith.constant 0 : i32
    %c0_i32_579 = arith.constant 0 : i32
    %c0_i32_580 = arith.constant 0 : i32
    %475 = tpu.memref_slice %arg3[%c0_i32_576, %c0_i32_577, %c0_i32_578, %c0_i32_579, %c0_i32_580] : memref<1x1x3x14x128xf32, #tpu.memory_space<vmem>> -> memref<1x1x3x14x128xf32, #tpu.memory_space<vmem>>
    %476 = tpu.memref_squeeze %475 : memref<1x1x3x14x128xf32, #tpu.memory_space<vmem>> -> memref<3x14x128xf32, #tpu.memory_space<vmem>>
    %c2_581 = arith.constant 2 : index
    %c5_582 = arith.constant 5 : index
    %c0_583 = arith.constant 0 : index
    %477 = vector.load %476[%c2_581, %c5_582, %c0_583] : memref<3x14x128xf32, #tpu.memory_space<vmem>>, vector<1x1x128xf32>
    %478 = vector.shape_cast %477 : vector<1x1x128xf32> to vector<1x128xf32>
    %479 = vector.broadcast %478 : vector<1x128xf32> to vector<14x128xf32>
    %480 = arith.subf %474, %479 : vector<14x128xf32>
    %481 = arith.mulf %460, %460 : vector<14x128xf32>
    %482 = arith.mulf %470, %470 : vector<14x128xf32>
    %483 = arith.addf %481, %482 : vector<14x128xf32>
    %484 = arith.mulf %480, %480 : vector<14x128xf32>
    %485 = arith.addf %483, %484 : vector<14x128xf32>
    %cst_584 = arith.constant 3.000000e-08 : f32
    %486 = vector.broadcast %cst_584 : f32 to vector<14x128xf32>
    %487 = arith.addf %485, %486 : vector<14x128xf32>
    %488 = math.sqrt %487 : vector<14x128xf32>
    %489 = arith.subf %450, %488 : vector<14x128xf32>
    %490 = arith.mulf %489, %489 : vector<14x128xf32>
    %491 = vector.extract_strided_slice %1 {offsets = [5, 0], sizes = [1, 128], strides = [1, 1]} : vector<14x128xf32> to vector<1x128xf32>
    %492 = vector.broadcast %491 : vector<1x128xf32> to vector<14x128xf32>
    %493 = arith.mulf %490, %492 : vector<14x128xf32>
    %494 = arith.addf %412, %493 : vector<14x128xf32>
    %c0_i32_585 = arith.constant 0 : i32
    %c0_i32_586 = arith.constant 0 : i32
    %c0_i32_587 = arith.constant 0 : i32
    %c0_i32_588 = arith.constant 0 : i32
    %c0_i32_589 = arith.constant 0 : i32
    %495 = tpu.memref_slice %arg2[%c0_i32_585, %c0_i32_586, %c0_i32_587, %c0_i32_588, %c0_i32_589] : memref<1x1x3x14x128xf32, #tpu.memory_space<vmem>> -> memref<1x1x3x14x128xf32, #tpu.memory_space<vmem>>
    %496 = tpu.memref_squeeze %495 : memref<1x1x3x14x128xf32, #tpu.memory_space<vmem>> -> memref<3x14x128xf32, #tpu.memory_space<vmem>>
    %c0_590 = arith.constant 0 : index
    %c0_591 = arith.constant 0 : index
    %c0_592 = arith.constant 0 : index
    %497 = vector.load %496[%c0_590, %c0_591, %c0_592] : memref<3x14x128xf32, #tpu.memory_space<vmem>>, vector<1x14x128xf32>
    %498 = vector.shape_cast %497 : vector<1x14x128xf32> to vector<14x128xf32>
    %c0_i32_593 = arith.constant 0 : i32
    %c0_i32_594 = arith.constant 0 : i32
    %c0_i32_595 = arith.constant 0 : i32
    %c0_i32_596 = arith.constant 0 : i32
    %c0_i32_597 = arith.constant 0 : i32
    %499 = tpu.memref_slice %arg2[%c0_i32_593, %c0_i32_594, %c0_i32_595, %c0_i32_596, %c0_i32_597] : memref<1x1x3x14x128xf32, #tpu.memory_space<vmem>> -> memref<1x1x3x14x128xf32, #tpu.memory_space<vmem>>
    %500 = tpu.memref_squeeze %499 : memref<1x1x3x14x128xf32, #tpu.memory_space<vmem>> -> memref<3x14x128xf32, #tpu.memory_space<vmem>>
    %c0_598 = arith.constant 0 : index
    %c6 = arith.constant 6 : index
    %c0_599 = arith.constant 0 : index
    %501 = vector.load %500[%c0_598, %c6, %c0_599] : memref<3x14x128xf32, #tpu.memory_space<vmem>>, vector<1x1x128xf32>
    %502 = vector.shape_cast %501 : vector<1x1x128xf32> to vector<1x128xf32>
    %503 = vector.broadcast %502 : vector<1x128xf32> to vector<14x128xf32>
    %504 = arith.subf %498, %503 : vector<14x128xf32>
    %c0_i32_600 = arith.constant 0 : i32
    %c0_i32_601 = arith.constant 0 : i32
    %c0_i32_602 = arith.constant 0 : i32
    %c0_i32_603 = arith.constant 0 : i32
    %c0_i32_604 = arith.constant 0 : i32
    %505 = tpu.memref_slice %arg2[%c0_i32_600, %c0_i32_601, %c0_i32_602, %c0_i32_603, %c0_i32_604] : memref<1x1x3x14x128xf32, #tpu.memory_space<vmem>> -> memref<1x1x3x14x128xf32, #tpu.memory_space<vmem>>
    %506 = tpu.memref_squeeze %505 : memref<1x1x3x14x128xf32, #tpu.memory_space<vmem>> -> memref<3x14x128xf32, #tpu.memory_space<vmem>>
    %c1_605 = arith.constant 1 : index
    %c0_606 = arith.constant 0 : index
    %c0_607 = arith.constant 0 : index
    %507 = vector.load %506[%c1_605, %c0_606, %c0_607] : memref<3x14x128xf32, #tpu.memory_space<vmem>>, vector<1x14x128xf32>
    %508 = vector.shape_cast %507 : vector<1x14x128xf32> to vector<14x128xf32>
    %c0_i32_608 = arith.constant 0 : i32
    %c0_i32_609 = arith.constant 0 : i32
    %c0_i32_610 = arith.constant 0 : i32
    %c0_i32_611 = arith.constant 0 : i32
    %c0_i32_612 = arith.constant 0 : i32
    %509 = tpu.memref_slice %arg2[%c0_i32_608, %c0_i32_609, %c0_i32_610, %c0_i32_611, %c0_i32_612] : memref<1x1x3x14x128xf32, #tpu.memory_space<vmem>> -> memref<1x1x3x14x128xf32, #tpu.memory_space<vmem>>
    %510 = tpu.memref_squeeze %509 : memref<1x1x3x14x128xf32, #tpu.memory_space<vmem>> -> memref<3x14x128xf32, #tpu.memory_space<vmem>>
    %c1_613 = arith.constant 1 : index
    %c6_614 = arith.constant 6 : index
    %c0_615 = arith.constant 0 : index
    %511 = vector.load %510[%c1_613, %c6_614, %c0_615] : memref<3x14x128xf32, #tpu.memory_space<vmem>>, vector<1x1x128xf32>
    %512 = vector.shape_cast %511 : vector<1x1x128xf32> to vector<1x128xf32>
    %513 = vector.broadcast %512 : vector<1x128xf32> to vector<14x128xf32>
    %514 = arith.subf %508, %513 : vector<14x128xf32>
    %c0_i32_616 = arith.constant 0 : i32
    %c0_i32_617 = arith.constant 0 : i32
    %c0_i32_618 = arith.constant 0 : i32
    %c0_i32_619 = arith.constant 0 : i32
    %c0_i32_620 = arith.constant 0 : i32
    %515 = tpu.memref_slice %arg2[%c0_i32_616, %c0_i32_617, %c0_i32_618, %c0_i32_619, %c0_i32_620] : memref<1x1x3x14x128xf32, #tpu.memory_space<vmem>> -> memref<1x1x3x14x128xf32, #tpu.memory_space<vmem>>
    %516 = tpu.memref_squeeze %515 : memref<1x1x3x14x128xf32, #tpu.memory_space<vmem>> -> memref<3x14x128xf32, #tpu.memory_space<vmem>>
    %c2_621 = arith.constant 2 : index
    %c0_622 = arith.constant 0 : index
    %c0_623 = arith.constant 0 : index
    %517 = vector.load %516[%c2_621, %c0_622, %c0_623] : memref<3x14x128xf32, #tpu.memory_space<vmem>>, vector<1x14x128xf32>
    %518 = vector.shape_cast %517 : vector<1x14x128xf32> to vector<14x128xf32>
    %c0_i32_624 = arith.constant 0 : i32
    %c0_i32_625 = arith.constant 0 : i32
    %c0_i32_626 = arith.constant 0 : i32
    %c0_i32_627 = arith.constant 0 : i32
    %c0_i32_628 = arith.constant 0 : i32
    %519 = tpu.memref_slice %arg2[%c0_i32_624, %c0_i32_625, %c0_i32_626, %c0_i32_627, %c0_i32_628] : memref<1x1x3x14x128xf32, #tpu.memory_space<vmem>> -> memref<1x1x3x14x128xf32, #tpu.memory_space<vmem>>
    %520 = tpu.memref_squeeze %519 : memref<1x1x3x14x128xf32, #tpu.memory_space<vmem>> -> memref<3x14x128xf32, #tpu.memory_space<vmem>>
    %c2_629 = arith.constant 2 : index
    %c6_630 = arith.constant 6 : index
    %c0_631 = arith.constant 0 : index
    %521 = vector.load %520[%c2_629, %c6_630, %c0_631] : memref<3x14x128xf32, #tpu.memory_space<vmem>>, vector<1x1x128xf32>
    %522 = vector.shape_cast %521 : vector<1x1x128xf32> to vector<1x128xf32>
    %523 = vector.broadcast %522 : vector<1x128xf32> to vector<14x128xf32>
    %524 = arith.subf %518, %523 : vector<14x128xf32>
    %525 = arith.mulf %504, %504 : vector<14x128xf32>
    %526 = arith.mulf %514, %514 : vector<14x128xf32>
    %527 = arith.addf %525, %526 : vector<14x128xf32>
    %528 = arith.mulf %524, %524 : vector<14x128xf32>
    %529 = arith.addf %527, %528 : vector<14x128xf32>
    %cst_632 = arith.constant 3.000000e-08 : f32
    %530 = vector.broadcast %cst_632 : f32 to vector<14x128xf32>
    %531 = arith.addf %529, %530 : vector<14x128xf32>
    %532 = math.sqrt %531 : vector<14x128xf32>
    %c0_i32_633 = arith.constant 0 : i32
    %c0_i32_634 = arith.constant 0 : i32
    %c0_i32_635 = arith.constant 0 : i32
    %c0_i32_636 = arith.constant 0 : i32
    %c0_i32_637 = arith.constant 0 : i32
    %533 = tpu.memref_slice %arg3[%c0_i32_633, %c0_i32_634, %c0_i32_635, %c0_i32_636, %c0_i32_637] : memref<1x1x3x14x128xf32, #tpu.memory_space<vmem>> -> memref<1x1x3x14x128xf32, #tpu.memory_space<vmem>>
    %534 = tpu.memref_squeeze %533 : memref<1x1x3x14x128xf32, #tpu.memory_space<vmem>> -> memref<3x14x128xf32, #tpu.memory_space<vmem>>
    %c0_638 = arith.constant 0 : index
    %c0_639 = arith.constant 0 : index
    %c0_640 = arith.constant 0 : index
    %535 = vector.load %534[%c0_638, %c0_639, %c0_640] : memref<3x14x128xf32, #tpu.memory_space<vmem>>, vector<1x14x128xf32>
    %536 = vector.shape_cast %535 : vector<1x14x128xf32> to vector<14x128xf32>
    %c0_i32_641 = arith.constant 0 : i32
    %c0_i32_642 = arith.constant 0 : i32
    %c0_i32_643 = arith.constant 0 : i32
    %c0_i32_644 = arith.constant 0 : i32
    %c0_i32_645 = arith.constant 0 : i32
    %537 = tpu.memref_slice %arg3[%c0_i32_641, %c0_i32_642, %c0_i32_643, %c0_i32_644, %c0_i32_645] : memref<1x1x3x14x128xf32, #tpu.memory_space<vmem>> -> memref<1x1x3x14x128xf32, #tpu.memory_space<vmem>>
    %538 = tpu.memref_squeeze %537 : memref<1x1x3x14x128xf32, #tpu.memory_space<vmem>> -> memref<3x14x128xf32, #tpu.memory_space<vmem>>
    %c0_646 = arith.constant 0 : index
    %c6_647 = arith.constant 6 : index
    %c0_648 = arith.constant 0 : index
    %539 = vector.load %538[%c0_646, %c6_647, %c0_648] : memref<3x14x128xf32, #tpu.memory_space<vmem>>, vector<1x1x128xf32>
    %540 = vector.shape_cast %539 : vector<1x1x128xf32> to vector<1x128xf32>
    %541 = vector.broadcast %540 : vector<1x128xf32> to vector<14x128xf32>
    %542 = arith.subf %536, %541 : vector<14x128xf32>
    %c0_i32_649 = arith.constant 0 : i32
    %c0_i32_650 = arith.constant 0 : i32
    %c0_i32_651 = arith.constant 0 : i32
    %c0_i32_652 = arith.constant 0 : i32
    %c0_i32_653 = arith.constant 0 : i32
    %543 = tpu.memref_slice %arg3[%c0_i32_649, %c0_i32_650, %c0_i32_651, %c0_i32_652, %c0_i32_653] : memref<1x1x3x14x128xf32, #tpu.memory_space<vmem>> -> memref<1x1x3x14x128xf32, #tpu.memory_space<vmem>>
    %544 = tpu.memref_squeeze %543 : memref<1x1x3x14x128xf32, #tpu.memory_space<vmem>> -> memref<3x14x128xf32, #tpu.memory_space<vmem>>
    %c1_654 = arith.constant 1 : index
    %c0_655 = arith.constant 0 : index
    %c0_656 = arith.constant 0 : index
    %545 = vector.load %544[%c1_654, %c0_655, %c0_656] : memref<3x14x128xf32, #tpu.memory_space<vmem>>, vector<1x14x128xf32>
    %546 = vector.shape_cast %545 : vector<1x14x128xf32> to vector<14x128xf32>
    %c0_i32_657 = arith.constant 0 : i32
    %c0_i32_658 = arith.constant 0 : i32
    %c0_i32_659 = arith.constant 0 : i32
    %c0_i32_660 = arith.constant 0 : i32
    %c0_i32_661 = arith.constant 0 : i32
    %547 = tpu.memref_slice %arg3[%c0_i32_657, %c0_i32_658, %c0_i32_659, %c0_i32_660, %c0_i32_661] : memref<1x1x3x14x128xf32, #tpu.memory_space<vmem>> -> memref<1x1x3x14x128xf32, #tpu.memory_space<vmem>>
    %548 = tpu.memref_squeeze %547 : memref<1x1x3x14x128xf32, #tpu.memory_space<vmem>> -> memref<3x14x128xf32, #tpu.memory_space<vmem>>
    %c1_662 = arith.constant 1 : index
    %c6_663 = arith.constant 6 : index
    %c0_664 = arith.constant 0 : index
    %549 = vector.load %548[%c1_662, %c6_663, %c0_664] : memref<3x14x128xf32, #tpu.memory_space<vmem>>, vector<1x1x128xf32>
    %550 = vector.shape_cast %549 : vector<1x1x128xf32> to vector<1x128xf32>
    %551 = vector.broadcast %550 : vector<1x128xf32> to vector<14x128xf32>
    %552 = arith.subf %546, %551 : vector<14x128xf32>
    %c0_i32_665 = arith.constant 0 : i32
    %c0_i32_666 = arith.constant 0 : i32
    %c0_i32_667 = arith.constant 0 : i32
    %c0_i32_668 = arith.constant 0 : i32
    %c0_i32_669 = arith.constant 0 : i32
    %553 = tpu.memref_slice %arg3[%c0_i32_665, %c0_i32_666, %c0_i32_667, %c0_i32_668, %c0_i32_669] : memref<1x1x3x14x128xf32, #tpu.memory_space<vmem>> -> memref<1x1x3x14x128xf32, #tpu.memory_space<vmem>>
    %554 = tpu.memref_squeeze %553 : memref<1x1x3x14x128xf32, #tpu.memory_space<vmem>> -> memref<3x14x128xf32, #tpu.memory_space<vmem>>
    %c2_670 = arith.constant 2 : index
    %c0_671 = arith.constant 0 : index
    %c0_672 = arith.constant 0 : index
    %555 = vector.load %554[%c2_670, %c0_671, %c0_672] : memref<3x14x128xf32, #tpu.memory_space<vmem>>, vector<1x14x128xf32>
    %556 = vector.shape_cast %555 : vector<1x14x128xf32> to vector<14x128xf32>
    %c0_i32_673 = arith.constant 0 : i32
    %c0_i32_674 = arith.constant 0 : i32
    %c0_i32_675 = arith.constant 0 : i32
    %c0_i32_676 = arith.constant 0 : i32
    %c0_i32_677 = arith.constant 0 : i32
    %557 = tpu.memref_slice %arg3[%c0_i32_673, %c0_i32_674, %c0_i32_675, %c0_i32_676, %c0_i32_677] : memref<1x1x3x14x128xf32, #tpu.memory_space<vmem>> -> memref<1x1x3x14x128xf32, #tpu.memory_space<vmem>>
    %558 = tpu.memref_squeeze %557 : memref<1x1x3x14x128xf32, #tpu.memory_space<vmem>> -> memref<3x14x128xf32, #tpu.memory_space<vmem>>
    %c2_678 = arith.constant 2 : index
    %c6_679 = arith.constant 6 : index
    %c0_680 = arith.constant 0 : index
    %559 = vector.load %558[%c2_678, %c6_679, %c0_680] : memref<3x14x128xf32, #tpu.memory_space<vmem>>, vector<1x1x128xf32>
    %560 = vector.shape_cast %559 : vector<1x1x128xf32> to vector<1x128xf32>
    %561 = vector.broadcast %560 : vector<1x128xf32> to vector<14x128xf32>
    %562 = arith.subf %556, %561 : vector<14x128xf32>
    %563 = arith.mulf %542, %542 : vector<14x128xf32>
    %564 = arith.mulf %552, %552 : vector<14x128xf32>
    %565 = arith.addf %563, %564 : vector<14x128xf32>
    %566 = arith.mulf %562, %562 : vector<14x128xf32>
    %567 = arith.addf %565, %566 : vector<14x128xf32>
    %cst_681 = arith.constant 3.000000e-08 : f32
    %568 = vector.broadcast %cst_681 : f32 to vector<14x128xf32>
    %569 = arith.addf %567, %568 : vector<14x128xf32>
    %570 = math.sqrt %569 : vector<14x128xf32>
    %571 = arith.subf %532, %570 : vector<14x128xf32>
    %572 = arith.mulf %571, %571 : vector<14x128xf32>
    %573 = vector.extract_strided_slice %1 {offsets = [6, 0], sizes = [1, 128], strides = [1, 1]} : vector<14x128xf32> to vector<1x128xf32>
    %574 = vector.broadcast %573 : vector<1x128xf32> to vector<14x128xf32>
    %575 = arith.mulf %572, %574 : vector<14x128xf32>
    %576 = arith.addf %494, %575 : vector<14x128xf32>
    %c0_i32_682 = arith.constant 0 : i32
    %c0_i32_683 = arith.constant 0 : i32
    %c0_i32_684 = arith.constant 0 : i32
    %c0_i32_685 = arith.constant 0 : i32
    %c0_i32_686 = arith.constant 0 : i32
    %577 = tpu.memref_slice %arg2[%c0_i32_682, %c0_i32_683, %c0_i32_684, %c0_i32_685, %c0_i32_686] : memref<1x1x3x14x128xf32, #tpu.memory_space<vmem>> -> memref<1x1x3x14x128xf32, #tpu.memory_space<vmem>>
    %578 = tpu.memref_squeeze %577 : memref<1x1x3x14x128xf32, #tpu.memory_space<vmem>> -> memref<3x14x128xf32, #tpu.memory_space<vmem>>
    %c0_687 = arith.constant 0 : index
    %c0_688 = arith.constant 0 : index
    %c0_689 = arith.constant 0 : index
    %579 = vector.load %578[%c0_687, %c0_688, %c0_689] : memref<3x14x128xf32, #tpu.memory_space<vmem>>, vector<1x14x128xf32>
    %580 = vector.shape_cast %579 : vector<1x14x128xf32> to vector<14x128xf32>
    %c0_i32_690 = arith.constant 0 : i32
    %c0_i32_691 = arith.constant 0 : i32
    %c0_i32_692 = arith.constant 0 : i32
    %c0_i32_693 = arith.constant 0 : i32
    %c0_i32_694 = arith.constant 0 : i32
    %581 = tpu.memref_slice %arg2[%c0_i32_690, %c0_i32_691, %c0_i32_692, %c0_i32_693, %c0_i32_694] : memref<1x1x3x14x128xf32, #tpu.memory_space<vmem>> -> memref<1x1x3x14x128xf32, #tpu.memory_space<vmem>>
    %582 = tpu.memref_squeeze %581 : memref<1x1x3x14x128xf32, #tpu.memory_space<vmem>> -> memref<3x14x128xf32, #tpu.memory_space<vmem>>
    %c0_695 = arith.constant 0 : index
    %c7 = arith.constant 7 : index
    %c0_696 = arith.constant 0 : index
    %583 = vector.load %582[%c0_695, %c7, %c0_696] : memref<3x14x128xf32, #tpu.memory_space<vmem>>, vector<1x1x128xf32>
    %584 = vector.shape_cast %583 : vector<1x1x128xf32> to vector<1x128xf32>
    %585 = vector.broadcast %584 : vector<1x128xf32> to vector<14x128xf32>
    %586 = arith.subf %580, %585 : vector<14x128xf32>
    %c0_i32_697 = arith.constant 0 : i32
    %c0_i32_698 = arith.constant 0 : i32
    %c0_i32_699 = arith.constant 0 : i32
    %c0_i32_700 = arith.constant 0 : i32
    %c0_i32_701 = arith.constant 0 : i32
    %587 = tpu.memref_slice %arg2[%c0_i32_697, %c0_i32_698, %c0_i32_699, %c0_i32_700, %c0_i32_701] : memref<1x1x3x14x128xf32, #tpu.memory_space<vmem>> -> memref<1x1x3x14x128xf32, #tpu.memory_space<vmem>>
    %588 = tpu.memref_squeeze %587 : memref<1x1x3x14x128xf32, #tpu.memory_space<vmem>> -> memref<3x14x128xf32, #tpu.memory_space<vmem>>
    %c1_702 = arith.constant 1 : index
    %c0_703 = arith.constant 0 : index
    %c0_704 = arith.constant 0 : index
    %589 = vector.load %588[%c1_702, %c0_703, %c0_704] : memref<3x14x128xf32, #tpu.memory_space<vmem>>, vector<1x14x128xf32>
    %590 = vector.shape_cast %589 : vector<1x14x128xf32> to vector<14x128xf32>
    %c0_i32_705 = arith.constant 0 : i32
    %c0_i32_706 = arith.constant 0 : i32
    %c0_i32_707 = arith.constant 0 : i32
    %c0_i32_708 = arith.constant 0 : i32
    %c0_i32_709 = arith.constant 0 : i32
    %591 = tpu.memref_slice %arg2[%c0_i32_705, %c0_i32_706, %c0_i32_707, %c0_i32_708, %c0_i32_709] : memref<1x1x3x14x128xf32, #tpu.memory_space<vmem>> -> memref<1x1x3x14x128xf32, #tpu.memory_space<vmem>>
    %592 = tpu.memref_squeeze %591 : memref<1x1x3x14x128xf32, #tpu.memory_space<vmem>> -> memref<3x14x128xf32, #tpu.memory_space<vmem>>
    %c1_710 = arith.constant 1 : index
    %c7_711 = arith.constant 7 : index
    %c0_712 = arith.constant 0 : index
    %593 = vector.load %592[%c1_710, %c7_711, %c0_712] : memref<3x14x128xf32, #tpu.memory_space<vmem>>, vector<1x1x128xf32>
    %594 = vector.shape_cast %593 : vector<1x1x128xf32> to vector<1x128xf32>
    %595 = vector.broadcast %594 : vector<1x128xf32> to vector<14x128xf32>
    %596 = arith.subf %590, %595 : vector<14x128xf32>
    %c0_i32_713 = arith.constant 0 : i32
    %c0_i32_714 = arith.constant 0 : i32
    %c0_i32_715 = arith.constant 0 : i32
    %c0_i32_716 = arith.constant 0 : i32
    %c0_i32_717 = arith.constant 0 : i32
    %597 = tpu.memref_slice %arg2[%c0_i32_713, %c0_i32_714, %c0_i32_715, %c0_i32_716, %c0_i32_717] : memref<1x1x3x14x128xf32, #tpu.memory_space<vmem>> -> memref<1x1x3x14x128xf32, #tpu.memory_space<vmem>>
    %598 = tpu.memref_squeeze %597 : memref<1x1x3x14x128xf32, #tpu.memory_space<vmem>> -> memref<3x14x128xf32, #tpu.memory_space<vmem>>
    %c2_718 = arith.constant 2 : index
    %c0_719 = arith.constant 0 : index
    %c0_720 = arith.constant 0 : index
    %599 = vector.load %598[%c2_718, %c0_719, %c0_720] : memref<3x14x128xf32, #tpu.memory_space<vmem>>, vector<1x14x128xf32>
    %600 = vector.shape_cast %599 : vector<1x14x128xf32> to vector<14x128xf32>
    %c0_i32_721 = arith.constant 0 : i32
    %c0_i32_722 = arith.constant 0 : i32
    %c0_i32_723 = arith.constant 0 : i32
    %c0_i32_724 = arith.constant 0 : i32
    %c0_i32_725 = arith.constant 0 : i32
    %601 = tpu.memref_slice %arg2[%c0_i32_721, %c0_i32_722, %c0_i32_723, %c0_i32_724, %c0_i32_725] : memref<1x1x3x14x128xf32, #tpu.memory_space<vmem>> -> memref<1x1x3x14x128xf32, #tpu.memory_space<vmem>>
    %602 = tpu.memref_squeeze %601 : memref<1x1x3x14x128xf32, #tpu.memory_space<vmem>> -> memref<3x14x128xf32, #tpu.memory_space<vmem>>
    %c2_726 = arith.constant 2 : index
    %c7_727 = arith.constant 7 : index
    %c0_728 = arith.constant 0 : index
    %603 = vector.load %602[%c2_726, %c7_727, %c0_728] : memref<3x14x128xf32, #tpu.memory_space<vmem>>, vector<1x1x128xf32>
    %604 = vector.shape_cast %603 : vector<1x1x128xf32> to vector<1x128xf32>
    %605 = vector.broadcast %604 : vector<1x128xf32> to vector<14x128xf32>
    %606 = arith.subf %600, %605 : vector<14x128xf32>
    %607 = arith.mulf %586, %586 : vector<14x128xf32>
    %608 = arith.mulf %596, %596 : vector<14x128xf32>
    %609 = arith.addf %607, %608 : vector<14x128xf32>
    %610 = arith.mulf %606, %606 : vector<14x128xf32>
    %611 = arith.addf %609, %610 : vector<14x128xf32>
    %cst_729 = arith.constant 3.000000e-08 : f32
    %612 = vector.broadcast %cst_729 : f32 to vector<14x128xf32>
    %613 = arith.addf %611, %612 : vector<14x128xf32>
    %614 = math.sqrt %613 : vector<14x128xf32>
    %c0_i32_730 = arith.constant 0 : i32
    %c0_i32_731 = arith.constant 0 : i32
    %c0_i32_732 = arith.constant 0 : i32
    %c0_i32_733 = arith.constant 0 : i32
    %c0_i32_734 = arith.constant 0 : i32
    %615 = tpu.memref_slice %arg3[%c0_i32_730, %c0_i32_731, %c0_i32_732, %c0_i32_733, %c0_i32_734] : memref<1x1x3x14x128xf32, #tpu.memory_space<vmem>> -> memref<1x1x3x14x128xf32, #tpu.memory_space<vmem>>
    %616 = tpu.memref_squeeze %615 : memref<1x1x3x14x128xf32, #tpu.memory_space<vmem>> -> memref<3x14x128xf32, #tpu.memory_space<vmem>>
    %c0_735 = arith.constant 0 : index
    %c0_736 = arith.constant 0 : index
    %c0_737 = arith.constant 0 : index
    %617 = vector.load %616[%c0_735, %c0_736, %c0_737] : memref<3x14x128xf32, #tpu.memory_space<vmem>>, vector<1x14x128xf32>
    %618 = vector.shape_cast %617 : vector<1x14x128xf32> to vector<14x128xf32>
    %c0_i32_738 = arith.constant 0 : i32
    %c0_i32_739 = arith.constant 0 : i32
    %c0_i32_740 = arith.constant 0 : i32
    %c0_i32_741 = arith.constant 0 : i32
    %c0_i32_742 = arith.constant 0 : i32
    %619 = tpu.memref_slice %arg3[%c0_i32_738, %c0_i32_739, %c0_i32_740, %c0_i32_741, %c0_i32_742] : memref<1x1x3x14x128xf32, #tpu.memory_space<vmem>> -> memref<1x1x3x14x128xf32, #tpu.memory_space<vmem>>
    %620 = tpu.memref_squeeze %619 : memref<1x1x3x14x128xf32, #tpu.memory_space<vmem>> -> memref<3x14x128xf32, #tpu.memory_space<vmem>>
    %c0_743 = arith.constant 0 : index
    %c7_744 = arith.constant 7 : index
    %c0_745 = arith.constant 0 : index
    %621 = vector.load %620[%c0_743, %c7_744, %c0_745] : memref<3x14x128xf32, #tpu.memory_space<vmem>>, vector<1x1x128xf32>
    %622 = vector.shape_cast %621 : vector<1x1x128xf32> to vector<1x128xf32>
    %623 = vector.broadcast %622 : vector<1x128xf32> to vector<14x128xf32>
    %624 = arith.subf %618, %623 : vector<14x128xf32>
    %c0_i32_746 = arith.constant 0 : i32
    %c0_i32_747 = arith.constant 0 : i32
    %c0_i32_748 = arith.constant 0 : i32
    %c0_i32_749 = arith.constant 0 : i32
    %c0_i32_750 = arith.constant 0 : i32
    %625 = tpu.memref_slice %arg3[%c0_i32_746, %c0_i32_747, %c0_i32_748, %c0_i32_749, %c0_i32_750] : memref<1x1x3x14x128xf32, #tpu.memory_space<vmem>> -> memref<1x1x3x14x128xf32, #tpu.memory_space<vmem>>
    %626 = tpu.memref_squeeze %625 : memref<1x1x3x14x128xf32, #tpu.memory_space<vmem>> -> memref<3x14x128xf32, #tpu.memory_space<vmem>>
    %c1_751 = arith.constant 1 : index
    %c0_752 = arith.constant 0 : index
    %c0_753 = arith.constant 0 : index
    %627 = vector.load %626[%c1_751, %c0_752, %c0_753] : memref<3x14x128xf32, #tpu.memory_space<vmem>>, vector<1x14x128xf32>
    %628 = vector.shape_cast %627 : vector<1x14x128xf32> to vector<14x128xf32>
    %c0_i32_754 = arith.constant 0 : i32
    %c0_i32_755 = arith.constant 0 : i32
    %c0_i32_756 = arith.constant 0 : i32
    %c0_i32_757 = arith.constant 0 : i32
    %c0_i32_758 = arith.constant 0 : i32
    %629 = tpu.memref_slice %arg3[%c0_i32_754, %c0_i32_755, %c0_i32_756, %c0_i32_757, %c0_i32_758] : memref<1x1x3x14x128xf32, #tpu.memory_space<vmem>> -> memref<1x1x3x14x128xf32, #tpu.memory_space<vmem>>
    %630 = tpu.memref_squeeze %629 : memref<1x1x3x14x128xf32, #tpu.memory_space<vmem>> -> memref<3x14x128xf32, #tpu.memory_space<vmem>>
    %c1_759 = arith.constant 1 : index
    %c7_760 = arith.constant 7 : index
    %c0_761 = arith.constant 0 : index
    %631 = vector.load %630[%c1_759, %c7_760, %c0_761] : memref<3x14x128xf32, #tpu.memory_space<vmem>>, vector<1x1x128xf32>
    %632 = vector.shape_cast %631 : vector<1x1x128xf32> to vector<1x128xf32>
    %633 = vector.broadcast %632 : vector<1x128xf32> to vector<14x128xf32>
    %634 = arith.subf %628, %633 : vector<14x128xf32>
    %c0_i32_762 = arith.constant 0 : i32
    %c0_i32_763 = arith.constant 0 : i32
    %c0_i32_764 = arith.constant 0 : i32
    %c0_i32_765 = arith.constant 0 : i32
    %c0_i32_766 = arith.constant 0 : i32
    %635 = tpu.memref_slice %arg3[%c0_i32_762, %c0_i32_763, %c0_i32_764, %c0_i32_765, %c0_i32_766] : memref<1x1x3x14x128xf32, #tpu.memory_space<vmem>> -> memref<1x1x3x14x128xf32, #tpu.memory_space<vmem>>
    %636 = tpu.memref_squeeze %635 : memref<1x1x3x14x128xf32, #tpu.memory_space<vmem>> -> memref<3x14x128xf32, #tpu.memory_space<vmem>>
    %c2_767 = arith.constant 2 : index
    %c0_768 = arith.constant 0 : index
    %c0_769 = arith.constant 0 : index
    %637 = vector.load %636[%c2_767, %c0_768, %c0_769] : memref<3x14x128xf32, #tpu.memory_space<vmem>>, vector<1x14x128xf32>
    %638 = vector.shape_cast %637 : vector<1x14x128xf32> to vector<14x128xf32>
    %c0_i32_770 = arith.constant 0 : i32
    %c0_i32_771 = arith.constant 0 : i32
    %c0_i32_772 = arith.constant 0 : i32
    %c0_i32_773 = arith.constant 0 : i32
    %c0_i32_774 = arith.constant 0 : i32
    %639 = tpu.memref_slice %arg3[%c0_i32_770, %c0_i32_771, %c0_i32_772, %c0_i32_773, %c0_i32_774] : memref<1x1x3x14x128xf32, #tpu.memory_space<vmem>> -> memref<1x1x3x14x128xf32, #tpu.memory_space<vmem>>
    %640 = tpu.memref_squeeze %639 : memref<1x1x3x14x128xf32, #tpu.memory_space<vmem>> -> memref<3x14x128xf32, #tpu.memory_space<vmem>>
    %c2_775 = arith.constant 2 : index
    %c7_776 = arith.constant 7 : index
    %c0_777 = arith.constant 0 : index
    %641 = vector.load %640[%c2_775, %c7_776, %c0_777] : memref<3x14x128xf32, #tpu.memory_space<vmem>>, vector<1x1x128xf32>
    %642 = vector.shape_cast %641 : vector<1x1x128xf32> to vector<1x128xf32>
    %643 = vector.broadcast %642 : vector<1x128xf32> to vector<14x128xf32>
    %644 = arith.subf %638, %643 : vector<14x128xf32>
    %645 = arith.mulf %624, %624 : vector<14x128xf32>
    %646 = arith.mulf %634, %634 : vector<14x128xf32>
    %647 = arith.addf %645, %646 : vector<14x128xf32>
    %648 = arith.mulf %644, %644 : vector<14x128xf32>
    %649 = arith.addf %647, %648 : vector<14x128xf32>
    %cst_778 = arith.constant 3.000000e-08 : f32
    %650 = vector.broadcast %cst_778 : f32 to vector<14x128xf32>
    %651 = arith.addf %649, %650 : vector<14x128xf32>
    %652 = math.sqrt %651 : vector<14x128xf32>
    %653 = arith.subf %614, %652 : vector<14x128xf32>
    %654 = arith.mulf %653, %653 : vector<14x128xf32>
    %655 = vector.extract_strided_slice %1 {offsets = [7, 0], sizes = [1, 128], strides = [1, 1]} : vector<14x128xf32> to vector<1x128xf32>
    %656 = vector.broadcast %655 : vector<1x128xf32> to vector<14x128xf32>
    %657 = arith.mulf %654, %656 : vector<14x128xf32>
    %658 = arith.addf %576, %657 : vector<14x128xf32>
    %c0_i32_779 = arith.constant 0 : i32
    %c0_i32_780 = arith.constant 0 : i32
    %c0_i32_781 = arith.constant 0 : i32
    %c0_i32_782 = arith.constant 0 : i32
    %c0_i32_783 = arith.constant 0 : i32
    %659 = tpu.memref_slice %arg2[%c0_i32_779, %c0_i32_780, %c0_i32_781, %c0_i32_782, %c0_i32_783] : memref<1x1x3x14x128xf32, #tpu.memory_space<vmem>> -> memref<1x1x3x14x128xf32, #tpu.memory_space<vmem>>
    %660 = tpu.memref_squeeze %659 : memref<1x1x3x14x128xf32, #tpu.memory_space<vmem>> -> memref<3x14x128xf32, #tpu.memory_space<vmem>>
    %c0_784 = arith.constant 0 : index
    %c0_785 = arith.constant 0 : index
    %c0_786 = arith.constant 0 : index
    %661 = vector.load %660[%c0_784, %c0_785, %c0_786] : memref<3x14x128xf32, #tpu.memory_space<vmem>>, vector<1x14x128xf32>
    %662 = vector.shape_cast %661 : vector<1x14x128xf32> to vector<14x128xf32>
    %c0_i32_787 = arith.constant 0 : i32
    %c0_i32_788 = arith.constant 0 : i32
    %c0_i32_789 = arith.constant 0 : i32
    %c0_i32_790 = arith.constant 0 : i32
    %c0_i32_791 = arith.constant 0 : i32
    %663 = tpu.memref_slice %arg2[%c0_i32_787, %c0_i32_788, %c0_i32_789, %c0_i32_790, %c0_i32_791] : memref<1x1x3x14x128xf32, #tpu.memory_space<vmem>> -> memref<1x1x3x14x128xf32, #tpu.memory_space<vmem>>
    %664 = tpu.memref_squeeze %663 : memref<1x1x3x14x128xf32, #tpu.memory_space<vmem>> -> memref<3x14x128xf32, #tpu.memory_space<vmem>>
    %c0_792 = arith.constant 0 : index
    %c8 = arith.constant 8 : index
    %c0_793 = arith.constant 0 : index
    %665 = vector.load %664[%c0_792, %c8, %c0_793] : memref<3x14x128xf32, #tpu.memory_space<vmem>>, vector<1x1x128xf32>
    %666 = vector.shape_cast %665 : vector<1x1x128xf32> to vector<1x128xf32>
    %667 = vector.broadcast %666 : vector<1x128xf32> to vector<14x128xf32>
    %668 = arith.subf %662, %667 : vector<14x128xf32>
    %c0_i32_794 = arith.constant 0 : i32
    %c0_i32_795 = arith.constant 0 : i32
    %c0_i32_796 = arith.constant 0 : i32
    %c0_i32_797 = arith.constant 0 : i32
    %c0_i32_798 = arith.constant 0 : i32
    %669 = tpu.memref_slice %arg2[%c0_i32_794, %c0_i32_795, %c0_i32_796, %c0_i32_797, %c0_i32_798] : memref<1x1x3x14x128xf32, #tpu.memory_space<vmem>> -> memref<1x1x3x14x128xf32, #tpu.memory_space<vmem>>
    %670 = tpu.memref_squeeze %669 : memref<1x1x3x14x128xf32, #tpu.memory_space<vmem>> -> memref<3x14x128xf32, #tpu.memory_space<vmem>>
    %c1_799 = arith.constant 1 : index
    %c0_800 = arith.constant 0 : index
    %c0_801 = arith.constant 0 : index
    %671 = vector.load %670[%c1_799, %c0_800, %c0_801] : memref<3x14x128xf32, #tpu.memory_space<vmem>>, vector<1x14x128xf32>
    %672 = vector.shape_cast %671 : vector<1x14x128xf32> to vector<14x128xf32>
    %c0_i32_802 = arith.constant 0 : i32
    %c0_i32_803 = arith.constant 0 : i32
    %c0_i32_804 = arith.constant 0 : i32
    %c0_i32_805 = arith.constant 0 : i32
    %c0_i32_806 = arith.constant 0 : i32
    %673 = tpu.memref_slice %arg2[%c0_i32_802, %c0_i32_803, %c0_i32_804, %c0_i32_805, %c0_i32_806] : memref<1x1x3x14x128xf32, #tpu.memory_space<vmem>> -> memref<1x1x3x14x128xf32, #tpu.memory_space<vmem>>
    %674 = tpu.memref_squeeze %673 : memref<1x1x3x14x128xf32, #tpu.memory_space<vmem>> -> memref<3x14x128xf32, #tpu.memory_space<vmem>>
    %c1_807 = arith.constant 1 : index
    %c8_808 = arith.constant 8 : index
    %c0_809 = arith.constant 0 : index
    %675 = vector.load %674[%c1_807, %c8_808, %c0_809] : memref<3x14x128xf32, #tpu.memory_space<vmem>>, vector<1x1x128xf32>
    %676 = vector.shape_cast %675 : vector<1x1x128xf32> to vector<1x128xf32>
    %677 = vector.broadcast %676 : vector<1x128xf32> to vector<14x128xf32>
    %678 = arith.subf %672, %677 : vector<14x128xf32>
    %c0_i32_810 = arith.constant 0 : i32
    %c0_i32_811 = arith.constant 0 : i32
    %c0_i32_812 = arith.constant 0 : i32
    %c0_i32_813 = arith.constant 0 : i32
    %c0_i32_814 = arith.constant 0 : i32
    %679 = tpu.memref_slice %arg2[%c0_i32_810, %c0_i32_811, %c0_i32_812, %c0_i32_813, %c0_i32_814] : memref<1x1x3x14x128xf32, #tpu.memory_space<vmem>> -> memref<1x1x3x14x128xf32, #tpu.memory_space<vmem>>
    %680 = tpu.memref_squeeze %679 : memref<1x1x3x14x128xf32, #tpu.memory_space<vmem>> -> memref<3x14x128xf32, #tpu.memory_space<vmem>>
    %c2_815 = arith.constant 2 : index
    %c0_816 = arith.constant 0 : index
    %c0_817 = arith.constant 0 : index
    %681 = vector.load %680[%c2_815, %c0_816, %c0_817] : memref<3x14x128xf32, #tpu.memory_space<vmem>>, vector<1x14x128xf32>
    %682 = vector.shape_cast %681 : vector<1x14x128xf32> to vector<14x128xf32>
    %c0_i32_818 = arith.constant 0 : i32
    %c0_i32_819 = arith.constant 0 : i32
    %c0_i32_820 = arith.constant 0 : i32
    %c0_i32_821 = arith.constant 0 : i32
    %c0_i32_822 = arith.constant 0 : i32
    %683 = tpu.memref_slice %arg2[%c0_i32_818, %c0_i32_819, %c0_i32_820, %c0_i32_821, %c0_i32_822] : memref<1x1x3x14x128xf32, #tpu.memory_space<vmem>> -> memref<1x1x3x14x128xf32, #tpu.memory_space<vmem>>
    %684 = tpu.memref_squeeze %683 : memref<1x1x3x14x128xf32, #tpu.memory_space<vmem>> -> memref<3x14x128xf32, #tpu.memory_space<vmem>>
    %c2_823 = arith.constant 2 : index
    %c8_824 = arith.constant 8 : index
    %c0_825 = arith.constant 0 : index
    %685 = vector.load %684[%c2_823, %c8_824, %c0_825] : memref<3x14x128xf32, #tpu.memory_space<vmem>>, vector<1x1x128xf32>
    %686 = vector.shape_cast %685 : vector<1x1x128xf32> to vector<1x128xf32>
    %687 = vector.broadcast %686 : vector<1x128xf32> to vector<14x128xf32>
    %688 = arith.subf %682, %687 : vector<14x128xf32>
    %689 = arith.mulf %668, %668 : vector<14x128xf32>
    %690 = arith.mulf %678, %678 : vector<14x128xf32>
    %691 = arith.addf %689, %690 : vector<14x128xf32>
    %692 = arith.mulf %688, %688 : vector<14x128xf32>
    %693 = arith.addf %691, %692 : vector<14x128xf32>
    %cst_826 = arith.constant 3.000000e-08 : f32
    %694 = vector.broadcast %cst_826 : f32 to vector<14x128xf32>
    %695 = arith.addf %693, %694 : vector<14x128xf32>
    %696 = math.sqrt %695 : vector<14x128xf32>
    %c0_i32_827 = arith.constant 0 : i32
    %c0_i32_828 = arith.constant 0 : i32
    %c0_i32_829 = arith.constant 0 : i32
    %c0_i32_830 = arith.constant 0 : i32
    %c0_i32_831 = arith.constant 0 : i32
    %697 = tpu.memref_slice %arg3[%c0_i32_827, %c0_i32_828, %c0_i32_829, %c0_i32_830, %c0_i32_831] : memref<1x1x3x14x128xf32, #tpu.memory_space<vmem>> -> memref<1x1x3x14x128xf32, #tpu.memory_space<vmem>>
    %698 = tpu.memref_squeeze %697 : memref<1x1x3x14x128xf32, #tpu.memory_space<vmem>> -> memref<3x14x128xf32, #tpu.memory_space<vmem>>
    %c0_832 = arith.constant 0 : index
    %c0_833 = arith.constant 0 : index
    %c0_834 = arith.constant 0 : index
    %699 = vector.load %698[%c0_832, %c0_833, %c0_834] : memref<3x14x128xf32, #tpu.memory_space<vmem>>, vector<1x14x128xf32>
    %700 = vector.shape_cast %699 : vector<1x14x128xf32> to vector<14x128xf32>
    %c0_i32_835 = arith.constant 0 : i32
    %c0_i32_836 = arith.constant 0 : i32
    %c0_i32_837 = arith.constant 0 : i32
    %c0_i32_838 = arith.constant 0 : i32
    %c0_i32_839 = arith.constant 0 : i32
    %701 = tpu.memref_slice %arg3[%c0_i32_835, %c0_i32_836, %c0_i32_837, %c0_i32_838, %c0_i32_839] : memref<1x1x3x14x128xf32, #tpu.memory_space<vmem>> -> memref<1x1x3x14x128xf32, #tpu.memory_space<vmem>>
    %702 = tpu.memref_squeeze %701 : memref<1x1x3x14x128xf32, #tpu.memory_space<vmem>> -> memref<3x14x128xf32, #tpu.memory_space<vmem>>
    %c0_840 = arith.constant 0 : index
    %c8_841 = arith.constant 8 : index
    %c0_842 = arith.constant 0 : index
    %703 = vector.load %702[%c0_840, %c8_841, %c0_842] : memref<3x14x128xf32, #tpu.memory_space<vmem>>, vector<1x1x128xf32>
    %704 = vector.shape_cast %703 : vector<1x1x128xf32> to vector<1x128xf32>
    %705 = vector.broadcast %704 : vector<1x128xf32> to vector<14x128xf32>
    %706 = arith.subf %700, %705 : vector<14x128xf32>
    %c0_i32_843 = arith.constant 0 : i32
    %c0_i32_844 = arith.constant 0 : i32
    %c0_i32_845 = arith.constant 0 : i32
    %c0_i32_846 = arith.constant 0 : i32
    %c0_i32_847 = arith.constant 0 : i32
    %707 = tpu.memref_slice %arg3[%c0_i32_843, %c0_i32_844, %c0_i32_845, %c0_i32_846, %c0_i32_847] : memref<1x1x3x14x128xf32, #tpu.memory_space<vmem>> -> memref<1x1x3x14x128xf32, #tpu.memory_space<vmem>>
    %708 = tpu.memref_squeeze %707 : memref<1x1x3x14x128xf32, #tpu.memory_space<vmem>> -> memref<3x14x128xf32, #tpu.memory_space<vmem>>
    %c1_848 = arith.constant 1 : index
    %c0_849 = arith.constant 0 : index
    %c0_850 = arith.constant 0 : index
    %709 = vector.load %708[%c1_848, %c0_849, %c0_850] : memref<3x14x128xf32, #tpu.memory_space<vmem>>, vector<1x14x128xf32>
    %710 = vector.shape_cast %709 : vector<1x14x128xf32> to vector<14x128xf32>
    %c0_i32_851 = arith.constant 0 : i32
    %c0_i32_852 = arith.constant 0 : i32
    %c0_i32_853 = arith.constant 0 : i32
    %c0_i32_854 = arith.constant 0 : i32
    %c0_i32_855 = arith.constant 0 : i32
    %711 = tpu.memref_slice %arg3[%c0_i32_851, %c0_i32_852, %c0_i32_853, %c0_i32_854, %c0_i32_855] : memref<1x1x3x14x128xf32, #tpu.memory_space<vmem>> -> memref<1x1x3x14x128xf32, #tpu.memory_space<vmem>>
    %712 = tpu.memref_squeeze %711 : memref<1x1x3x14x128xf32, #tpu.memory_space<vmem>> -> memref<3x14x128xf32, #tpu.memory_space<vmem>>
    %c1_856 = arith.constant 1 : index
    %c8_857 = arith.constant 8 : index
    %c0_858 = arith.constant 0 : index
    %713 = vector.load %712[%c1_856, %c8_857, %c0_858] : memref<3x14x128xf32, #tpu.memory_space<vmem>>, vector<1x1x128xf32>
    %714 = vector.shape_cast %713 : vector<1x1x128xf32> to vector<1x128xf32>
    %715 = vector.broadcast %714 : vector<1x128xf32> to vector<14x128xf32>
    %716 = arith.subf %710, %715 : vector<14x128xf32>
    %c0_i32_859 = arith.constant 0 : i32
    %c0_i32_860 = arith.constant 0 : i32
    %c0_i32_861 = arith.constant 0 : i32
    %c0_i32_862 = arith.constant 0 : i32
    %c0_i32_863 = arith.constant 0 : i32
    %717 = tpu.memref_slice %arg3[%c0_i32_859, %c0_i32_860, %c0_i32_861, %c0_i32_862, %c0_i32_863] : memref<1x1x3x14x128xf32, #tpu.memory_space<vmem>> -> memref<1x1x3x14x128xf32, #tpu.memory_space<vmem>>
    %718 = tpu.memref_squeeze %717 : memref<1x1x3x14x128xf32, #tpu.memory_space<vmem>> -> memref<3x14x128xf32, #tpu.memory_space<vmem>>
    %c2_864 = arith.constant 2 : index
    %c0_865 = arith.constant 0 : index
    %c0_866 = arith.constant 0 : index
    %719 = vector.load %718[%c2_864, %c0_865, %c0_866] : memref<3x14x128xf32, #tpu.memory_space<vmem>>, vector<1x14x128xf32>
    %720 = vector.shape_cast %719 : vector<1x14x128xf32> to vector<14x128xf32>
    %c0_i32_867 = arith.constant 0 : i32
    %c0_i32_868 = arith.constant 0 : i32
    %c0_i32_869 = arith.constant 0 : i32
    %c0_i32_870 = arith.constant 0 : i32
    %c0_i32_871 = arith.constant 0 : i32
    %721 = tpu.memref_slice %arg3[%c0_i32_867, %c0_i32_868, %c0_i32_869, %c0_i32_870, %c0_i32_871] : memref<1x1x3x14x128xf32, #tpu.memory_space<vmem>> -> memref<1x1x3x14x128xf32, #tpu.memory_space<vmem>>
    %722 = tpu.memref_squeeze %721 : memref<1x1x3x14x128xf32, #tpu.memory_space<vmem>> -> memref<3x14x128xf32, #tpu.memory_space<vmem>>
    %c2_872 = arith.constant 2 : index
    %c8_873 = arith.constant 8 : index
    %c0_874 = arith.constant 0 : index
    %723 = vector.load %722[%c2_872, %c8_873, %c0_874] : memref<3x14x128xf32, #tpu.memory_space<vmem>>, vector<1x1x128xf32>
    %724 = vector.shape_cast %723 : vector<1x1x128xf32> to vector<1x128xf32>
    %725 = vector.broadcast %724 : vector<1x128xf32> to vector<14x128xf32>
    %726 = arith.subf %720, %725 : vector<14x128xf32>
    %727 = arith.mulf %706, %706 : vector<14x128xf32>
    %728 = arith.mulf %716, %716 : vector<14x128xf32>
    %729 = arith.addf %727, %728 : vector<14x128xf32>
    %730 = arith.mulf %726, %726 : vector<14x128xf32>
    %731 = arith.addf %729, %730 : vector<14x128xf32>
    %cst_875 = arith.constant 3.000000e-08 : f32
    %732 = vector.broadcast %cst_875 : f32 to vector<14x128xf32>
    %733 = arith.addf %731, %732 : vector<14x128xf32>
    %734 = math.sqrt %733 : vector<14x128xf32>
    %735 = arith.subf %696, %734 : vector<14x128xf32>
    %736 = arith.mulf %735, %735 : vector<14x128xf32>
    %737 = vector.extract_strided_slice %1 {offsets = [8, 0], sizes = [1, 128], strides = [1, 1]} : vector<14x128xf32> to vector<1x128xf32>
    %738 = vector.broadcast %737 : vector<1x128xf32> to vector<14x128xf32>
    %739 = arith.mulf %736, %738 : vector<14x128xf32>
    %740 = arith.addf %658, %739 : vector<14x128xf32>
    %c0_i32_876 = arith.constant 0 : i32
    %c0_i32_877 = arith.constant 0 : i32
    %c0_i32_878 = arith.constant 0 : i32
    %c0_i32_879 = arith.constant 0 : i32
    %c0_i32_880 = arith.constant 0 : i32
    %741 = tpu.memref_slice %arg2[%c0_i32_876, %c0_i32_877, %c0_i32_878, %c0_i32_879, %c0_i32_880] : memref<1x1x3x14x128xf32, #tpu.memory_space<vmem>> -> memref<1x1x3x14x128xf32, #tpu.memory_space<vmem>>
    %742 = tpu.memref_squeeze %741 : memref<1x1x3x14x128xf32, #tpu.memory_space<vmem>> -> memref<3x14x128xf32, #tpu.memory_space<vmem>>
    %c0_881 = arith.constant 0 : index
    %c0_882 = arith.constant 0 : index
    %c0_883 = arith.constant 0 : index
    %743 = vector.load %742[%c0_881, %c0_882, %c0_883] : memref<3x14x128xf32, #tpu.memory_space<vmem>>, vector<1x14x128xf32>
    %744 = vector.shape_cast %743 : vector<1x14x128xf32> to vector<14x128xf32>
    %c0_i32_884 = arith.constant 0 : i32
    %c0_i32_885 = arith.constant 0 : i32
    %c0_i32_886 = arith.constant 0 : i32
    %c0_i32_887 = arith.constant 0 : i32
    %c0_i32_888 = arith.constant 0 : i32
    %745 = tpu.memref_slice %arg2[%c0_i32_884, %c0_i32_885, %c0_i32_886, %c0_i32_887, %c0_i32_888] : memref<1x1x3x14x128xf32, #tpu.memory_space<vmem>> -> memref<1x1x3x14x128xf32, #tpu.memory_space<vmem>>
    %746 = tpu.memref_squeeze %745 : memref<1x1x3x14x128xf32, #tpu.memory_space<vmem>> -> memref<3x14x128xf32, #tpu.memory_space<vmem>>
    %c0_889 = arith.constant 0 : index
    %c9 = arith.constant 9 : index
    %c0_890 = arith.constant 0 : index
    %747 = vector.load %746[%c0_889, %c9, %c0_890] : memref<3x14x128xf32, #tpu.memory_space<vmem>>, vector<1x1x128xf32>
    %748 = vector.shape_cast %747 : vector<1x1x128xf32> to vector<1x128xf32>
    %749 = vector.broadcast %748 : vector<1x128xf32> to vector<14x128xf32>
    %750 = arith.subf %744, %749 : vector<14x128xf32>
    %c0_i32_891 = arith.constant 0 : i32
    %c0_i32_892 = arith.constant 0 : i32
    %c0_i32_893 = arith.constant 0 : i32
    %c0_i32_894 = arith.constant 0 : i32
    %c0_i32_895 = arith.constant 0 : i32
    %751 = tpu.memref_slice %arg2[%c0_i32_891, %c0_i32_892, %c0_i32_893, %c0_i32_894, %c0_i32_895] : memref<1x1x3x14x128xf32, #tpu.memory_space<vmem>> -> memref<1x1x3x14x128xf32, #tpu.memory_space<vmem>>
    %752 = tpu.memref_squeeze %751 : memref<1x1x3x14x128xf32, #tpu.memory_space<vmem>> -> memref<3x14x128xf32, #tpu.memory_space<vmem>>
    %c1_896 = arith.constant 1 : index
    %c0_897 = arith.constant 0 : index
    %c0_898 = arith.constant 0 : index
    %753 = vector.load %752[%c1_896, %c0_897, %c0_898] : memref<3x14x128xf32, #tpu.memory_space<vmem>>, vector<1x14x128xf32>
    %754 = vector.shape_cast %753 : vector<1x14x128xf32> to vector<14x128xf32>
    %c0_i32_899 = arith.constant 0 : i32
    %c0_i32_900 = arith.constant 0 : i32
    %c0_i32_901 = arith.constant 0 : i32
    %c0_i32_902 = arith.constant 0 : i32
    %c0_i32_903 = arith.constant 0 : i32
    %755 = tpu.memref_slice %arg2[%c0_i32_899, %c0_i32_900, %c0_i32_901, %c0_i32_902, %c0_i32_903] : memref<1x1x3x14x128xf32, #tpu.memory_space<vmem>> -> memref<1x1x3x14x128xf32, #tpu.memory_space<vmem>>
    %756 = tpu.memref_squeeze %755 : memref<1x1x3x14x128xf32, #tpu.memory_space<vmem>> -> memref<3x14x128xf32, #tpu.memory_space<vmem>>
    %c1_904 = arith.constant 1 : index
    %c9_905 = arith.constant 9 : index
    %c0_906 = arith.constant 0 : index
    %757 = vector.load %756[%c1_904, %c9_905, %c0_906] : memref<3x14x128xf32, #tpu.memory_space<vmem>>, vector<1x1x128xf32>
    %758 = vector.shape_cast %757 : vector<1x1x128xf32> to vector<1x128xf32>
    %759 = vector.broadcast %758 : vector<1x128xf32> to vector<14x128xf32>
    %760 = arith.subf %754, %759 : vector<14x128xf32>
    %c0_i32_907 = arith.constant 0 : i32
    %c0_i32_908 = arith.constant 0 : i32
    %c0_i32_909 = arith.constant 0 : i32
    %c0_i32_910 = arith.constant 0 : i32
    %c0_i32_911 = arith.constant 0 : i32
    %761 = tpu.memref_slice %arg2[%c0_i32_907, %c0_i32_908, %c0_i32_909, %c0_i32_910, %c0_i32_911] : memref<1x1x3x14x128xf32, #tpu.memory_space<vmem>> -> memref<1x1x3x14x128xf32, #tpu.memory_space<vmem>>
    %762 = tpu.memref_squeeze %761 : memref<1x1x3x14x128xf32, #tpu.memory_space<vmem>> -> memref<3x14x128xf32, #tpu.memory_space<vmem>>
    %c2_912 = arith.constant 2 : index
    %c0_913 = arith.constant 0 : index
    %c0_914 = arith.constant 0 : index
    %763 = vector.load %762[%c2_912, %c0_913, %c0_914] : memref<3x14x128xf32, #tpu.memory_space<vmem>>, vector<1x14x128xf32>
    %764 = vector.shape_cast %763 : vector<1x14x128xf32> to vector<14x128xf32>
    %c0_i32_915 = arith.constant 0 : i32
    %c0_i32_916 = arith.constant 0 : i32
    %c0_i32_917 = arith.constant 0 : i32
    %c0_i32_918 = arith.constant 0 : i32
    %c0_i32_919 = arith.constant 0 : i32
    %765 = tpu.memref_slice %arg2[%c0_i32_915, %c0_i32_916, %c0_i32_917, %c0_i32_918, %c0_i32_919] : memref<1x1x3x14x128xf32, #tpu.memory_space<vmem>> -> memref<1x1x3x14x128xf32, #tpu.memory_space<vmem>>
    %766 = tpu.memref_squeeze %765 : memref<1x1x3x14x128xf32, #tpu.memory_space<vmem>> -> memref<3x14x128xf32, #tpu.memory_space<vmem>>
    %c2_920 = arith.constant 2 : index
    %c9_921 = arith.constant 9 : index
    %c0_922 = arith.constant 0 : index
    %767 = vector.load %766[%c2_920, %c9_921, %c0_922] : memref<3x14x128xf32, #tpu.memory_space<vmem>>, vector<1x1x128xf32>
    %768 = vector.shape_cast %767 : vector<1x1x128xf32> to vector<1x128xf32>
    %769 = vector.broadcast %768 : vector<1x128xf32> to vector<14x128xf32>
    %770 = arith.subf %764, %769 : vector<14x128xf32>
    %771 = arith.mulf %750, %750 : vector<14x128xf32>
    %772 = arith.mulf %760, %760 : vector<14x128xf32>
    %773 = arith.addf %771, %772 : vector<14x128xf32>
    %774 = arith.mulf %770, %770 : vector<14x128xf32>
    %775 = arith.addf %773, %774 : vector<14x128xf32>
    %cst_923 = arith.constant 3.000000e-08 : f32
    %776 = vector.broadcast %cst_923 : f32 to vector<14x128xf32>
    %777 = arith.addf %775, %776 : vector<14x128xf32>
    %778 = math.sqrt %777 : vector<14x128xf32>
    %c0_i32_924 = arith.constant 0 : i32
    %c0_i32_925 = arith.constant 0 : i32
    %c0_i32_926 = arith.constant 0 : i32
    %c0_i32_927 = arith.constant 0 : i32
    %c0_i32_928 = arith.constant 0 : i32
    %779 = tpu.memref_slice %arg3[%c0_i32_924, %c0_i32_925, %c0_i32_926, %c0_i32_927, %c0_i32_928] : memref<1x1x3x14x128xf32, #tpu.memory_space<vmem>> -> memref<1x1x3x14x128xf32, #tpu.memory_space<vmem>>
    %780 = tpu.memref_squeeze %779 : memref<1x1x3x14x128xf32, #tpu.memory_space<vmem>> -> memref<3x14x128xf32, #tpu.memory_space<vmem>>
    %c0_929 = arith.constant 0 : index
    %c0_930 = arith.constant 0 : index
    %c0_931 = arith.constant 0 : index
    %781 = vector.load %780[%c0_929, %c0_930, %c0_931] : memref<3x14x128xf32, #tpu.memory_space<vmem>>, vector<1x14x128xf32>
    %782 = vector.shape_cast %781 : vector<1x14x128xf32> to vector<14x128xf32>
    %c0_i32_932 = arith.constant 0 : i32
    %c0_i32_933 = arith.constant 0 : i32
    %c0_i32_934 = arith.constant 0 : i32
    %c0_i32_935 = arith.constant 0 : i32
    %c0_i32_936 = arith.constant 0 : i32
    %783 = tpu.memref_slice %arg3[%c0_i32_932, %c0_i32_933, %c0_i32_934, %c0_i32_935, %c0_i32_936] : memref<1x1x3x14x128xf32, #tpu.memory_space<vmem>> -> memref<1x1x3x14x128xf32, #tpu.memory_space<vmem>>
    %784 = tpu.memref_squeeze %783 : memref<1x1x3x14x128xf32, #tpu.memory_space<vmem>> -> memref<3x14x128xf32, #tpu.memory_space<vmem>>
    %c0_937 = arith.constant 0 : index
    %c9_938 = arith.constant 9 : index
    %c0_939 = arith.constant 0 : index
    %785 = vector.load %784[%c0_937, %c9_938, %c0_939] : memref<3x14x128xf32, #tpu.memory_space<vmem>>, vector<1x1x128xf32>
    %786 = vector.shape_cast %785 : vector<1x1x128xf32> to vector<1x128xf32>
    %787 = vector.broadcast %786 : vector<1x128xf32> to vector<14x128xf32>
    %788 = arith.subf %782, %787 : vector<14x128xf32>
    %c0_i32_940 = arith.constant 0 : i32
    %c0_i32_941 = arith.constant 0 : i32
    %c0_i32_942 = arith.constant 0 : i32
    %c0_i32_943 = arith.constant 0 : i32
    %c0_i32_944 = arith.constant 0 : i32
    %789 = tpu.memref_slice %arg3[%c0_i32_940, %c0_i32_941, %c0_i32_942, %c0_i32_943, %c0_i32_944] : memref<1x1x3x14x128xf32, #tpu.memory_space<vmem>> -> memref<1x1x3x14x128xf32, #tpu.memory_space<vmem>>
    %790 = tpu.memref_squeeze %789 : memref<1x1x3x14x128xf32, #tpu.memory_space<vmem>> -> memref<3x14x128xf32, #tpu.memory_space<vmem>>
    %c1_945 = arith.constant 1 : index
    %c0_946 = arith.constant 0 : index
    %c0_947 = arith.constant 0 : index
    %791 = vector.load %790[%c1_945, %c0_946, %c0_947] : memref<3x14x128xf32, #tpu.memory_space<vmem>>, vector<1x14x128xf32>
    %792 = vector.shape_cast %791 : vector<1x14x128xf32> to vector<14x128xf32>
    %c0_i32_948 = arith.constant 0 : i32
    %c0_i32_949 = arith.constant 0 : i32
    %c0_i32_950 = arith.constant 0 : i32
    %c0_i32_951 = arith.constant 0 : i32
    %c0_i32_952 = arith.constant 0 : i32
    %793 = tpu.memref_slice %arg3[%c0_i32_948, %c0_i32_949, %c0_i32_950, %c0_i32_951, %c0_i32_952] : memref<1x1x3x14x128xf32, #tpu.memory_space<vmem>> -> memref<1x1x3x14x128xf32, #tpu.memory_space<vmem>>
    %794 = tpu.memref_squeeze %793 : memref<1x1x3x14x128xf32, #tpu.memory_space<vmem>> -> memref<3x14x128xf32, #tpu.memory_space<vmem>>
    %c1_953 = arith.constant 1 : index
    %c9_954 = arith.constant 9 : index
    %c0_955 = arith.constant 0 : index
    %795 = vector.load %794[%c1_953, %c9_954, %c0_955] : memref<3x14x128xf32, #tpu.memory_space<vmem>>, vector<1x1x128xf32>
    %796 = vector.shape_cast %795 : vector<1x1x128xf32> to vector<1x128xf32>
    %797 = vector.broadcast %796 : vector<1x128xf32> to vector<14x128xf32>
    %798 = arith.subf %792, %797 : vector<14x128xf32>
    %c0_i32_956 = arith.constant 0 : i32
    %c0_i32_957 = arith.constant 0 : i32
    %c0_i32_958 = arith.constant 0 : i32
    %c0_i32_959 = arith.constant 0 : i32
    %c0_i32_960 = arith.constant 0 : i32
    %799 = tpu.memref_slice %arg3[%c0_i32_956, %c0_i32_957, %c0_i32_958, %c0_i32_959, %c0_i32_960] : memref<1x1x3x14x128xf32, #tpu.memory_space<vmem>> -> memref<1x1x3x14x128xf32, #tpu.memory_space<vmem>>
    %800 = tpu.memref_squeeze %799 : memref<1x1x3x14x128xf32, #tpu.memory_space<vmem>> -> memref<3x14x128xf32, #tpu.memory_space<vmem>>
    %c2_961 = arith.constant 2 : index
    %c0_962 = arith.constant 0 : index
    %c0_963 = arith.constant 0 : index
    %801 = vector.load %800[%c2_961, %c0_962, %c0_963] : memref<3x14x128xf32, #tpu.memory_space<vmem>>, vector<1x14x128xf32>
    %802 = vector.shape_cast %801 : vector<1x14x128xf32> to vector<14x128xf32>
    %c0_i32_964 = arith.constant 0 : i32
    %c0_i32_965 = arith.constant 0 : i32
    %c0_i32_966 = arith.constant 0 : i32
    %c0_i32_967 = arith.constant 0 : i32
    %c0_i32_968 = arith.constant 0 : i32
    %803 = tpu.memref_slice %arg3[%c0_i32_964, %c0_i32_965, %c0_i32_966, %c0_i32_967, %c0_i32_968] : memref<1x1x3x14x128xf32, #tpu.memory_space<vmem>> -> memref<1x1x3x14x128xf32, #tpu.memory_space<vmem>>
    %804 = tpu.memref_squeeze %803 : memref<1x1x3x14x128xf32, #tpu.memory_space<vmem>> -> memref<3x14x128xf32, #tpu.memory_space<vmem>>
    %c2_969 = arith.constant 2 : index
    %c9_970 = arith.constant 9 : index
    %c0_971 = arith.constant 0 : index
    %805 = vector.load %804[%c2_969, %c9_970, %c0_971] : memref<3x14x128xf32, #tpu.memory_space<vmem>>, vector<1x1x128xf32>
    %806 = vector.shape_cast %805 : vector<1x1x128xf32> to vector<1x128xf32>
    %807 = vector.broadcast %806 : vector<1x128xf32> to vector<14x128xf32>
    %808 = arith.subf %802, %807 : vector<14x128xf32>
    %809 = arith.mulf %788, %788 : vector<14x128xf32>
    %810 = arith.mulf %798, %798 : vector<14x128xf32>
    %811 = arith.addf %809, %810 : vector<14x128xf32>
    %812 = arith.mulf %808, %808 : vector<14x128xf32>
    %813 = arith.addf %811, %812 : vector<14x128xf32>
    %cst_972 = arith.constant 3.000000e-08 : f32
    %814 = vector.broadcast %cst_972 : f32 to vector<14x128xf32>
    %815 = arith.addf %813, %814 : vector<14x128xf32>
    %816 = math.sqrt %815 : vector<14x128xf32>
    %817 = arith.subf %778, %816 : vector<14x128xf32>
    %818 = arith.mulf %817, %817 : vector<14x128xf32>
    %819 = vector.extract_strided_slice %1 {offsets = [9, 0], sizes = [1, 128], strides = [1, 1]} : vector<14x128xf32> to vector<1x128xf32>
    %820 = vector.broadcast %819 : vector<1x128xf32> to vector<14x128xf32>
    %821 = arith.mulf %818, %820 : vector<14x128xf32>
    %822 = arith.addf %740, %821 : vector<14x128xf32>
    %c0_i32_973 = arith.constant 0 : i32
    %c0_i32_974 = arith.constant 0 : i32
    %c0_i32_975 = arith.constant 0 : i32
    %c0_i32_976 = arith.constant 0 : i32
    %c0_i32_977 = arith.constant 0 : i32
    %823 = tpu.memref_slice %arg2[%c0_i32_973, %c0_i32_974, %c0_i32_975, %c0_i32_976, %c0_i32_977] : memref<1x1x3x14x128xf32, #tpu.memory_space<vmem>> -> memref<1x1x3x14x128xf32, #tpu.memory_space<vmem>>
    %824 = tpu.memref_squeeze %823 : memref<1x1x3x14x128xf32, #tpu.memory_space<vmem>> -> memref<3x14x128xf32, #tpu.memory_space<vmem>>
    %c0_978 = arith.constant 0 : index
    %c0_979 = arith.constant 0 : index
    %c0_980 = arith.constant 0 : index
    %825 = vector.load %824[%c0_978, %c0_979, %c0_980] : memref<3x14x128xf32, #tpu.memory_space<vmem>>, vector<1x14x128xf32>
    %826 = vector.shape_cast %825 : vector<1x14x128xf32> to vector<14x128xf32>
    %c0_i32_981 = arith.constant 0 : i32
    %c0_i32_982 = arith.constant 0 : i32
    %c0_i32_983 = arith.constant 0 : i32
    %c0_i32_984 = arith.constant 0 : i32
    %c0_i32_985 = arith.constant 0 : i32
    %827 = tpu.memref_slice %arg2[%c0_i32_981, %c0_i32_982, %c0_i32_983, %c0_i32_984, %c0_i32_985] : memref<1x1x3x14x128xf32, #tpu.memory_space<vmem>> -> memref<1x1x3x14x128xf32, #tpu.memory_space<vmem>>
    %828 = tpu.memref_squeeze %827 : memref<1x1x3x14x128xf32, #tpu.memory_space<vmem>> -> memref<3x14x128xf32, #tpu.memory_space<vmem>>
    %c0_986 = arith.constant 0 : index
    %c10 = arith.constant 10 : index
    %c0_987 = arith.constant 0 : index
    %829 = vector.load %828[%c0_986, %c10, %c0_987] : memref<3x14x128xf32, #tpu.memory_space<vmem>>, vector<1x1x128xf32>
    %830 = vector.shape_cast %829 : vector<1x1x128xf32> to vector<1x128xf32>
    %831 = vector.broadcast %830 : vector<1x128xf32> to vector<14x128xf32>
    %832 = arith.subf %826, %831 : vector<14x128xf32>
    %c0_i32_988 = arith.constant 0 : i32
    %c0_i32_989 = arith.constant 0 : i32
    %c0_i32_990 = arith.constant 0 : i32
    %c0_i32_991 = arith.constant 0 : i32
    %c0_i32_992 = arith.constant 0 : i32
    %833 = tpu.memref_slice %arg2[%c0_i32_988, %c0_i32_989, %c0_i32_990, %c0_i32_991, %c0_i32_992] : memref<1x1x3x14x128xf32, #tpu.memory_space<vmem>> -> memref<1x1x3x14x128xf32, #tpu.memory_space<vmem>>
    %834 = tpu.memref_squeeze %833 : memref<1x1x3x14x128xf32, #tpu.memory_space<vmem>> -> memref<3x14x128xf32, #tpu.memory_space<vmem>>
    %c1_993 = arith.constant 1 : index
    %c0_994 = arith.constant 0 : index
    %c0_995 = arith.constant 0 : index
    %835 = vector.load %834[%c1_993, %c0_994, %c0_995] : memref<3x14x128xf32, #tpu.memory_space<vmem>>, vector<1x14x128xf32>
    %836 = vector.shape_cast %835 : vector<1x14x128xf32> to vector<14x128xf32>
    %c0_i32_996 = arith.constant 0 : i32
    %c0_i32_997 = arith.constant 0 : i32
    %c0_i32_998 = arith.constant 0 : i32
    %c0_i32_999 = arith.constant 0 : i32
    %c0_i32_1000 = arith.constant 0 : i32
    %837 = tpu.memref_slice %arg2[%c0_i32_996, %c0_i32_997, %c0_i32_998, %c0_i32_999, %c0_i32_1000] : memref<1x1x3x14x128xf32, #tpu.memory_space<vmem>> -> memref<1x1x3x14x128xf32, #tpu.memory_space<vmem>>
    %838 = tpu.memref_squeeze %837 : memref<1x1x3x14x128xf32, #tpu.memory_space<vmem>> -> memref<3x14x128xf32, #tpu.memory_space<vmem>>
    %c1_1001 = arith.constant 1 : index
    %c10_1002 = arith.constant 10 : index
    %c0_1003 = arith.constant 0 : index
    %839 = vector.load %838[%c1_1001, %c10_1002, %c0_1003] : memref<3x14x128xf32, #tpu.memory_space<vmem>>, vector<1x1x128xf32>
    %840 = vector.shape_cast %839 : vector<1x1x128xf32> to vector<1x128xf32>
    %841 = vector.broadcast %840 : vector<1x128xf32> to vector<14x128xf32>
    %842 = arith.subf %836, %841 : vector<14x128xf32>
    %c0_i32_1004 = arith.constant 0 : i32
    %c0_i32_1005 = arith.constant 0 : i32
    %c0_i32_1006 = arith.constant 0 : i32
    %c0_i32_1007 = arith.constant 0 : i32
    %c0_i32_1008 = arith.constant 0 : i32
    %843 = tpu.memref_slice %arg2[%c0_i32_1004, %c0_i32_1005, %c0_i32_1006, %c0_i32_1007, %c0_i32_1008] : memref<1x1x3x14x128xf32, #tpu.memory_space<vmem>> -> memref<1x1x3x14x128xf32, #tpu.memory_space<vmem>>
    %844 = tpu.memref_squeeze %843 : memref<1x1x3x14x128xf32, #tpu.memory_space<vmem>> -> memref<3x14x128xf32, #tpu.memory_space<vmem>>
    %c2_1009 = arith.constant 2 : index
    %c0_1010 = arith.constant 0 : index
    %c0_1011 = arith.constant 0 : index
    %845 = vector.load %844[%c2_1009, %c0_1010, %c0_1011] : memref<3x14x128xf32, #tpu.memory_space<vmem>>, vector<1x14x128xf32>
    %846 = vector.shape_cast %845 : vector<1x14x128xf32> to vector<14x128xf32>
    %c0_i32_1012 = arith.constant 0 : i32
    %c0_i32_1013 = arith.constant 0 : i32
    %c0_i32_1014 = arith.constant 0 : i32
    %c0_i32_1015 = arith.constant 0 : i32
    %c0_i32_1016 = arith.constant 0 : i32
    %847 = tpu.memref_slice %arg2[%c0_i32_1012, %c0_i32_1013, %c0_i32_1014, %c0_i32_1015, %c0_i32_1016] : memref<1x1x3x14x128xf32, #tpu.memory_space<vmem>> -> memref<1x1x3x14x128xf32, #tpu.memory_space<vmem>>
    %848 = tpu.memref_squeeze %847 : memref<1x1x3x14x128xf32, #tpu.memory_space<vmem>> -> memref<3x14x128xf32, #tpu.memory_space<vmem>>
    %c2_1017 = arith.constant 2 : index
    %c10_1018 = arith.constant 10 : index
    %c0_1019 = arith.constant 0 : index
    %849 = vector.load %848[%c2_1017, %c10_1018, %c0_1019] : memref<3x14x128xf32, #tpu.memory_space<vmem>>, vector<1x1x128xf32>
    %850 = vector.shape_cast %849 : vector<1x1x128xf32> to vector<1x128xf32>
    %851 = vector.broadcast %850 : vector<1x128xf32> to vector<14x128xf32>
    %852 = arith.subf %846, %851 : vector<14x128xf32>
    %853 = arith.mulf %832, %832 : vector<14x128xf32>
    %854 = arith.mulf %842, %842 : vector<14x128xf32>
    %855 = arith.addf %853, %854 : vector<14x128xf32>
    %856 = arith.mulf %852, %852 : vector<14x128xf32>
    %857 = arith.addf %855, %856 : vector<14x128xf32>
    %cst_1020 = arith.constant 3.000000e-08 : f32
    %858 = vector.broadcast %cst_1020 : f32 to vector<14x128xf32>
    %859 = arith.addf %857, %858 : vector<14x128xf32>
    %860 = math.sqrt %859 : vector<14x128xf32>
    %c0_i32_1021 = arith.constant 0 : i32
    %c0_i32_1022 = arith.constant 0 : i32
    %c0_i32_1023 = arith.constant 0 : i32
    %c0_i32_1024 = arith.constant 0 : i32
    %c0_i32_1025 = arith.constant 0 : i32
    %861 = tpu.memref_slice %arg3[%c0_i32_1021, %c0_i32_1022, %c0_i32_1023, %c0_i32_1024, %c0_i32_1025] : memref<1x1x3x14x128xf32, #tpu.memory_space<vmem>> -> memref<1x1x3x14x128xf32, #tpu.memory_space<vmem>>
    %862 = tpu.memref_squeeze %861 : memref<1x1x3x14x128xf32, #tpu.memory_space<vmem>> -> memref<3x14x128xf32, #tpu.memory_space<vmem>>
    %c0_1026 = arith.constant 0 : index
    %c0_1027 = arith.constant 0 : index
    %c0_1028 = arith.constant 0 : index
    %863 = vector.load %862[%c0_1026, %c0_1027, %c0_1028] : memref<3x14x128xf32, #tpu.memory_space<vmem>>, vector<1x14x128xf32>
    %864 = vector.shape_cast %863 : vector<1x14x128xf32> to vector<14x128xf32>
    %c0_i32_1029 = arith.constant 0 : i32
    %c0_i32_1030 = arith.constant 0 : i32
    %c0_i32_1031 = arith.constant 0 : i32
    %c0_i32_1032 = arith.constant 0 : i32
    %c0_i32_1033 = arith.constant 0 : i32
    %865 = tpu.memref_slice %arg3[%c0_i32_1029, %c0_i32_1030, %c0_i32_1031, %c0_i32_1032, %c0_i32_1033] : memref<1x1x3x14x128xf32, #tpu.memory_space<vmem>> -> memref<1x1x3x14x128xf32, #tpu.memory_space<vmem>>
    %866 = tpu.memref_squeeze %865 : memref<1x1x3x14x128xf32, #tpu.memory_space<vmem>> -> memref<3x14x128xf32, #tpu.memory_space<vmem>>
    %c0_1034 = arith.constant 0 : index
    %c10_1035 = arith.constant 10 : index
    %c0_1036 = arith.constant 0 : index
    %867 = vector.load %866[%c0_1034, %c10_1035, %c0_1036] : memref<3x14x128xf32, #tpu.memory_space<vmem>>, vector<1x1x128xf32>
    %868 = vector.shape_cast %867 : vector<1x1x128xf32> to vector<1x128xf32>
    %869 = vector.broadcast %868 : vector<1x128xf32> to vector<14x128xf32>
    %870 = arith.subf %864, %869 : vector<14x128xf32>
    %c0_i32_1037 = arith.constant 0 : i32
    %c0_i32_1038 = arith.constant 0 : i32
    %c0_i32_1039 = arith.constant 0 : i32
    %c0_i32_1040 = arith.constant 0 : i32
    %c0_i32_1041 = arith.constant 0 : i32
    %871 = tpu.memref_slice %arg3[%c0_i32_1037, %c0_i32_1038, %c0_i32_1039, %c0_i32_1040, %c0_i32_1041] : memref<1x1x3x14x128xf32, #tpu.memory_space<vmem>> -> memref<1x1x3x14x128xf32, #tpu.memory_space<vmem>>
    %872 = tpu.memref_squeeze %871 : memref<1x1x3x14x128xf32, #tpu.memory_space<vmem>> -> memref<3x14x128xf32, #tpu.memory_space<vmem>>
    %c1_1042 = arith.constant 1 : index
    %c0_1043 = arith.constant 0 : index
    %c0_1044 = arith.constant 0 : index
    %873 = vector.load %872[%c1_1042, %c0_1043, %c0_1044] : memref<3x14x128xf32, #tpu.memory_space<vmem>>, vector<1x14x128xf32>
    %874 = vector.shape_cast %873 : vector<1x14x128xf32> to vector<14x128xf32>
    %c0_i32_1045 = arith.constant 0 : i32
    %c0_i32_1046 = arith.constant 0 : i32
    %c0_i32_1047 = arith.constant 0 : i32
    %c0_i32_1048 = arith.constant 0 : i32
    %c0_i32_1049 = arith.constant 0 : i32
    %875 = tpu.memref_slice %arg3[%c0_i32_1045, %c0_i32_1046, %c0_i32_1047, %c0_i32_1048, %c0_i32_1049] : memref<1x1x3x14x128xf32, #tpu.memory_space<vmem>> -> memref<1x1x3x14x128xf32, #tpu.memory_space<vmem>>
    %876 = tpu.memref_squeeze %875 : memref<1x1x3x14x128xf32, #tpu.memory_space<vmem>> -> memref<3x14x128xf32, #tpu.memory_space<vmem>>
    %c1_1050 = arith.constant 1 : index
    %c10_1051 = arith.constant 10 : index
    %c0_1052 = arith.constant 0 : index
    %877 = vector.load %876[%c1_1050, %c10_1051, %c0_1052] : memref<3x14x128xf32, #tpu.memory_space<vmem>>, vector<1x1x128xf32>
    %878 = vector.shape_cast %877 : vector<1x1x128xf32> to vector<1x128xf32>
    %879 = vector.broadcast %878 : vector<1x128xf32> to vector<14x128xf32>
    %880 = arith.subf %874, %879 : vector<14x128xf32>
    %c0_i32_1053 = arith.constant 0 : i32
    %c0_i32_1054 = arith.constant 0 : i32
    %c0_i32_1055 = arith.constant 0 : i32
    %c0_i32_1056 = arith.constant 0 : i32
    %c0_i32_1057 = arith.constant 0 : i32
    %881 = tpu.memref_slice %arg3[%c0_i32_1053, %c0_i32_1054, %c0_i32_1055, %c0_i32_1056, %c0_i32_1057] : memref<1x1x3x14x128xf32, #tpu.memory_space<vmem>> -> memref<1x1x3x14x128xf32, #tpu.memory_space<vmem>>
    %882 = tpu.memref_squeeze %881 : memref<1x1x3x14x128xf32, #tpu.memory_space<vmem>> -> memref<3x14x128xf32, #tpu.memory_space<vmem>>
    %c2_1058 = arith.constant 2 : index
    %c0_1059 = arith.constant 0 : index
    %c0_1060 = arith.constant 0 : index
    %883 = vector.load %882[%c2_1058, %c0_1059, %c0_1060] : memref<3x14x128xf32, #tpu.memory_space<vmem>>, vector<1x14x128xf32>
    %884 = vector.shape_cast %883 : vector<1x14x128xf32> to vector<14x128xf32>
    %c0_i32_1061 = arith.constant 0 : i32
    %c0_i32_1062 = arith.constant 0 : i32
    %c0_i32_1063 = arith.constant 0 : i32
    %c0_i32_1064 = arith.constant 0 : i32
    %c0_i32_1065 = arith.constant 0 : i32
    %885 = tpu.memref_slice %arg3[%c0_i32_1061, %c0_i32_1062, %c0_i32_1063, %c0_i32_1064, %c0_i32_1065] : memref<1x1x3x14x128xf32, #tpu.memory_space<vmem>> -> memref<1x1x3x14x128xf32, #tpu.memory_space<vmem>>
    %886 = tpu.memref_squeeze %885 : memref<1x1x3x14x128xf32, #tpu.memory_space<vmem>> -> memref<3x14x128xf32, #tpu.memory_space<vmem>>
    %c2_1066 = arith.constant 2 : index
    %c10_1067 = arith.constant 10 : index
    %c0_1068 = arith.constant 0 : index
    %887 = vector.load %886[%c2_1066, %c10_1067, %c0_1068] : memref<3x14x128xf32, #tpu.memory_space<vmem>>, vector<1x1x128xf32>
    %888 = vector.shape_cast %887 : vector<1x1x128xf32> to vector<1x128xf32>
    %889 = vector.broadcast %888 : vector<1x128xf32> to vector<14x128xf32>
    %890 = arith.subf %884, %889 : vector<14x128xf32>
    %891 = arith.mulf %870, %870 : vector<14x128xf32>
    %892 = arith.mulf %880, %880 : vector<14x128xf32>
    %893 = arith.addf %891, %892 : vector<14x128xf32>
    %894 = arith.mulf %890, %890 : vector<14x128xf32>
    %895 = arith.addf %893, %894 : vector<14x128xf32>
    %cst_1069 = arith.constant 3.000000e-08 : f32
    %896 = vector.broadcast %cst_1069 : f32 to vector<14x128xf32>
    %897 = arith.addf %895, %896 : vector<14x128xf32>
    %898 = math.sqrt %897 : vector<14x128xf32>
    %899 = arith.subf %860, %898 : vector<14x128xf32>
    %900 = arith.mulf %899, %899 : vector<14x128xf32>
    %901 = vector.extract_strided_slice %1 {offsets = [10, 0], sizes = [1, 128], strides = [1, 1]} : vector<14x128xf32> to vector<1x128xf32>
    %902 = vector.broadcast %901 : vector<1x128xf32> to vector<14x128xf32>
    %903 = arith.mulf %900, %902 : vector<14x128xf32>
    %904 = arith.addf %822, %903 : vector<14x128xf32>
    %c0_i32_1070 = arith.constant 0 : i32
    %c0_i32_1071 = arith.constant 0 : i32
    %c0_i32_1072 = arith.constant 0 : i32
    %c0_i32_1073 = arith.constant 0 : i32
    %c0_i32_1074 = arith.constant 0 : i32
    %905 = tpu.memref_slice %arg2[%c0_i32_1070, %c0_i32_1071, %c0_i32_1072, %c0_i32_1073, %c0_i32_1074] : memref<1x1x3x14x128xf32, #tpu.memory_space<vmem>> -> memref<1x1x3x14x128xf32, #tpu.memory_space<vmem>>
    %906 = tpu.memref_squeeze %905 : memref<1x1x3x14x128xf32, #tpu.memory_space<vmem>> -> memref<3x14x128xf32, #tpu.memory_space<vmem>>
    %c0_1075 = arith.constant 0 : index
    %c0_1076 = arith.constant 0 : index
    %c0_1077 = arith.constant 0 : index
    %907 = vector.load %906[%c0_1075, %c0_1076, %c0_1077] : memref<3x14x128xf32, #tpu.memory_space<vmem>>, vector<1x14x128xf32>
    %908 = vector.shape_cast %907 : vector<1x14x128xf32> to vector<14x128xf32>
    %c0_i32_1078 = arith.constant 0 : i32
    %c0_i32_1079 = arith.constant 0 : i32
    %c0_i32_1080 = arith.constant 0 : i32
    %c0_i32_1081 = arith.constant 0 : i32
    %c0_i32_1082 = arith.constant 0 : i32
    %909 = tpu.memref_slice %arg2[%c0_i32_1078, %c0_i32_1079, %c0_i32_1080, %c0_i32_1081, %c0_i32_1082] : memref<1x1x3x14x128xf32, #tpu.memory_space<vmem>> -> memref<1x1x3x14x128xf32, #tpu.memory_space<vmem>>
    %910 = tpu.memref_squeeze %909 : memref<1x1x3x14x128xf32, #tpu.memory_space<vmem>> -> memref<3x14x128xf32, #tpu.memory_space<vmem>>
    %c0_1083 = arith.constant 0 : index
    %c11 = arith.constant 11 : index
    %c0_1084 = arith.constant 0 : index
    %911 = vector.load %910[%c0_1083, %c11, %c0_1084] : memref<3x14x128xf32, #tpu.memory_space<vmem>>, vector<1x1x128xf32>
    %912 = vector.shape_cast %911 : vector<1x1x128xf32> to vector<1x128xf32>
    %913 = vector.broadcast %912 : vector<1x128xf32> to vector<14x128xf32>
    %914 = arith.subf %908, %913 : vector<14x128xf32>
    %c0_i32_1085 = arith.constant 0 : i32
    %c0_i32_1086 = arith.constant 0 : i32
    %c0_i32_1087 = arith.constant 0 : i32
    %c0_i32_1088 = arith.constant 0 : i32
    %c0_i32_1089 = arith.constant 0 : i32
    %915 = tpu.memref_slice %arg2[%c0_i32_1085, %c0_i32_1086, %c0_i32_1087, %c0_i32_1088, %c0_i32_1089] : memref<1x1x3x14x128xf32, #tpu.memory_space<vmem>> -> memref<1x1x3x14x128xf32, #tpu.memory_space<vmem>>
    %916 = tpu.memref_squeeze %915 : memref<1x1x3x14x128xf32, #tpu.memory_space<vmem>> -> memref<3x14x128xf32, #tpu.memory_space<vmem>>
    %c1_1090 = arith.constant 1 : index
    %c0_1091 = arith.constant 0 : index
    %c0_1092 = arith.constant 0 : index
    %917 = vector.load %916[%c1_1090, %c0_1091, %c0_1092] : memref<3x14x128xf32, #tpu.memory_space<vmem>>, vector<1x14x128xf32>
    %918 = vector.shape_cast %917 : vector<1x14x128xf32> to vector<14x128xf32>
    %c0_i32_1093 = arith.constant 0 : i32
    %c0_i32_1094 = arith.constant 0 : i32
    %c0_i32_1095 = arith.constant 0 : i32
    %c0_i32_1096 = arith.constant 0 : i32
    %c0_i32_1097 = arith.constant 0 : i32
    %919 = tpu.memref_slice %arg2[%c0_i32_1093, %c0_i32_1094, %c0_i32_1095, %c0_i32_1096, %c0_i32_1097] : memref<1x1x3x14x128xf32, #tpu.memory_space<vmem>> -> memref<1x1x3x14x128xf32, #tpu.memory_space<vmem>>
    %920 = tpu.memref_squeeze %919 : memref<1x1x3x14x128xf32, #tpu.memory_space<vmem>> -> memref<3x14x128xf32, #tpu.memory_space<vmem>>
    %c1_1098 = arith.constant 1 : index
    %c11_1099 = arith.constant 11 : index
    %c0_1100 = arith.constant 0 : index
    %921 = vector.load %920[%c1_1098, %c11_1099, %c0_1100] : memref<3x14x128xf32, #tpu.memory_space<vmem>>, vector<1x1x128xf32>
    %922 = vector.shape_cast %921 : vector<1x1x128xf32> to vector<1x128xf32>
    %923 = vector.broadcast %922 : vector<1x128xf32> to vector<14x128xf32>
    %924 = arith.subf %918, %923 : vector<14x128xf32>
    %c0_i32_1101 = arith.constant 0 : i32
    %c0_i32_1102 = arith.constant 0 : i32
    %c0_i32_1103 = arith.constant 0 : i32
    %c0_i32_1104 = arith.constant 0 : i32
    %c0_i32_1105 = arith.constant 0 : i32
    %925 = tpu.memref_slice %arg2[%c0_i32_1101, %c0_i32_1102, %c0_i32_1103, %c0_i32_1104, %c0_i32_1105] : memref<1x1x3x14x128xf32, #tpu.memory_space<vmem>> -> memref<1x1x3x14x128xf32, #tpu.memory_space<vmem>>
    %926 = tpu.memref_squeeze %925 : memref<1x1x3x14x128xf32, #tpu.memory_space<vmem>> -> memref<3x14x128xf32, #tpu.memory_space<vmem>>
    %c2_1106 = arith.constant 2 : index
    %c0_1107 = arith.constant 0 : index
    %c0_1108 = arith.constant 0 : index
    %927 = vector.load %926[%c2_1106, %c0_1107, %c0_1108] : memref<3x14x128xf32, #tpu.memory_space<vmem>>, vector<1x14x128xf32>
    %928 = vector.shape_cast %927 : vector<1x14x128xf32> to vector<14x128xf32>
    %c0_i32_1109 = arith.constant 0 : i32
    %c0_i32_1110 = arith.constant 0 : i32
    %c0_i32_1111 = arith.constant 0 : i32
    %c0_i32_1112 = arith.constant 0 : i32
    %c0_i32_1113 = arith.constant 0 : i32
    %929 = tpu.memref_slice %arg2[%c0_i32_1109, %c0_i32_1110, %c0_i32_1111, %c0_i32_1112, %c0_i32_1113] : memref<1x1x3x14x128xf32, #tpu.memory_space<vmem>> -> memref<1x1x3x14x128xf32, #tpu.memory_space<vmem>>
    %930 = tpu.memref_squeeze %929 : memref<1x1x3x14x128xf32, #tpu.memory_space<vmem>> -> memref<3x14x128xf32, #tpu.memory_space<vmem>>
    %c2_1114 = arith.constant 2 : index
    %c11_1115 = arith.constant 11 : index
    %c0_1116 = arith.constant 0 : index
    %931 = vector.load %930[%c2_1114, %c11_1115, %c0_1116] : memref<3x14x128xf32, #tpu.memory_space<vmem>>, vector<1x1x128xf32>
    %932 = vector.shape_cast %931 : vector<1x1x128xf32> to vector<1x128xf32>
    %933 = vector.broadcast %932 : vector<1x128xf32> to vector<14x128xf32>
    %934 = arith.subf %928, %933 : vector<14x128xf32>
    %935 = arith.mulf %914, %914 : vector<14x128xf32>
    %936 = arith.mulf %924, %924 : vector<14x128xf32>
    %937 = arith.addf %935, %936 : vector<14x128xf32>
    %938 = arith.mulf %934, %934 : vector<14x128xf32>
    %939 = arith.addf %937, %938 : vector<14x128xf32>
    %cst_1117 = arith.constant 3.000000e-08 : f32
    %940 = vector.broadcast %cst_1117 : f32 to vector<14x128xf32>
    %941 = arith.addf %939, %940 : vector<14x128xf32>
    %942 = math.sqrt %941 : vector<14x128xf32>
    %c0_i32_1118 = arith.constant 0 : i32
    %c0_i32_1119 = arith.constant 0 : i32
    %c0_i32_1120 = arith.constant 0 : i32
    %c0_i32_1121 = arith.constant 0 : i32
    %c0_i32_1122 = arith.constant 0 : i32
    %943 = tpu.memref_slice %arg3[%c0_i32_1118, %c0_i32_1119, %c0_i32_1120, %c0_i32_1121, %c0_i32_1122] : memref<1x1x3x14x128xf32, #tpu.memory_space<vmem>> -> memref<1x1x3x14x128xf32, #tpu.memory_space<vmem>>
    %944 = tpu.memref_squeeze %943 : memref<1x1x3x14x128xf32, #tpu.memory_space<vmem>> -> memref<3x14x128xf32, #tpu.memory_space<vmem>>
    %c0_1123 = arith.constant 0 : index
    %c0_1124 = arith.constant 0 : index
    %c0_1125 = arith.constant 0 : index
    %945 = vector.load %944[%c0_1123, %c0_1124, %c0_1125] : memref<3x14x128xf32, #tpu.memory_space<vmem>>, vector<1x14x128xf32>
    %946 = vector.shape_cast %945 : vector<1x14x128xf32> to vector<14x128xf32>
    %c0_i32_1126 = arith.constant 0 : i32
    %c0_i32_1127 = arith.constant 0 : i32
    %c0_i32_1128 = arith.constant 0 : i32
    %c0_i32_1129 = arith.constant 0 : i32
    %c0_i32_1130 = arith.constant 0 : i32
    %947 = tpu.memref_slice %arg3[%c0_i32_1126, %c0_i32_1127, %c0_i32_1128, %c0_i32_1129, %c0_i32_1130] : memref<1x1x3x14x128xf32, #tpu.memory_space<vmem>> -> memref<1x1x3x14x128xf32, #tpu.memory_space<vmem>>
    %948 = tpu.memref_squeeze %947 : memref<1x1x3x14x128xf32, #tpu.memory_space<vmem>> -> memref<3x14x128xf32, #tpu.memory_space<vmem>>
    %c0_1131 = arith.constant 0 : index
    %c11_1132 = arith.constant 11 : index
    %c0_1133 = arith.constant 0 : index
    %949 = vector.load %948[%c0_1131, %c11_1132, %c0_1133] : memref<3x14x128xf32, #tpu.memory_space<vmem>>, vector<1x1x128xf32>
    %950 = vector.shape_cast %949 : vector<1x1x128xf32> to vector<1x128xf32>
    %951 = vector.broadcast %950 : vector<1x128xf32> to vector<14x128xf32>
    %952 = arith.subf %946, %951 : vector<14x128xf32>
    %c0_i32_1134 = arith.constant 0 : i32
    %c0_i32_1135 = arith.constant 0 : i32
    %c0_i32_1136 = arith.constant 0 : i32
    %c0_i32_1137 = arith.constant 0 : i32
    %c0_i32_1138 = arith.constant 0 : i32
    %953 = tpu.memref_slice %arg3[%c0_i32_1134, %c0_i32_1135, %c0_i32_1136, %c0_i32_1137, %c0_i32_1138] : memref<1x1x3x14x128xf32, #tpu.memory_space<vmem>> -> memref<1x1x3x14x128xf32, #tpu.memory_space<vmem>>
    %954 = tpu.memref_squeeze %953 : memref<1x1x3x14x128xf32, #tpu.memory_space<vmem>> -> memref<3x14x128xf32, #tpu.memory_space<vmem>>
    %c1_1139 = arith.constant 1 : index
    %c0_1140 = arith.constant 0 : index
    %c0_1141 = arith.constant 0 : index
    %955 = vector.load %954[%c1_1139, %c0_1140, %c0_1141] : memref<3x14x128xf32, #tpu.memory_space<vmem>>, vector<1x14x128xf32>
    %956 = vector.shape_cast %955 : vector<1x14x128xf32> to vector<14x128xf32>
    %c0_i32_1142 = arith.constant 0 : i32
    %c0_i32_1143 = arith.constant 0 : i32
    %c0_i32_1144 = arith.constant 0 : i32
    %c0_i32_1145 = arith.constant 0 : i32
    %c0_i32_1146 = arith.constant 0 : i32
    %957 = tpu.memref_slice %arg3[%c0_i32_1142, %c0_i32_1143, %c0_i32_1144, %c0_i32_1145, %c0_i32_1146] : memref<1x1x3x14x128xf32, #tpu.memory_space<vmem>> -> memref<1x1x3x14x128xf32, #tpu.memory_space<vmem>>
    %958 = tpu.memref_squeeze %957 : memref<1x1x3x14x128xf32, #tpu.memory_space<vmem>> -> memref<3x14x128xf32, #tpu.memory_space<vmem>>
    %c1_1147 = arith.constant 1 : index
    %c11_1148 = arith.constant 11 : index
    %c0_1149 = arith.constant 0 : index
    %959 = vector.load %958[%c1_1147, %c11_1148, %c0_1149] : memref<3x14x128xf32, #tpu.memory_space<vmem>>, vector<1x1x128xf32>
    %960 = vector.shape_cast %959 : vector<1x1x128xf32> to vector<1x128xf32>
    %961 = vector.broadcast %960 : vector<1x128xf32> to vector<14x128xf32>
    %962 = arith.subf %956, %961 : vector<14x128xf32>
    %c0_i32_1150 = arith.constant 0 : i32
    %c0_i32_1151 = arith.constant 0 : i32
    %c0_i32_1152 = arith.constant 0 : i32
    %c0_i32_1153 = arith.constant 0 : i32
    %c0_i32_1154 = arith.constant 0 : i32
    %963 = tpu.memref_slice %arg3[%c0_i32_1150, %c0_i32_1151, %c0_i32_1152, %c0_i32_1153, %c0_i32_1154] : memref<1x1x3x14x128xf32, #tpu.memory_space<vmem>> -> memref<1x1x3x14x128xf32, #tpu.memory_space<vmem>>
    %964 = tpu.memref_squeeze %963 : memref<1x1x3x14x128xf32, #tpu.memory_space<vmem>> -> memref<3x14x128xf32, #tpu.memory_space<vmem>>
    %c2_1155 = arith.constant 2 : index
    %c0_1156 = arith.constant 0 : index
    %c0_1157 = arith.constant 0 : index
    %965 = vector.load %964[%c2_1155, %c0_1156, %c0_1157] : memref<3x14x128xf32, #tpu.memory_space<vmem>>, vector<1x14x128xf32>
    %966 = vector.shape_cast %965 : vector<1x14x128xf32> to vector<14x128xf32>
    %c0_i32_1158 = arith.constant 0 : i32
    %c0_i32_1159 = arith.constant 0 : i32
    %c0_i32_1160 = arith.constant 0 : i32
    %c0_i32_1161 = arith.constant 0 : i32
    %c0_i32_1162 = arith.constant 0 : i32
    %967 = tpu.memref_slice %arg3[%c0_i32_1158, %c0_i32_1159, %c0_i32_1160, %c0_i32_1161, %c0_i32_1162] : memref<1x1x3x14x128xf32, #tpu.memory_space<vmem>> -> memref<1x1x3x14x128xf32, #tpu.memory_space<vmem>>
    %968 = tpu.memref_squeeze %967 : memref<1x1x3x14x128xf32, #tpu.memory_space<vmem>> -> memref<3x14x128xf32, #tpu.memory_space<vmem>>
    %c2_1163 = arith.constant 2 : index
    %c11_1164 = arith.constant 11 : index
    %c0_1165 = arith.constant 0 : index
    %969 = vector.load %968[%c2_1163, %c11_1164, %c0_1165] : memref<3x14x128xf32, #tpu.memory_space<vmem>>, vector<1x1x128xf32>
    %970 = vector.shape_cast %969 : vector<1x1x128xf32> to vector<1x128xf32>
    %971 = vector.broadcast %970 : vector<1x128xf32> to vector<14x128xf32>
    %972 = arith.subf %966, %971 : vector<14x128xf32>
    %973 = arith.mulf %952, %952 : vector<14x128xf32>
    %974 = arith.mulf %962, %962 : vector<14x128xf32>
    %975 = arith.addf %973, %974 : vector<14x128xf32>
    %976 = arith.mulf %972, %972 : vector<14x128xf32>
    %977 = arith.addf %975, %976 : vector<14x128xf32>
    %cst_1166 = arith.constant 3.000000e-08 : f32
    %978 = vector.broadcast %cst_1166 : f32 to vector<14x128xf32>
    %979 = arith.addf %977, %978 : vector<14x128xf32>
    %980 = math.sqrt %979 : vector<14x128xf32>
    %981 = arith.subf %942, %980 : vector<14x128xf32>
    %982 = arith.mulf %981, %981 : vector<14x128xf32>
    %983 = vector.extract_strided_slice %1 {offsets = [11, 0], sizes = [1, 128], strides = [1, 1]} : vector<14x128xf32> to vector<1x128xf32>
    %984 = vector.broadcast %983 : vector<1x128xf32> to vector<14x128xf32>
    %985 = arith.mulf %982, %984 : vector<14x128xf32>
    %986 = arith.addf %904, %985 : vector<14x128xf32>
    %c0_i32_1167 = arith.constant 0 : i32
    %c0_i32_1168 = arith.constant 0 : i32
    %c0_i32_1169 = arith.constant 0 : i32
    %c0_i32_1170 = arith.constant 0 : i32
    %c0_i32_1171 = arith.constant 0 : i32
    %987 = tpu.memref_slice %arg2[%c0_i32_1167, %c0_i32_1168, %c0_i32_1169, %c0_i32_1170, %c0_i32_1171] : memref<1x1x3x14x128xf32, #tpu.memory_space<vmem>> -> memref<1x1x3x14x128xf32, #tpu.memory_space<vmem>>
    %988 = tpu.memref_squeeze %987 : memref<1x1x3x14x128xf32, #tpu.memory_space<vmem>> -> memref<3x14x128xf32, #tpu.memory_space<vmem>>
    %c0_1172 = arith.constant 0 : index
    %c0_1173 = arith.constant 0 : index
    %c0_1174 = arith.constant 0 : index
    %989 = vector.load %988[%c0_1172, %c0_1173, %c0_1174] : memref<3x14x128xf32, #tpu.memory_space<vmem>>, vector<1x14x128xf32>
    %990 = vector.shape_cast %989 : vector<1x14x128xf32> to vector<14x128xf32>
    %c0_i32_1175 = arith.constant 0 : i32
    %c0_i32_1176 = arith.constant 0 : i32
    %c0_i32_1177 = arith.constant 0 : i32
    %c0_i32_1178 = arith.constant 0 : i32
    %c0_i32_1179 = arith.constant 0 : i32
    %991 = tpu.memref_slice %arg2[%c0_i32_1175, %c0_i32_1176, %c0_i32_1177, %c0_i32_1178, %c0_i32_1179] : memref<1x1x3x14x128xf32, #tpu.memory_space<vmem>> -> memref<1x1x3x14x128xf32, #tpu.memory_space<vmem>>
    %992 = tpu.memref_squeeze %991 : memref<1x1x3x14x128xf32, #tpu.memory_space<vmem>> -> memref<3x14x128xf32, #tpu.memory_space<vmem>>
    %c0_1180 = arith.constant 0 : index
    %c12 = arith.constant 12 : index
    %c0_1181 = arith.constant 0 : index
    %993 = vector.load %992[%c0_1180, %c12, %c0_1181] : memref<3x14x128xf32, #tpu.memory_space<vmem>>, vector<1x1x128xf32>
    %994 = vector.shape_cast %993 : vector<1x1x128xf32> to vector<1x128xf32>
    %995 = vector.broadcast %994 : vector<1x128xf32> to vector<14x128xf32>
    %996 = arith.subf %990, %995 : vector<14x128xf32>
    %c0_i32_1182 = arith.constant 0 : i32
    %c0_i32_1183 = arith.constant 0 : i32
    %c0_i32_1184 = arith.constant 0 : i32
    %c0_i32_1185 = arith.constant 0 : i32
    %c0_i32_1186 = arith.constant 0 : i32
    %997 = tpu.memref_slice %arg2[%c0_i32_1182, %c0_i32_1183, %c0_i32_1184, %c0_i32_1185, %c0_i32_1186] : memref<1x1x3x14x128xf32, #tpu.memory_space<vmem>> -> memref<1x1x3x14x128xf32, #tpu.memory_space<vmem>>
    %998 = tpu.memref_squeeze %997 : memref<1x1x3x14x128xf32, #tpu.memory_space<vmem>> -> memref<3x14x128xf32, #tpu.memory_space<vmem>>
    %c1_1187 = arith.constant 1 : index
    %c0_1188 = arith.constant 0 : index
    %c0_1189 = arith.constant 0 : index
    %999 = vector.load %998[%c1_1187, %c0_1188, %c0_1189] : memref<3x14x128xf32, #tpu.memory_space<vmem>>, vector<1x14x128xf32>
    %1000 = vector.shape_cast %999 : vector<1x14x128xf32> to vector<14x128xf32>
    %c0_i32_1190 = arith.constant 0 : i32
    %c0_i32_1191 = arith.constant 0 : i32
    %c0_i32_1192 = arith.constant 0 : i32
    %c0_i32_1193 = arith.constant 0 : i32
    %c0_i32_1194 = arith.constant 0 : i32
    %1001 = tpu.memref_slice %arg2[%c0_i32_1190, %c0_i32_1191, %c0_i32_1192, %c0_i32_1193, %c0_i32_1194] : memref<1x1x3x14x128xf32, #tpu.memory_space<vmem>> -> memref<1x1x3x14x128xf32, #tpu.memory_space<vmem>>
    %1002 = tpu.memref_squeeze %1001 : memref<1x1x3x14x128xf32, #tpu.memory_space<vmem>> -> memref<3x14x128xf32, #tpu.memory_space<vmem>>
    %c1_1195 = arith.constant 1 : index
    %c12_1196 = arith.constant 12 : index
    %c0_1197 = arith.constant 0 : index
    %1003 = vector.load %1002[%c1_1195, %c12_1196, %c0_1197] : memref<3x14x128xf32, #tpu.memory_space<vmem>>, vector<1x1x128xf32>
    %1004 = vector.shape_cast %1003 : vector<1x1x128xf32> to vector<1x128xf32>
    %1005 = vector.broadcast %1004 : vector<1x128xf32> to vector<14x128xf32>
    %1006 = arith.subf %1000, %1005 : vector<14x128xf32>
    %c0_i32_1198 = arith.constant 0 : i32
    %c0_i32_1199 = arith.constant 0 : i32
    %c0_i32_1200 = arith.constant 0 : i32
    %c0_i32_1201 = arith.constant 0 : i32
    %c0_i32_1202 = arith.constant 0 : i32
    %1007 = tpu.memref_slice %arg2[%c0_i32_1198, %c0_i32_1199, %c0_i32_1200, %c0_i32_1201, %c0_i32_1202] : memref<1x1x3x14x128xf32, #tpu.memory_space<vmem>> -> memref<1x1x3x14x128xf32, #tpu.memory_space<vmem>>
    %1008 = tpu.memref_squeeze %1007 : memref<1x1x3x14x128xf32, #tpu.memory_space<vmem>> -> memref<3x14x128xf32, #tpu.memory_space<vmem>>
    %c2_1203 = arith.constant 2 : index
    %c0_1204 = arith.constant 0 : index
    %c0_1205 = arith.constant 0 : index
    %1009 = vector.load %1008[%c2_1203, %c0_1204, %c0_1205] : memref<3x14x128xf32, #tpu.memory_space<vmem>>, vector<1x14x128xf32>
    %1010 = vector.shape_cast %1009 : vector<1x14x128xf32> to vector<14x128xf32>
    %c0_i32_1206 = arith.constant 0 : i32
    %c0_i32_1207 = arith.constant 0 : i32
    %c0_i32_1208 = arith.constant 0 : i32
    %c0_i32_1209 = arith.constant 0 : i32
    %c0_i32_1210 = arith.constant 0 : i32
    %1011 = tpu.memref_slice %arg2[%c0_i32_1206, %c0_i32_1207, %c0_i32_1208, %c0_i32_1209, %c0_i32_1210] : memref<1x1x3x14x128xf32, #tpu.memory_space<vmem>> -> memref<1x1x3x14x128xf32, #tpu.memory_space<vmem>>
    %1012 = tpu.memref_squeeze %1011 : memref<1x1x3x14x128xf32, #tpu.memory_space<vmem>> -> memref<3x14x128xf32, #tpu.memory_space<vmem>>
    %c2_1211 = arith.constant 2 : index
    %c12_1212 = arith.constant 12 : index
    %c0_1213 = arith.constant 0 : index
    %1013 = vector.load %1012[%c2_1211, %c12_1212, %c0_1213] : memref<3x14x128xf32, #tpu.memory_space<vmem>>, vector<1x1x128xf32>
    %1014 = vector.shape_cast %1013 : vector<1x1x128xf32> to vector<1x128xf32>
    %1015 = vector.broadcast %1014 : vector<1x128xf32> to vector<14x128xf32>
    %1016 = arith.subf %1010, %1015 : vector<14x128xf32>
    %1017 = arith.mulf %996, %996 : vector<14x128xf32>
    %1018 = arith.mulf %1006, %1006 : vector<14x128xf32>
    %1019 = arith.addf %1017, %1018 : vector<14x128xf32>
    %1020 = arith.mulf %1016, %1016 : vector<14x128xf32>
    %1021 = arith.addf %1019, %1020 : vector<14x128xf32>
    %cst_1214 = arith.constant 3.000000e-08 : f32
    %1022 = vector.broadcast %cst_1214 : f32 to vector<14x128xf32>
    %1023 = arith.addf %1021, %1022 : vector<14x128xf32>
    %1024 = math.sqrt %1023 : vector<14x128xf32>
    %c0_i32_1215 = arith.constant 0 : i32
    %c0_i32_1216 = arith.constant 0 : i32
    %c0_i32_1217 = arith.constant 0 : i32
    %c0_i32_1218 = arith.constant 0 : i32
    %c0_i32_1219 = arith.constant 0 : i32
    %1025 = tpu.memref_slice %arg3[%c0_i32_1215, %c0_i32_1216, %c0_i32_1217, %c0_i32_1218, %c0_i32_1219] : memref<1x1x3x14x128xf32, #tpu.memory_space<vmem>> -> memref<1x1x3x14x128xf32, #tpu.memory_space<vmem>>
    %1026 = tpu.memref_squeeze %1025 : memref<1x1x3x14x128xf32, #tpu.memory_space<vmem>> -> memref<3x14x128xf32, #tpu.memory_space<vmem>>
    %c0_1220 = arith.constant 0 : index
    %c0_1221 = arith.constant 0 : index
    %c0_1222 = arith.constant 0 : index
    %1027 = vector.load %1026[%c0_1220, %c0_1221, %c0_1222] : memref<3x14x128xf32, #tpu.memory_space<vmem>>, vector<1x14x128xf32>
    %1028 = vector.shape_cast %1027 : vector<1x14x128xf32> to vector<14x128xf32>
    %c0_i32_1223 = arith.constant 0 : i32
    %c0_i32_1224 = arith.constant 0 : i32
    %c0_i32_1225 = arith.constant 0 : i32
    %c0_i32_1226 = arith.constant 0 : i32
    %c0_i32_1227 = arith.constant 0 : i32
    %1029 = tpu.memref_slice %arg3[%c0_i32_1223, %c0_i32_1224, %c0_i32_1225, %c0_i32_1226, %c0_i32_1227] : memref<1x1x3x14x128xf32, #tpu.memory_space<vmem>> -> memref<1x1x3x14x128xf32, #tpu.memory_space<vmem>>
    %1030 = tpu.memref_squeeze %1029 : memref<1x1x3x14x128xf32, #tpu.memory_space<vmem>> -> memref<3x14x128xf32, #tpu.memory_space<vmem>>
    %c0_1228 = arith.constant 0 : index
    %c12_1229 = arith.constant 12 : index
    %c0_1230 = arith.constant 0 : index
    %1031 = vector.load %1030[%c0_1228, %c12_1229, %c0_1230] : memref<3x14x128xf32, #tpu.memory_space<vmem>>, vector<1x1x128xf32>
    %1032 = vector.shape_cast %1031 : vector<1x1x128xf32> to vector<1x128xf32>
    %1033 = vector.broadcast %1032 : vector<1x128xf32> to vector<14x128xf32>
    %1034 = arith.subf %1028, %1033 : vector<14x128xf32>
    %c0_i32_1231 = arith.constant 0 : i32
    %c0_i32_1232 = arith.constant 0 : i32
    %c0_i32_1233 = arith.constant 0 : i32
    %c0_i32_1234 = arith.constant 0 : i32
    %c0_i32_1235 = arith.constant 0 : i32
    %1035 = tpu.memref_slice %arg3[%c0_i32_1231, %c0_i32_1232, %c0_i32_1233, %c0_i32_1234, %c0_i32_1235] : memref<1x1x3x14x128xf32, #tpu.memory_space<vmem>> -> memref<1x1x3x14x128xf32, #tpu.memory_space<vmem>>
    %1036 = tpu.memref_squeeze %1035 : memref<1x1x3x14x128xf32, #tpu.memory_space<vmem>> -> memref<3x14x128xf32, #tpu.memory_space<vmem>>
    %c1_1236 = arith.constant 1 : index
    %c0_1237 = arith.constant 0 : index
    %c0_1238 = arith.constant 0 : index
    %1037 = vector.load %1036[%c1_1236, %c0_1237, %c0_1238] : memref<3x14x128xf32, #tpu.memory_space<vmem>>, vector<1x14x128xf32>
    %1038 = vector.shape_cast %1037 : vector<1x14x128xf32> to vector<14x128xf32>
    %c0_i32_1239 = arith.constant 0 : i32
    %c0_i32_1240 = arith.constant 0 : i32
    %c0_i32_1241 = arith.constant 0 : i32
    %c0_i32_1242 = arith.constant 0 : i32
    %c0_i32_1243 = arith.constant 0 : i32
    %1039 = tpu.memref_slice %arg3[%c0_i32_1239, %c0_i32_1240, %c0_i32_1241, %c0_i32_1242, %c0_i32_1243] : memref<1x1x3x14x128xf32, #tpu.memory_space<vmem>> -> memref<1x1x3x14x128xf32, #tpu.memory_space<vmem>>
    %1040 = tpu.memref_squeeze %1039 : memref<1x1x3x14x128xf32, #tpu.memory_space<vmem>> -> memref<3x14x128xf32, #tpu.memory_space<vmem>>
    %c1_1244 = arith.constant 1 : index
    %c12_1245 = arith.constant 12 : index
    %c0_1246 = arith.constant 0 : index
    %1041 = vector.load %1040[%c1_1244, %c12_1245, %c0_1246] : memref<3x14x128xf32, #tpu.memory_space<vmem>>, vector<1x1x128xf32>
    %1042 = vector.shape_cast %1041 : vector<1x1x128xf32> to vector<1x128xf32>
    %1043 = vector.broadcast %1042 : vector<1x128xf32> to vector<14x128xf32>
    %1044 = arith.subf %1038, %1043 : vector<14x128xf32>
    %c0_i32_1247 = arith.constant 0 : i32
    %c0_i32_1248 = arith.constant 0 : i32
    %c0_i32_1249 = arith.constant 0 : i32
    %c0_i32_1250 = arith.constant 0 : i32
    %c0_i32_1251 = arith.constant 0 : i32
    %1045 = tpu.memref_slice %arg3[%c0_i32_1247, %c0_i32_1248, %c0_i32_1249, %c0_i32_1250, %c0_i32_1251] : memref<1x1x3x14x128xf32, #tpu.memory_space<vmem>> -> memref<1x1x3x14x128xf32, #tpu.memory_space<vmem>>
    %1046 = tpu.memref_squeeze %1045 : memref<1x1x3x14x128xf32, #tpu.memory_space<vmem>> -> memref<3x14x128xf32, #tpu.memory_space<vmem>>
    %c2_1252 = arith.constant 2 : index
    %c0_1253 = arith.constant 0 : index
    %c0_1254 = arith.constant 0 : index
    %1047 = vector.load %1046[%c2_1252, %c0_1253, %c0_1254] : memref<3x14x128xf32, #tpu.memory_space<vmem>>, vector<1x14x128xf32>
    %1048 = vector.shape_cast %1047 : vector<1x14x128xf32> to vector<14x128xf32>
    %c0_i32_1255 = arith.constant 0 : i32
    %c0_i32_1256 = arith.constant 0 : i32
    %c0_i32_1257 = arith.constant 0 : i32
    %c0_i32_1258 = arith.constant 0 : i32
    %c0_i32_1259 = arith.constant 0 : i32
    %1049 = tpu.memref_slice %arg3[%c0_i32_1255, %c0_i32_1256, %c0_i32_1257, %c0_i32_1258, %c0_i32_1259] : memref<1x1x3x14x128xf32, #tpu.memory_space<vmem>> -> memref<1x1x3x14x128xf32, #tpu.memory_space<vmem>>
    %1050 = tpu.memref_squeeze %1049 : memref<1x1x3x14x128xf32, #tpu.memory_space<vmem>> -> memref<3x14x128xf32, #tpu.memory_space<vmem>>
    %c2_1260 = arith.constant 2 : index
    %c12_1261 = arith.constant 12 : index
    %c0_1262 = arith.constant 0 : index
    %1051 = vector.load %1050[%c2_1260, %c12_1261, %c0_1262] : memref<3x14x128xf32, #tpu.memory_space<vmem>>, vector<1x1x128xf32>
    %1052 = vector.shape_cast %1051 : vector<1x1x128xf32> to vector<1x128xf32>
    %1053 = vector.broadcast %1052 : vector<1x128xf32> to vector<14x128xf32>
    %1054 = arith.subf %1048, %1053 : vector<14x128xf32>
    %1055 = arith.mulf %1034, %1034 : vector<14x128xf32>
    %1056 = arith.mulf %1044, %1044 : vector<14x128xf32>
    %1057 = arith.addf %1055, %1056 : vector<14x128xf32>
    %1058 = arith.mulf %1054, %1054 : vector<14x128xf32>
    %1059 = arith.addf %1057, %1058 : vector<14x128xf32>
    %cst_1263 = arith.constant 3.000000e-08 : f32
    %1060 = vector.broadcast %cst_1263 : f32 to vector<14x128xf32>
    %1061 = arith.addf %1059, %1060 : vector<14x128xf32>
    %1062 = math.sqrt %1061 : vector<14x128xf32>
    %1063 = arith.subf %1024, %1062 : vector<14x128xf32>
    %1064 = arith.mulf %1063, %1063 : vector<14x128xf32>
    %1065 = vector.extract_strided_slice %1 {offsets = [12, 0], sizes = [1, 128], strides = [1, 1]} : vector<14x128xf32> to vector<1x128xf32>
    %1066 = vector.broadcast %1065 : vector<1x128xf32> to vector<14x128xf32>
    %1067 = arith.mulf %1064, %1066 : vector<14x128xf32>
    %1068 = arith.addf %986, %1067 : vector<14x128xf32>
    %c0_i32_1264 = arith.constant 0 : i32
    %c0_i32_1265 = arith.constant 0 : i32
    %c0_i32_1266 = arith.constant 0 : i32
    %c0_i32_1267 = arith.constant 0 : i32
    %c0_i32_1268 = arith.constant 0 : i32
    %1069 = tpu.memref_slice %arg2[%c0_i32_1264, %c0_i32_1265, %c0_i32_1266, %c0_i32_1267, %c0_i32_1268] : memref<1x1x3x14x128xf32, #tpu.memory_space<vmem>> -> memref<1x1x3x14x128xf32, #tpu.memory_space<vmem>>
    %1070 = tpu.memref_squeeze %1069 : memref<1x1x3x14x128xf32, #tpu.memory_space<vmem>> -> memref<3x14x128xf32, #tpu.memory_space<vmem>>
    %c0_1269 = arith.constant 0 : index
    %c0_1270 = arith.constant 0 : index
    %c0_1271 = arith.constant 0 : index
    %1071 = vector.load %1070[%c0_1269, %c0_1270, %c0_1271] : memref<3x14x128xf32, #tpu.memory_space<vmem>>, vector<1x14x128xf32>
    %1072 = vector.shape_cast %1071 : vector<1x14x128xf32> to vector<14x128xf32>
    %c0_i32_1272 = arith.constant 0 : i32
    %c0_i32_1273 = arith.constant 0 : i32
    %c0_i32_1274 = arith.constant 0 : i32
    %c0_i32_1275 = arith.constant 0 : i32
    %c0_i32_1276 = arith.constant 0 : i32
    %1073 = tpu.memref_slice %arg2[%c0_i32_1272, %c0_i32_1273, %c0_i32_1274, %c0_i32_1275, %c0_i32_1276] : memref<1x1x3x14x128xf32, #tpu.memory_space<vmem>> -> memref<1x1x3x14x128xf32, #tpu.memory_space<vmem>>
    %1074 = tpu.memref_squeeze %1073 : memref<1x1x3x14x128xf32, #tpu.memory_space<vmem>> -> memref<3x14x128xf32, #tpu.memory_space<vmem>>
    %c0_1277 = arith.constant 0 : index
    %c13 = arith.constant 13 : index
    %c0_1278 = arith.constant 0 : index
    %1075 = vector.load %1074[%c0_1277, %c13, %c0_1278] : memref<3x14x128xf32, #tpu.memory_space<vmem>>, vector<1x1x128xf32>
    %1076 = vector.shape_cast %1075 : vector<1x1x128xf32> to vector<1x128xf32>
    %1077 = vector.broadcast %1076 : vector<1x128xf32> to vector<14x128xf32>
    %1078 = arith.subf %1072, %1077 : vector<14x128xf32>
    %c0_i32_1279 = arith.constant 0 : i32
    %c0_i32_1280 = arith.constant 0 : i32
    %c0_i32_1281 = arith.constant 0 : i32
    %c0_i32_1282 = arith.constant 0 : i32
    %c0_i32_1283 = arith.constant 0 : i32
    %1079 = tpu.memref_slice %arg2[%c0_i32_1279, %c0_i32_1280, %c0_i32_1281, %c0_i32_1282, %c0_i32_1283] : memref<1x1x3x14x128xf32, #tpu.memory_space<vmem>> -> memref<1x1x3x14x128xf32, #tpu.memory_space<vmem>>
    %1080 = tpu.memref_squeeze %1079 : memref<1x1x3x14x128xf32, #tpu.memory_space<vmem>> -> memref<3x14x128xf32, #tpu.memory_space<vmem>>
    %c1_1284 = arith.constant 1 : index
    %c0_1285 = arith.constant 0 : index
    %c0_1286 = arith.constant 0 : index
    %1081 = vector.load %1080[%c1_1284, %c0_1285, %c0_1286] : memref<3x14x128xf32, #tpu.memory_space<vmem>>, vector<1x14x128xf32>
    %1082 = vector.shape_cast %1081 : vector<1x14x128xf32> to vector<14x128xf32>
    %c0_i32_1287 = arith.constant 0 : i32
    %c0_i32_1288 = arith.constant 0 : i32
    %c0_i32_1289 = arith.constant 0 : i32
    %c0_i32_1290 = arith.constant 0 : i32
    %c0_i32_1291 = arith.constant 0 : i32
    %1083 = tpu.memref_slice %arg2[%c0_i32_1287, %c0_i32_1288, %c0_i32_1289, %c0_i32_1290, %c0_i32_1291] : memref<1x1x3x14x128xf32, #tpu.memory_space<vmem>> -> memref<1x1x3x14x128xf32, #tpu.memory_space<vmem>>
    %1084 = tpu.memref_squeeze %1083 : memref<1x1x3x14x128xf32, #tpu.memory_space<vmem>> -> memref<3x14x128xf32, #tpu.memory_space<vmem>>
    %c1_1292 = arith.constant 1 : index
    %c13_1293 = arith.constant 13 : index
    %c0_1294 = arith.constant 0 : index
    %1085 = vector.load %1084[%c1_1292, %c13_1293, %c0_1294] : memref<3x14x128xf32, #tpu.memory_space<vmem>>, vector<1x1x128xf32>
    %1086 = vector.shape_cast %1085 : vector<1x1x128xf32> to vector<1x128xf32>
    %1087 = vector.broadcast %1086 : vector<1x128xf32> to vector<14x128xf32>
    %1088 = arith.subf %1082, %1087 : vector<14x128xf32>
    %c0_i32_1295 = arith.constant 0 : i32
    %c0_i32_1296 = arith.constant 0 : i32
    %c0_i32_1297 = arith.constant 0 : i32
    %c0_i32_1298 = arith.constant 0 : i32
    %c0_i32_1299 = arith.constant 0 : i32
    %1089 = tpu.memref_slice %arg2[%c0_i32_1295, %c0_i32_1296, %c0_i32_1297, %c0_i32_1298, %c0_i32_1299] : memref<1x1x3x14x128xf32, #tpu.memory_space<vmem>> -> memref<1x1x3x14x128xf32, #tpu.memory_space<vmem>>
    %1090 = tpu.memref_squeeze %1089 : memref<1x1x3x14x128xf32, #tpu.memory_space<vmem>> -> memref<3x14x128xf32, #tpu.memory_space<vmem>>
    %c2_1300 = arith.constant 2 : index
    %c0_1301 = arith.constant 0 : index
    %c0_1302 = arith.constant 0 : index
    %1091 = vector.load %1090[%c2_1300, %c0_1301, %c0_1302] : memref<3x14x128xf32, #tpu.memory_space<vmem>>, vector<1x14x128xf32>
    %1092 = vector.shape_cast %1091 : vector<1x14x128xf32> to vector<14x128xf32>
    %c0_i32_1303 = arith.constant 0 : i32
    %c0_i32_1304 = arith.constant 0 : i32
    %c0_i32_1305 = arith.constant 0 : i32
    %c0_i32_1306 = arith.constant 0 : i32
    %c0_i32_1307 = arith.constant 0 : i32
    %1093 = tpu.memref_slice %arg2[%c0_i32_1303, %c0_i32_1304, %c0_i32_1305, %c0_i32_1306, %c0_i32_1307] : memref<1x1x3x14x128xf32, #tpu.memory_space<vmem>> -> memref<1x1x3x14x128xf32, #tpu.memory_space<vmem>>
    %1094 = tpu.memref_squeeze %1093 : memref<1x1x3x14x128xf32, #tpu.memory_space<vmem>> -> memref<3x14x128xf32, #tpu.memory_space<vmem>>
    %c2_1308 = arith.constant 2 : index
    %c13_1309 = arith.constant 13 : index
    %c0_1310 = arith.constant 0 : index
    %1095 = vector.load %1094[%c2_1308, %c13_1309, %c0_1310] : memref<3x14x128xf32, #tpu.memory_space<vmem>>, vector<1x1x128xf32>
    %1096 = vector.shape_cast %1095 : vector<1x1x128xf32> to vector<1x128xf32>
    %1097 = vector.broadcast %1096 : vector<1x128xf32> to vector<14x128xf32>
    %1098 = arith.subf %1092, %1097 : vector<14x128xf32>
    %1099 = arith.mulf %1078, %1078 : vector<14x128xf32>
    %1100 = arith.mulf %1088, %1088 : vector<14x128xf32>
    %1101 = arith.addf %1099, %1100 : vector<14x128xf32>
    %1102 = arith.mulf %1098, %1098 : vector<14x128xf32>
    %1103 = arith.addf %1101, %1102 : vector<14x128xf32>
    %cst_1311 = arith.constant 3.000000e-08 : f32
    %1104 = vector.broadcast %cst_1311 : f32 to vector<14x128xf32>
    %1105 = arith.addf %1103, %1104 : vector<14x128xf32>
    %1106 = math.sqrt %1105 : vector<14x128xf32>
    %c0_i32_1312 = arith.constant 0 : i32
    %c0_i32_1313 = arith.constant 0 : i32
    %c0_i32_1314 = arith.constant 0 : i32
    %c0_i32_1315 = arith.constant 0 : i32
    %c0_i32_1316 = arith.constant 0 : i32
    %1107 = tpu.memref_slice %arg3[%c0_i32_1312, %c0_i32_1313, %c0_i32_1314, %c0_i32_1315, %c0_i32_1316] : memref<1x1x3x14x128xf32, #tpu.memory_space<vmem>> -> memref<1x1x3x14x128xf32, #tpu.memory_space<vmem>>
    %1108 = tpu.memref_squeeze %1107 : memref<1x1x3x14x128xf32, #tpu.memory_space<vmem>> -> memref<3x14x128xf32, #tpu.memory_space<vmem>>
    %c0_1317 = arith.constant 0 : index
    %c0_1318 = arith.constant 0 : index
    %c0_1319 = arith.constant 0 : index
    %1109 = vector.load %1108[%c0_1317, %c0_1318, %c0_1319] : memref<3x14x128xf32, #tpu.memory_space<vmem>>, vector<1x14x128xf32>
    %1110 = vector.shape_cast %1109 : vector<1x14x128xf32> to vector<14x128xf32>
    %c0_i32_1320 = arith.constant 0 : i32
    %c0_i32_1321 = arith.constant 0 : i32
    %c0_i32_1322 = arith.constant 0 : i32
    %c0_i32_1323 = arith.constant 0 : i32
    %c0_i32_1324 = arith.constant 0 : i32
    %1111 = tpu.memref_slice %arg3[%c0_i32_1320, %c0_i32_1321, %c0_i32_1322, %c0_i32_1323, %c0_i32_1324] : memref<1x1x3x14x128xf32, #tpu.memory_space<vmem>> -> memref<1x1x3x14x128xf32, #tpu.memory_space<vmem>>
    %1112 = tpu.memref_squeeze %1111 : memref<1x1x3x14x128xf32, #tpu.memory_space<vmem>> -> memref<3x14x128xf32, #tpu.memory_space<vmem>>
    %c0_1325 = arith.constant 0 : index
    %c13_1326 = arith.constant 13 : index
    %c0_1327 = arith.constant 0 : index
    %1113 = vector.load %1112[%c0_1325, %c13_1326, %c0_1327] : memref<3x14x128xf32, #tpu.memory_space<vmem>>, vector<1x1x128xf32>
    %1114 = vector.shape_cast %1113 : vector<1x1x128xf32> to vector<1x128xf32>
    %1115 = vector.broadcast %1114 : vector<1x128xf32> to vector<14x128xf32>
    %1116 = arith.subf %1110, %1115 : vector<14x128xf32>
    %c0_i32_1328 = arith.constant 0 : i32
    %c0_i32_1329 = arith.constant 0 : i32
    %c0_i32_1330 = arith.constant 0 : i32
    %c0_i32_1331 = arith.constant 0 : i32
    %c0_i32_1332 = arith.constant 0 : i32
    %1117 = tpu.memref_slice %arg3[%c0_i32_1328, %c0_i32_1329, %c0_i32_1330, %c0_i32_1331, %c0_i32_1332] : memref<1x1x3x14x128xf32, #tpu.memory_space<vmem>> -> memref<1x1x3x14x128xf32, #tpu.memory_space<vmem>>
    %1118 = tpu.memref_squeeze %1117 : memref<1x1x3x14x128xf32, #tpu.memory_space<vmem>> -> memref<3x14x128xf32, #tpu.memory_space<vmem>>
    %c1_1333 = arith.constant 1 : index
    %c0_1334 = arith.constant 0 : index
    %c0_1335 = arith.constant 0 : index
    %1119 = vector.load %1118[%c1_1333, %c0_1334, %c0_1335] : memref<3x14x128xf32, #tpu.memory_space<vmem>>, vector<1x14x128xf32>
    %1120 = vector.shape_cast %1119 : vector<1x14x128xf32> to vector<14x128xf32>
    %c0_i32_1336 = arith.constant 0 : i32
    %c0_i32_1337 = arith.constant 0 : i32
    %c0_i32_1338 = arith.constant 0 : i32
    %c0_i32_1339 = arith.constant 0 : i32
    %c0_i32_1340 = arith.constant 0 : i32
    %1121 = tpu.memref_slice %arg3[%c0_i32_1336, %c0_i32_1337, %c0_i32_1338, %c0_i32_1339, %c0_i32_1340] : memref<1x1x3x14x128xf32, #tpu.memory_space<vmem>> -> memref<1x1x3x14x128xf32, #tpu.memory_space<vmem>>
    %1122 = tpu.memref_squeeze %1121 : memref<1x1x3x14x128xf32, #tpu.memory_space<vmem>> -> memref<3x14x128xf32, #tpu.memory_space<vmem>>
    %c1_1341 = arith.constant 1 : index
    %c13_1342 = arith.constant 13 : index
    %c0_1343 = arith.constant 0 : index
    %1123 = vector.load %1122[%c1_1341, %c13_1342, %c0_1343] : memref<3x14x128xf32, #tpu.memory_space<vmem>>, vector<1x1x128xf32>
    %1124 = vector.shape_cast %1123 : vector<1x1x128xf32> to vector<1x128xf32>
    %1125 = vector.broadcast %1124 : vector<1x128xf32> to vector<14x128xf32>
    %1126 = arith.subf %1120, %1125 : vector<14x128xf32>
    %c0_i32_1344 = arith.constant 0 : i32
    %c0_i32_1345 = arith.constant 0 : i32
    %c0_i32_1346 = arith.constant 0 : i32
    %c0_i32_1347 = arith.constant 0 : i32
    %c0_i32_1348 = arith.constant 0 : i32
    %1127 = tpu.memref_slice %arg3[%c0_i32_1344, %c0_i32_1345, %c0_i32_1346, %c0_i32_1347, %c0_i32_1348] : memref<1x1x3x14x128xf32, #tpu.memory_space<vmem>> -> memref<1x1x3x14x128xf32, #tpu.memory_space<vmem>>
    %1128 = tpu.memref_squeeze %1127 : memref<1x1x3x14x128xf32, #tpu.memory_space<vmem>> -> memref<3x14x128xf32, #tpu.memory_space<vmem>>
    %c2_1349 = arith.constant 2 : index
    %c0_1350 = arith.constant 0 : index
    %c0_1351 = arith.constant 0 : index
    %1129 = vector.load %1128[%c2_1349, %c0_1350, %c0_1351] : memref<3x14x128xf32, #tpu.memory_space<vmem>>, vector<1x14x128xf32>
    %1130 = vector.shape_cast %1129 : vector<1x14x128xf32> to vector<14x128xf32>
    %c0_i32_1352 = arith.constant 0 : i32
    %c0_i32_1353 = arith.constant 0 : i32
    %c0_i32_1354 = arith.constant 0 : i32
    %c0_i32_1355 = arith.constant 0 : i32
    %c0_i32_1356 = arith.constant 0 : i32
    %1131 = tpu.memref_slice %arg3[%c0_i32_1352, %c0_i32_1353, %c0_i32_1354, %c0_i32_1355, %c0_i32_1356] : memref<1x1x3x14x128xf32, #tpu.memory_space<vmem>> -> memref<1x1x3x14x128xf32, #tpu.memory_space<vmem>>
    %1132 = tpu.memref_squeeze %1131 : memref<1x1x3x14x128xf32, #tpu.memory_space<vmem>> -> memref<3x14x128xf32, #tpu.memory_space<vmem>>
    %c2_1357 = arith.constant 2 : index
    %c13_1358 = arith.constant 13 : index
    %c0_1359 = arith.constant 0 : index
    %1133 = vector.load %1132[%c2_1357, %c13_1358, %c0_1359] : memref<3x14x128xf32, #tpu.memory_space<vmem>>, vector<1x1x128xf32>
    %1134 = vector.shape_cast %1133 : vector<1x1x128xf32> to vector<1x128xf32>
    %1135 = vector.broadcast %1134 : vector<1x128xf32> to vector<14x128xf32>
    %1136 = arith.subf %1130, %1135 : vector<14x128xf32>
    %1137 = arith.mulf %1116, %1116 : vector<14x128xf32>
    %1138 = arith.mulf %1126, %1126 : vector<14x128xf32>
    %1139 = arith.addf %1137, %1138 : vector<14x128xf32>
    %1140 = arith.mulf %1136, %1136 : vector<14x128xf32>
    %1141 = arith.addf %1139, %1140 : vector<14x128xf32>
    %cst_1360 = arith.constant 3.000000e-08 : f32
    %1142 = vector.broadcast %cst_1360 : f32 to vector<14x128xf32>
    %1143 = arith.addf %1141, %1142 : vector<14x128xf32>
    %1144 = math.sqrt %1143 : vector<14x128xf32>
    %1145 = arith.subf %1106, %1144 : vector<14x128xf32>
    %1146 = arith.mulf %1145, %1145 : vector<14x128xf32>
    %1147 = vector.extract_strided_slice %1 {offsets = [13, 0], sizes = [1, 128], strides = [1, 1]} : vector<14x128xf32> to vector<1x128xf32>
    %1148 = vector.broadcast %1147 : vector<1x128xf32> to vector<14x128xf32>
    %1149 = arith.mulf %1146, %1148 : vector<14x128xf32>
    %1150 = arith.addf %1068, %1149 : vector<14x128xf32>
    %c0_1361 = arith.constant 0 : index
    %c0_1362 = arith.constant 0 : index
    %c0_1363 = arith.constant 0 : index
    %c0_1364 = arith.constant 0 : index
    %1151 = vector.load %arg5[%c0_1361, %c0_1362, %c0_1363, %c0_1364] : memref<1x1x1x128xf32, #tpu.memory_space<vmem>>, vector<1x1x1x128xf32>
    %1152 = vector.shape_cast %1151 : vector<1x1x1x128xf32> to vector<1x128xf32>
    %1153 = arith.mulf %1150, %1 : vector<14x128xf32>
    %cst_1365 = arith.constant dense<0.000000e+00> : vector<128xf32>
    %1154 = vector.multi_reduction <add>, %1153, %cst_1365 [0] : vector<14x128xf32> to vector<128xf32>
    %1155 = vector.shape_cast %1154 : vector<128xf32> to vector<1x128xf32>
    %1156 = arith.mulf %1155, %1152 : vector<1x128xf32>
    %c0_1366 = arith.constant 0 : index
    %c0_1367 = arith.constant 0 : index
    %c0_1368 = arith.constant 0 : index
    %c0_1369 = arith.constant 0 : index
    %1157 = vector.load %arg6[%c0_1366, %c0_1367, %c0_1368, %c0_1369] : memref<1x1x1x128xf32, #tpu.memory_space<vmem>>, vector<1x1x1x128xf32>
    %1158 = vector.shape_cast %1157 : vector<1x1x1x128xf32> to vector<1x128xf32>
    %1159 = vector.shape_cast %1156 : vector<1x128xf32> to vector<1x1x1x128xf32>
    tpu.vector_store %arg6[%c0_1366, %c0_1367, %c0_1368, %c0_1369], %1159 {strides = array<i32>} : memref<1x1x1x128xf32, #tpu.memory_space<vmem>>, vector<1x1x1x128xf32>,
    %cst_1370 = arith.constant dense<0.000000e+00> : vector<128xf32>
    %1160 = vector.multi_reduction <add>, %1, %cst_1370 [0] : vector<14x128xf32> to vector<128xf32>
    %1161 = vector.shape_cast %1160 : vector<128xf32> to vector<1x128xf32>
    %1162 = arith.mulf %1161, %1161 : vector<1x128xf32>
    %1163 = arith.mulf %1162, %1152 : vector<1x128xf32>
    %cst_1371 = arith.constant 1.000000e+00 : f32
    %1164 = vector.broadcast %cst_1371 : f32 to vector<1x128xf32>
    %1165 = arith.maximumf %1163, %1164 : vector<1x128xf32>
    %c0_1372 = arith.constant 0 : index
    %c0_1373 = arith.constant 0 : index
    %c0_1374 = arith.constant 0 : index
    %c0_1375 = arith.constant 0 : index
    %1166 = vector.load %arg7[%c0_1372, %c0_1373, %c0_1374, %c0_1375] : memref<1x1x1x128xf32, #tpu.memory_space<vmem>>, vector<1x1x1x128xf32>
    %1167 = vector.shape_cast %1166 : vector<1x1x1x128xf32> to vector<1x128xf32>
    %1168 = vector.shape_cast %1165 : vector<1x128xf32> to vector<1x1x1x128xf32>
    tpu.vector_store %arg7[%c0_1372, %c0_1373, %c0_1374, %c0_1375], %1168 {strides = array<i32>} : memref<1x1x1x128xf32, #tpu.memory_space<vmem>>, vector<1x1x1x128xf32>,
    return
  }
  func.func @transform_0(%arg0: i32, %arg1: i32) -> (i32, i32, i32, i32, i32) {
    %c0_i32 = arith.constant 0 : i32
    %c0_i32_0 = arith.constant 0 : i32
    %c0_i32_1 = arith.constant 0 : i32
    %c0_i32_2 = arith.constant 0 : i32
    return %arg0, %arg1, %c0_i32, %c0_i32_0, %c0_i32_1 : i32, i32, i32, i32, i32
  }
  func.func @transform_1(%arg0: i32, %arg1: i32) -> (i32, i32, i32, i32, i32) {
    %c0_i32 = arith.constant 0 : i32
    %c0_i32_0 = arith.constant 0 : i32
    %c0_i32_1 = arith.constant 0 : i32
    %c0_i32_2 = arith.constant 0 : i32
    return %arg0, %arg1, %c0_i32, %c0_i32_0, %c0_i32_1 : i32, i32, i32, i32, i32
  }
  func.func @transform_2(%arg0: i32, %arg1: i32) -> (i32, i32, i32, i32) {
    %c0_i32 = arith.constant 0 : i32
    %c0_i32_0 = arith.constant 0 : i32
    %c0_i32_1 = arith.constant 0 : i32
    return %arg0, %arg1, %c0_i32, %c0_i32_0 : i32, i32, i32, i32
  }
  func.func @transform_3(%arg0: i32, %arg1: i32) -> (i32, i32, i32, i32) {
    %c0_i32 = arith.constant 0 : i32
    %c0_i32_0 = arith.constant 0 : i32
    %c0_i32_1 = arith.constant 0 : i32
    return %arg0, %arg1, %c0_i32, %c0_i32_0 : i32, i32, i32, i32
  }
  func.func @transform_4(%arg0: i32, %arg1: i32) -> (i32, i32, i32, i32) {
    %c0_i32 = arith.constant 0 : i32
    %c0_i32_0 = arith.constant 0 : i32
    %c0_i32_1 = arith.constant 0 : i32
    return %arg0, %arg1, %c0_i32, %c0_i32_0 : i32, i32, i32, i32
  }
  func.func @transform_5(%arg0: i32, %arg1: i32) -> (i32, i32, i32, i32) {
    %c0_i32 = arith.constant 0 : i32
    %c0_i32_0 = arith.constant 0 : i32
    %c0_i32_1 = arith.constant 0 : i32
    return %arg0, %arg1, %c0_i32, %c0_i32_0 : i32, i32, i32, i32
  }
}

</mosaic_0001>

<bundles_post_ra>
// kernel: tpu_custom_call.1
= control target key start
LH: loop header
LB: loop body
LE: loop exit
PB: predicated region body
PF: predicated region fallthrough
CT: control target
= control target key end

     0   :  { %11 = vsyncpa [#allocation3], 0  ;;  %s3868_s0 = inlined_call_operand.vmem [shape: f32[2,1,3,14,128], index: 0, kind: input, shape index: {}]   ;;  %s3869_s1 = inlined_call_operand.vmem [shape: f32[2,1,3,14,128], index: 1, kind: input, shape index: {}]   ;;  %s3870_s2 = inlined_call_operand.vmem [shape: f32[2,1,14,128], index: 2, kind: input, shape index: {}]   ;;  %s3871_s3 = inlined_call_operand.vmem [shape: f32[2,1,1,128], index: 3, kind: input, shape index: {}]   ;;  %s3872_s4 = inlined_call_operand.hbm [shape: f32[2,1,1,128], index: 4, kind: output, shape index: {0}]   ;;  %s3873_s5 = inlined_call_operand.hbm [shape: f32[2,1,1,128], index: 5, kind: output, shape index: {1}]  }
   0x1   :  { %13 = vsyncpa [#allocation3 + $0x1], 0 }
   0x2   :  { %14 = vsyncpa [#allocation5], 0 }
   0x3   :  { %16 = vsyncpa [#allocation5 + $0x1], 0  ;;  %s2564_s18 = smov 0   ;;  %s2566_s19 = smov 0  }
   0x4   :  { %s2568_s20 = smov 0   ;;  %s2570_s21 = smov 0  }
   0x5   :  { %s2572_s22 = smov 0   ;;  %s2574_s23 = smov 0  }
   0x6 LB: > { %s2071_s24 = sadd.s32 4294967295, %s2530_s23   ;;  %s2072_s25 = sadd.s32 4294967294, %s2530_s23   ;;  %s2530_s23 = sphi %s2574_s23, %s22_s23   ;;  %s2526_s22 = sphi %s2572_s22, %s3880_s22   ;;  %s2522_s21 = sphi %s2570_s21, %s3879_s21   ;;  %s2518_s20 = sphi %s2568_s20, %s3878_s20   ;;  %s2514_s19 = sphi %s2566_s19, %s3877_s19   ;;  %s2510_s18 = sphi %s2564_s18, %s3876_s18  }
   0x7   : > { %s34_s26 = sadd.s32 1, %s2526_s22  ;;  %s155_s27 = sadd.s32 1, %s2518_s20 }
   0x8   : > { %p36_p0 = scmp.ge.s32.totalorder %s34_s26, 2  ;;  %p165_p1 = scmp.ne.s32.totalorder %s2518_s20, %s2514_s19 }
   0x9   : > { %p166_p2 = scmp.eq.s32.totalorder %s2071_s24, 1  ;;  %p171_p3 = scmp.ne.s32.totalorder %s2514_s19, %s2510_s18 }
   0xa   : > { %s3882_s26 = smov (%p36_p0, %s34_s26), 0  ;;  %p172_p5 = scmp.eq.s32.totalorder %s2072_s25, 1 }
   0xb   : > { %p2604_p4 = por %p166_p2, %p165_p1  ;;  %s150_s29 = ssub.s32 %s2526_s22, %s3882_s26 }
   0xc   : > { %p2075_p6 = scmp.ge.s32.totalorder %s2530_s23, 1  ;;  %p153_p7 = scmp.eq.s32.totalorder %s150_s29, 0 }
   0xd   : > { %p2611_p8 = por %p172_p5, %p171_p3  ;;  %p263_p9 = scmp.lt.s32.totalorder %s2530_s23, 3 }
   0xe   : > { %s2617_s6 = scalar_select %p153_p7, %s2518_s20, %s155_s27  }
   0xf   : > { %p264_p10 = pnand %p2075_p6, %p263_p9 }
  0x10   : > { %p322_p11 = scmp.lt.s32.totalorder (!%p264_p10), %s2522_s21, 1  ;;  %v471_v49 = vlaneseq (!%p264_p10)  ;;  %s3748_s25 = sand.u32 (!%p264_p10), 1, %s2514_s19  }
  0x11   : > { %267 = sbr.rel (%p264_p10) target bundleno = 345 (0x159), region = 36  ;;  %s321_s9 = scalar_lea.vmem (!%p264_p10), [#allocation4], %s3748_s25 }
  0x12   : > { %v2697_v59 = vshrl.u32 (!%p264_p10), %v471_v49, 7  ;;  %s1915_s10 = sshll.u32 (!%p264_p10), %s321_s9, 4  ;;  %s2532_s16 = smov (!%p264_p10), [#allocation4]   ;;  %s3786_s10 = int_to_ptr.vmem [resolvable:$true] %s1915_s10 }
  0x13   : > { %s2424_s17 = sshll.u32 (!%p264_p10), %s2532_s16, 4  ;;  %s2425_s17 = int_to_ptr.vmem [resolvable:$false] %s2424_s17 }
  0x14   : > { %s2426_s27 = scalar_lea.vmem (!%p264_p10), %s2425_s17, 32  ;;  %p2427_p1 = scmp.lt.s32.totalorder (!%p264_p10), %s3786_s10, %s2425_s17 }
  0x18   : > { %s2621_s7 = scalar_select %p322_p11, %s2522_s21, 1 }
  0x1a   : > { %s2233_s8 = smul.u32 48, %s2621_s7  ;;  %s2232_s15 = sshll.u32 %s2621_s7, 4 }
  0x1b   : > { %s2721_s24 = scalar_lea.vmem %s3870_s2, %s2232_s15  ;;  %s2420_s15 = scalar_lea.vmem %s3786_s10, 16 }
  0x1c   : > { %s2627_s11 = scalar_lea.vmem %s3868_s0, %s2233_s8  ;;  %s2632_s14 = scalar_lea.vmem %s3869_s1, %s2233_s8 }
  0x1d   : > { %v2635_v0 = vld [vmem:[%s2627_s11] sm:$0xff]  ;;  %v2638_v1 = vld [vmem:[%s2627_s11 + $0x8] sm:$0x3f]  ;;  %v2644_v5 = vld [vmem:[%s2627_s11 + $0x10] sm:$0xff]  ;;  %s354_s8 = scalar_lea.vmem %s3871_s3, %s2621_s7  ;;  %s2228_s7 = sshll.u32 %s2522_s21, 4 }
  0x1e   : > { %v2080_v2 = vld [vmem:[%s2627_s11] ss:$0 sm:$0xff]  ;;  %v2647_v6 = vld [vmem:[%s2627_s11 + $0x18] sm:$0x3f]  ;;  %v2084_v7 = vld [vmem:[%s2627_s11 + $0x10] ss:$0 sm:$0xff]  ;;  %s3784_s13 = scalar_lea.hbm %s3873_s5, %s2228_s7  ;;  %p2421_p12 = scmp.ne.s32.totalorder %s3786_s10, %s2420_s15 }
  0x1f   : > { %v364_v3 = vsub.f32 %v2635_v0, %v2080_v2  ;;  %v365_v4 = vsub.f32 %v2638_v1, %v2080_v2  ;;  %v374_v8 = vsub.f32 %v2644_v5, %v2084_v7  ;;  %v375_v9 = vsub.f32 %v2647_v6, %v2084_v7  ;;  %v2653_v10 = vld [vmem:[%s2627_s11 + $0x20] sm:$0xff]  ;;  %v2656_v11 = vld [vmem:[%s2627_s11 + $0x28] sm:$0x3f]  ;;  %v2671_v24 = vld [vmem:[%s2632_s14 + $0x10] sm:$0xff]  ;;  %p2428_p2 = scmp.lt.s32.totalorder %s2426_s27, %s2420_s15 }
  0x20   : > { %v2088_v12 = vld [vmem:[%s2627_s11 + $0x20] ss:$0 sm:$0xff]  ;;  %v2665_v18 = vld [vmem:[%s2632_s14 + $0x8] sm:$0x3f]  ;;  %v2674_v25 = vld [vmem:[%s2632_s14 + $0x18] sm:$0x3f]  ;;  %p2422_p13 = pnand %p2421_p12, %p2604_p4 }
  0x21   : > { %v384_v13 = vsub.f32 %v2653_v10, %v2088_v12  ;;  %v385_v14 = vsub.f32 %v2656_v11, %v2088_v12  ;;  %v386_v15 = vmul.f32 %v364_v3, %v364_v3  ;;  %v387_v16 = vmul.f32 %v365_v4, %v365_v4  ;;  %v2662_v17 = vld [vmem:[%s2632_s14] sm:$0xff]  ;;  %v2093_v26 = vld [vmem:[%s2632_s14 + $0x10] ss:$0 sm:$0xff]  ;;  %v2683_v31 = vld [vmem:[%s2632_s14 + $0x28] sm:$0x3f]  ;;  %p2429_p3 = por %p2428_p2, %p2427_p1 }
  0x22   : > { %v2089_v19 = vld [vmem:[%s2632_s14] ss:$0 sm:$0xff]  ;;  %v388_v20 = vmul.f32 %v374_v8, %v374_v8  ;;  %v389_v21 = vmul.f32 %v375_v9, %v375_v9  ;;  %v429_v28 = vsub.f32 %v2671_v24, %v2093_v26  ;;  %v430_v29 = vsub.f32 %v2674_v25, %v2093_v26  ;;  %v2098_v47 = vld [vmem:[%s2627_s11 + $0x1] ss:$0 sm:$0xff]  ;;  %v2100_v48 = vld [vmem:[%s2627_s11 + $0x11] ss:$0 sm:$0xff]  ;;  %p2423_p0 = pneg %p2422_p13 }
  0x23   : > { %v419_v22 = vsub.f32 %v2662_v17, %v2089_v19  ;;  %v420_v23 = vsub.f32 %v2665_v18, %v2089_v19  ;;  %v392_v27 = vmul.f32 %v384_v13, %v384_v13  ;;  %v2680_v30 = vld [vmem:[%s2632_s14 + $0x20] sm:$0xff]  ;;  %v393_v41 = vmul.f32 %v385_v14, %v385_v14  ;;  %v2105_v2 = vld [vmem:[%s2632_s14 + $0x11] ss:$0 sm:$0xff] }
  0x24   : > { %v2097_v32 = vld [vmem:[%s2632_s14 + $0x20] ss:$0 sm:$0xff]  ;;  %v390_v33 = vadd.f32 %v388_v20, %v386_v15  ;;  %v443_v38 = vmul.f32 %v429_v28, %v429_v28  ;;  %v444_v39 = vmul.f32 %v430_v29, %v430_v29  ;;  %v391_v40 = vadd.f32 %v389_v21, %v387_v16  ;;  %v2102_v52 = vld [vmem:[%s2627_s11 + $0x21] ss:$0 sm:$0xff]  ;;  %p2430_p5 = pnand %p2429_p3, %p2423_p0 }
  0x25   : > { %v439_v34 = vsub.f32 %v2680_v30, %v2097_v32  ;;  %v440_v35 = vsub.f32 %v2683_v31, %v2097_v32  ;;  %v441_v36 = vmul.f32 %v419_v22, %v419_v22  ;;  %v442_v37 = vmul.f32 %v420_v23, %v420_v23  ;;  %v2103_v61 = vld [vmem:[%s2632_s14 + $0x1] ss:$0 sm:$0xff] }
  0x26   : > { %v394_v42 = vadd.f32 %v392_v27, %v390_v33  ;;  %v395_v50 = vadd.f32 %v393_v41, %v391_v40  ;;  %v484_v53 = vsub.f32 %v2635_v0, %v2098_v47  ;;  %v485_v54 = vsub.f32 %v2638_v1, %v2098_v47  ;;  %v2107_v3 = vld [vmem:[%s2632_s14 + $0x21] ss:$0 sm:$0xff] }
  0x27   : > { %v445_v43 = vadd.f32 %v443_v38, %v441_v36  ;;  %v446_v44 = vadd.f32 %v444_v39, %v442_v37  ;;  %v447_v45 = vmul.f32 %v439_v34, %v439_v34  ;;  %v448_v46 = vmul.f32 %v440_v35, %v440_v35  ;;  %v2108_v38 = vld [vmem:[%s2627_s11 + $0x2] ss:$0 sm:$0xff]  ;;  %v2110_v39 = vld [vmem:[%s2627_s11 + $0x12] ss:$0 sm:$0xff] }
  0x28   : > { %v2690_v51 = vadd.f32 3e-08, %v394_v42  ;;  %v491_v55 = vsub.f32 %v2644_v5, %v2100_v48  ;;  %v492_v56 = vsub.f32 %v2647_v6, %v2100_v48  ;;  %v498_v60 = vsub.f32 %v2653_v10, %v2102_v52  ;;  %v2730_v40 = vld [vmem:[%s2721_s24] sm:$0xff] }
  0x29   : > { %v449_v57 = vadd.f32 %v447_v45, %v445_v43  ;;  %v450_v58 = vadd.f32 %v448_v46, %v446_v44  ;;  %v2701_v62 = vadd.f32 3e-08, %v395_v50  ;;  %v499_v63 = vsub.f32 %v2656_v11, %v2102_v52 }
  0x2a   : > { %2294 = vrsqrt.f32 %v2690_v51  ;;  %v500_v4 = vmul.f32 %v484_v53, %v484_v53  ;;  %v501_v7 = vmul.f32 %v485_v54, %v485_v54  ;;  %v502_v8 = vmul.f32 %v491_v55, %v491_v55  ;;  %v2112_v53 = vld [vmem:[%s2627_s11 + $0x22] ss:$0 sm:$0xff] }
  0x2b   : > { %v503_v9 = vmul.f32 %v492_v56, %v492_v56  ;;  %v2708_v12 = vadd.f32 3e-08, %v449_v57  ;;  %v2710_v13 = vadd.f32 3e-08, %v450_v58  ;;  %v531_v14 = vsub.f32 %v2662_v17, %v2103_v61 }
  0x2c   : > { %v532_v15 = vsub.f32 %v2665_v18, %v2103_v61  ;;  %v506_v16 = vmul.f32 %v498_v60, %v498_v60  ;;  %v538_v19 = vsub.f32 %v2671_v24, %v2105_v2  ;;  %v539_v20 = vsub.f32 %v2674_v25, %v2105_v2 }
  0x2d   : > { %v545_v21 = vsub.f32 %v2680_v30, %v2107_v3  ;;  %v507_v22 = vmul.f32 %v499_v63, %v499_v63  ;;  %v546_v23 = vsub.f32 %v2683_v31, %v2107_v3  ;;  %v547_v26 = vmul.f32 %v531_v14, %v531_v14 }
  0x2e   : > { %v548_v27 = vmul.f32 %v532_v15, %v532_v15  ;;  %v504_v28 = vadd.f32 %v502_v8, %v500_v4  ;;  %v505_v29 = vadd.f32 %v503_v9, %v501_v7  ;;  %v549_v32 = vmul.f32 %v538_v19, %v538_v19 }
  0x2f   : > { %v550_v33 = vmul.f32 %v539_v20, %v539_v20  ;;  %2296 = vrsqrt.f32 %v2708_v12  ;;  %v473_v34 = vsub.s32 0, %v2697_v59  ;;  %v553_v36 = vmul.f32 %v545_v21, %v545_v21 }
  0x30   : > { %2298 = vrsqrt.f32 %v2701_v62  ;;  %v551_v35 = vadd.f32 %v549_v32, %v547_v26  ;;  %v579_v37 = vsub.s32 1, %v2697_v59  ;;  %v554_v42 = vmul.f32 %v546_v23, %v546_v23 }
  0x31   : > { %2300 = vrsqrt.f32 %v2710_v13  ;;  %v552_v41 = vadd.f32 %v550_v33, %v548_v27  ;;  %v685_v43 = vsub.s32 2, %v2697_v59  ;;  %v508_v44 = vadd.f32 %v506_v16, %v504_v28  ;;  %v2115_v33 = vld [vmem:[%s2632_s14 + $0x12] ss:$0 sm:$0xff] }
  0x32   : > { %v509_v45 = vadd.f32 %v507_v22, %v505_v29  ;;  %v791_v46 = vsub.s32 3, %v2697_v59  ;;  %v590_v48 = vsub.f32 %v2635_v0, %v2108_v38  ;;  %v597_v49 = vsub.f32 %v2644_v5, %v2110_v39  ;;  %v2113_v22 = vld [vmem:[%s2632_s14 + $0x2] ss:$0 sm:$0xff] }
  0x33   : > { %v2740_v50 = vrot.slane %v2730_v40, %v473_v34  ;;  %v555_v52 = vadd.f32 %v553_v36, %v551_v35  ;;  %v897_v54 = vsub.s32 4, %v2697_v59  ;;  %v1003_v55 = vsub.s32 5, %v2697_v59 }
  0x34   : > { %v2295_v47 = vpop.eup %2294  ;;  %v556_v56 = vadd.f32 %v554_v42, %v552_v41  ;;  %v2748_v57 = vrot.slane %v2730_v40, %v579_v37  ;;  %v591_v58 = vsub.f32 %v2638_v1, %v2108_v38  ;;  %v2754_v60 = vrot.slane %v2730_v40, %v685_v43 }
  0x35   : > { %vm400_vm0 = vcmp.eq.f32.partialorder %v2690_v51, inf  ;;  %v2757_v61 = vadd.f32 3e-08, %v508_v44  ;;  %v2759_v63 = vadd.f32 3e-08, %v509_v45  ;;  %v2764_v2 = vrot.slane %v2730_v40, %v791_v46 }
  0x36   : > { %v598_v3 = vsub.f32 %v2647_v6, %v2110_v39  ;;  %v604_v4 = vsub.f32 %v2653_v10, %v2112_v53  ;;  %v606_v7 = vmul.f32 %v590_v48, %v590_v48  ;;  %v608_v8 = vmul.f32 %v597_v49, %v597_v49  ;;  %v2117_v49 = vld [vmem:[%s2632_s14 + $0x22] ss:$0 sm:$0xff] }
  0x37   : > { %vm402_vm1 = vcmp.eq.f32.partialorder %v2690_v51, 0.0  ;;  %v403_v9 = vand.u32 2147483648, %v2690_v51  ;;  %v2770_v14 = vadd.f32 3e-08, %v555_v52  ;;  %v605_v15 = vsub.f32 %v2656_v11, %v2112_v53 }
  0x38   : > { %vm407_vm2 = vcmp.eq.f32.partialorder %v2701_v62, inf  ;;  %v410_v19 = vand.u32 2147483648, %v2701_v62  ;;  %v2775_v20 = vadd.f32 3e-08, %v556_v56  ;;  %v607_v21 = vmul.f32 %v591_v58, %v591_v58 }
  0x39   : > { %v2297_v16 = vpop.eup %2296  ;;  %v399_v26 = vmul.f32 %v2295_v47, %v2690_v51  ;;  %vm409_vm3 = vcmp.eq.f32.partialorder %v2701_v62, 0.0  ;;  %vm455_vm4 = vcmp.eq.f32.partialorder %v2708_v12, inf  ;;  %vm457_vm5 = vcmp.eq.f32.partialorder %v2708_v12, 0.0 }
  0x3a   : > { %v2299_v23 = vpop.eup %2298  ;;  %2302 = vrsqrt.f32 %v2757_v61  ;;  %v609_v28 = vmul.f32 %v598_v3, %v598_v3  ;;  %v610_v29 = vadd.f32 %v608_v8, %v606_v7  ;;  %v612_v32 = vmul.f32 %v604_v4, %v604_v4 }
  0x3b   : > { %v2301_v27 = vpop.eup %2300  ;;  %2304 = vrsqrt.f32 %v2759_v63  ;;  %v454_v35 = vmul.f32 %v2297_v16, %v2708_v12  ;;  %v613_v36 = vmul.f32 %v605_v15, %v605_v15  ;;  %v637_v38 = vsub.f32 %v2662_v17, %v2113_v22 }
  0x3c   : > { %2306 = vrsqrt.f32 %v2770_v14  ;;  %v406_v39 = vmul.f32 %v2299_v23, %v2701_v62  ;;  %v458_v41 = vand.u32 2147483648, %v2708_v12  ;;  %v611_v42 = vadd.f32 %v609_v28, %v607_v21 }
  0x3d   : > { %2308 = vrsqrt.f32 %v2775_v20  ;;  %v461_v44 = vmul.f32 %v2301_v27, %v2710_v13  ;;  %v638_v45 = vsub.f32 %v2665_v18, %v2113_v22  ;;  %v644_v47 = vsub.f32 %v2671_v24, %v2115_v33  ;;  %v2118_v27 = vld [vmem:[%s2627_s11 + $0x3] ss:$0 sm:$0xff] }
  0x3e   : > { %v645_v48 = vsub.f32 %v2674_v25, %v2115_v33  ;;  %vm462_vm6 = vcmp.eq.f32.partialorder %v2710_v13, inf  ;;  %vm464_vm7 = vcmp.eq.f32.partialorder %v2710_v13, 0.0  ;;  %v465_v52 = vand.u32 2147483648, %v2710_v13  ;;  %v2120_v33 = vld [vmem:[%s2627_s11 + $0x13] ss:$0 sm:$0xff] }
  0x3f   : > { %v614_v53 = vadd.f32 %v612_v32, %v610_v29  ;;  %v401_v56 = vsel %vm400_vm0, %v2690_v51, %v399_v26  ;;  %v456_v58 = vsel %vm455_vm4, %v2708_v12, %v454_v35  ;;  %v615_v3 = vadd.f32 %v613_v36, %v611_v42 }
  0x40   : > { %v653_v4 = vmul.f32 %v637_v38, %v637_v38  ;;  %v408_v7 = vsel %vm407_vm2, %v2701_v62, %v406_v39  ;;  %vm514_vm8 = vcmp.eq.f32.partialorder %v2757_v61, inf  ;;  %v517_v8 = vand.u32 2147483648, %v2757_v61 }
  0x41   : > { %v651_v15 = vsub.f32 %v2680_v30, %v2117_v49  ;;  %v652_v16 = vsub.f32 %v2683_v31, %v2117_v49  ;;  %v463_v21 = vsel %vm462_vm6, %v2710_v13, %v461_v44  ;;  %v654_v22 = vmul.f32 %v638_v45, %v638_v45 }
  0x42   : > { %v655_v23 = vmul.f32 %v644_v47, %v644_v47  ;;  %v656_v26 = vmul.f32 %v645_v48, %v645_v48  ;;  %v404_v28 = vsel %vm402_vm1, %v403_v9, %v401_v56  ;;  %v459_v29 = vsel %vm457_vm5, %v458_v41, %v456_v58  ;;  %v2122_v58 = vld [vmem:[%s2627_s11 + $0x23] ss:$0 sm:$0xff] }
  0x43   : > { %vm521_vm9 = vcmp.eq.f32.partialorder %v2759_v63, inf  ;;  %v2819_v32 = vadd.f32 3e-08, %v614_v53  ;;  %vm516_vm10 = vcmp.eq.f32.partialorder %v2757_v61, 0.0  ;;  %vm523_vm11 = vcmp.eq.f32.partialorder %v2759_v63, 0.0 }
  0x44   : > { %v2303_v35 = vpop.eup %2302  ;;  %v2824_v36 = vadd.f32 3e-08, %v615_v3  ;;  %v657_v38 = vadd.f32 %v655_v23, %v653_v4  ;;  %v658_v39 = vadd.f32 %v656_v26, %v654_v22  ;;  %v411_v51 = vsel %vm409_vm3, %v410_v19, %v408_v7 }
  0x45   : > { %v2305_v42 = vpop.eup %2304  ;;  %v466_v12 = vsel %vm464_vm7, %v465_v52, %v463_v21  ;;  %v659_v9 = vmul.f32 %v651_v15, %v651_v15  ;;  %v660_v41 = vmul.f32 %v652_v16, %v652_v16  ;;  %v467_v45 = vsub.f32 %v404_v28, %v459_v29 }
  0x46   : > { %v2307_v44 = vpop.eup %2306  ;;  %v524_v47 = vand.u32 2147483648, %v2759_v63  ;;  %v696_v48 = vsub.f32 %v2635_v0, %v2118_v27  ;;  %v703_v49 = vsub.f32 %v2644_v5, %v2120_v33  ;;  %vm561_vm12 = vcmp.eq.f32.partialorder %v2770_v14, inf }
  0x47   : > { %v2309_v53 = vpop.eup %2308  ;;  %2310 = vrsqrt.f32 %v2819_v32  ;;  %v661_v62 = vadd.f32 %v659_v9, %v657_v38  ;;  %v662_v19 = vadd.f32 %v660_v41, %v658_v39  ;;  %v2835_v13 = vsub.f32 %v411_v51, %v466_v12  ;;  %v2123_v39 = vld [vmem:[%s2632_s14 + $0x3] ss:$0 sm:$0xff] }
  0x48   : > { %v513_v52 = vmul.f32 %v2303_v35, %v2757_v61  ;;  %v520_v56 = vmul.f32 %v2305_v42, %v2759_v63  ;;  %2312 = vrsqrt.f32 %v2824_v36  ;;  %v697_v7 = vsub.f32 %v2638_v1, %v2118_v27  ;;  %v2125_v42 = vld [vmem:[%s2632_s14 + $0x13] ss:$0 sm:$0xff] }
  0x49   : > { %v2841_v3 = vadd.f32 3e-08, %v661_v62  ;;  %v2843_v4 = vadd.f32 3e-08, %v662_v19  ;;  %v704_v15 = vsub.f32 %v2647_v6, %v2120_v33  ;;  %v560_v16 = vmul.f32 %v2307_v44, %v2770_v14  ;;  %v2127_v62 = vld [vmem:[%s2632_s14 + $0x23] ss:$0 sm:$0xff] }
  0x4a   : > { %v567_v21 = vmul.f32 %v2309_v53, %v2775_v20  ;;  %v712_v22 = vmul.f32 %v696_v48, %v696_v48  ;;  %v714_v23 = vmul.f32 %v703_v49, %v703_v49  ;;  %vm563_vm13 = vcmp.eq.f32.partialorder %v2770_v14, 0.0 }
  0x4b   : > { %vm568_vm14 = vcmp.eq.f32.partialorder %v2775_v20, inf  ;;  %2314 = vrsqrt.f32 %v2841_v3  ;;  %v710_v26 = vsub.f32 %v2653_v10, %v2122_v58  ;;  %v515_v27 = vsel %vm514_vm8, %v2757_v61, %v513_v52 }
  0x4c   : > { %v522_v28 = vsel %vm521_vm9, %v2759_v63, %v520_v56  ;;  %v564_v29 = vand.u32 2147483648, %v2770_v14  ;;  %2316 = vrsqrt.f32 %v2843_v4  ;;  %vm570_vm15 = vcmp.eq.f32.partialorder %v2775_v20, 0.0 }
  0x4d   : > { %v571_v33 = vand.u32 2147483648, %v2775_v20  ;;  %v713_v35 = vmul.f32 %v697_v7, %v697_v7  ;;  %v715_v38 = vmul.f32 %v704_v15, %v704_v15  ;;  %v562_v51 = vsel %vm561_vm12, %v2770_v14, %v560_v16 }
  0x4e   : > { %v569_v12 = vsel %vm568_vm14, %v2775_v20, %v567_v21  ;;  %v711_v9 = vsub.f32 %v2656_v11, %v2122_v58  ;;  %v716_v41 = vadd.f32 %v714_v23, %v712_v22  ;;  %v2870_v44 = vmul.f32 %v467_v45, %v467_v45 }
  0x4f   : > { %v518_v48 = vsel %vm516_vm10, %v517_v8, %v515_v27  ;;  %v525_v49 = vsel %vm523_vm11, %v524_v47, %v522_v28  ;;  %v718_v53 = vmul.f32 %v710_v26, %v710_v26  ;;  %vm620_vm0 = vcmp.eq.f32.partialorder %v2819_v32, inf }
  0x50   : > { %v743_v19 = vsub.f32 %v2662_v17, %v2123_v39  ;;  %v744_v52 = vsub.f32 %v2665_v18, %v2123_v39  ;;  %v750_v56 = vsub.f32 %v2671_v24, %v2125_v42  ;;  %v565_v58 = vsel %vm563_vm13, %v564_v29, %v562_v51 }
  0x51   : > { %v2311_v45 = vpop.eup %2310  ;;  %v572_v61 = vsel %vm570_vm15, %v571_v33, %v569_v12  ;;  %v717_v8 = vadd.f32 %v715_v38, %v713_v35  ;;  %v751_v63 = vsub.f32 %v2674_v25, %v2125_v42  ;;  %v719_v7 = vmul.f32 %v711_v9, %v711_v9 }
  0x52   : > { %v2313_v47 = vpop.eup %2312  ;;  %v720_v15 = vadd.f32 %v718_v53, %v716_v41  ;;  %v757_v16 = vsub.f32 %v2680_v30, %v2127_v62  ;;  %v758_v21 = vsub.f32 %v2683_v31, %v2127_v62  ;;  %vm622_vm1 = vcmp.eq.f32.partialorder %v2819_v32, 0.0  ;;  %v2128_v62 = vld [vmem:[%s2627_s11 + $0x4] ss:$0 sm:$0xff] }
  0x53   : > { %v759_v22 = vmul.f32 %v743_v19, %v743_v19  ;;  %v760_v23 = vmul.f32 %v744_v52, %v744_v52  ;;  %v761_v26 = vmul.f32 %v750_v56, %v750_v56  ;;  %v762_v14 = vmul.f32 %v751_v63, %v751_v63  ;;  %v2130_v19 = vld [vmem:[%s2627_s11 + $0x14] ss:$0 sm:$0xff] }
  0x54   : > { %v623_v27 = vand.u32 2147483648, %v2819_v32  ;;  %vm627_vm2 = vcmp.eq.f32.partialorder %v2824_v36, inf  ;;  %vm629_vm3 = vcmp.eq.f32.partialorder %v2824_v36, 0.0  ;;  %v630_v20 = vand.u32 2147483648, %v2824_v36 }
  0x55   : > { %v2315_v28 = vpop.eup %2314  ;;  %v573_v29 = vsub.f32 %v518_v48, %v565_v58  ;;  %v574_v33 = vsub.f32 %v525_v49, %v572_v61  ;;  %v765_v35 = vmul.f32 %v757_v16, %v757_v16  ;;  %v766_v38 = vmul.f32 %v758_v21, %v758_v21  ;;  %v2132_v21 = vld [vmem:[%s2627_s11 + $0x24] ss:$0 sm:$0xff] }
  0x56   : > { %v2317_v39 = vpop.eup %2316  ;;  %v619_v42 = vmul.f32 %v2311_v45, %v2819_v32  ;;  %v626_v51 = vmul.f32 %v2313_v47, %v2824_v36  ;;  %vm667_vm4 = vcmp.eq.f32.partialorder %v2841_v3, inf  ;;  %vm669_vm5 = vcmp.eq.f32.partialorder %v2841_v3, 0.0 }
  0x57   : > { %v721_v12 = vadd.f32 %v719_v7, %v717_v8  ;;  %v2899_v9 = vadd.f32 3e-08, %v720_v15  ;;  %v763_v41 = vadd.f32 %v761_v26, %v759_v22  ;;  %v764_v53 = vadd.f32 %v762_v14, %v760_v23 }
  0x58   : > { %v666_v48 = vmul.f32 %v2315_v28, %v2841_v3  ;;  %v670_v49 = vand.u32 2147483648, %v2841_v3  ;;  %v673_v52 = vmul.f32 %v2317_v39, %v2843_v4  ;;  %vm674_vm6 = vcmp.eq.f32.partialorder %v2843_v4, inf }
  0x59   : > { %vm676_vm7 = vcmp.eq.f32.partialorder %v2843_v4, 0.0  ;;  %v677_v56 = vand.u32 2147483648, %v2843_v4  ;;  %v767_v45 = vadd.f32 %v765_v35, %v763_v41  ;;  %v768_v58 = vadd.f32 %v766_v38, %v764_v53  ;;  %v2133_v53 = vld [vmem:[%s2632_s14 + $0x4] ss:$0 sm:$0xff] }
  0x5a   : > { %v621_v61 = vsel %vm620_vm0, %v2819_v32, %v619_v42  ;;  %v628_v8 = vsel %vm627_vm2, %v2824_v36, %v626_v51  ;;  %v802_v63 = vsub.f32 %v2635_v0, %v2128_v62  ;;  %v809_v47 = vsub.f32 %v2644_v5, %v2130_v19 }
  0x5b   : > { %v2917_v7 = vadd.f32 3e-08, %v721_v12  ;;  %2318 = vrsqrt.f32 %v2899_v9  ;;  %v2920_v15 = vadd.f32 3e-08, %v767_v45  ;;  %v803_v16 = vsub.f32 %v2638_v1, %v2128_v62  ;;  %v2135_v62 = vld [vmem:[%s2632_s14 + $0x14] ss:$0 sm:$0xff] }
  0x5c   : > { %v668_v22 = vsel %vm667_vm4, %v2841_v3, %v666_v48  ;;  %v675_v23 = vsel %vm674_vm6, %v2843_v4, %v673_v52  ;;  %v2928_v26 = vadd.f32 3e-08, %v768_v58  ;;  %v810_v14 = vsub.f32 %v2647_v6, %v2130_v19  ;;  %v2137_v19 = vld [vmem:[%s2632_s14 + $0x24] ss:$0 sm:$0xff] }
  0x5d   : > { %v470_v28 = vmul.f32 %v2835_v13, %v2835_v13  ;;  %v575_v35 = vmul.f32 %v573_v29, %v573_v29  ;;  %v576_v38 = vmul.f32 %v574_v33, %v574_v33  ;;  %2320 = vrsqrt.f32 %v2920_v15 }
  0x5e   : > { %v624_v39 = vsel %vm622_vm1, %v623_v27, %v621_v61  ;;  %v816_v42 = vsub.f32 %v2653_v10, %v2132_v21  ;;  %v818_v51 = vmul.f32 %v802_v63, %v802_v63  ;;  %v820_v12 = vmul.f32 %v809_v47, %v809_v47 }
  0x5f   : > { %v631_v41 = vsel %vm629_vm3, %v630_v20, %v628_v8  ;;  %v671_v13 = vsel %vm669_vm5, %v670_v49, %v668_v22  ;;  %v678_v29 = vsel %vm676_vm7, %v677_v56, %v675_v23  ;;  %2322 = vrsqrt.f32 %v2917_v7 }
  0x60   : > { %2324 = vrsqrt.f32 %v2928_v26  ;;  %v817_v32 = vsub.f32 %v2656_v11, %v2132_v21  ;;  %v819_v27 = vmul.f32 %v803_v16, %v803_v16  ;;  %v821_v33 = vmul.f32 %v810_v14, %v810_v14 }
  0x61   : > { %v475_v36 = vmul.f32 %v2740_v50, %v2870_v44  ;;  %v2951_v20 = vmul.f32 %v2740_v50, %v470_v28  ;;  %v581_v3 = vmul.f32 %v2748_v57, %v575_v35  ;;  %v2955_v4 = vmul.f32 %v2748_v57, %v576_v38 }
  0x62   : > { %v679_v48 = vsub.f32 %v624_v39, %v671_v13  ;;  %v680_v49 = vsub.f32 %v631_v41, %v678_v29  ;;  %v822_v52 = vadd.f32 %v820_v12, %v818_v51  ;;  %v824_v56 = vmul.f32 %v816_v42, %v816_v42  ;;  %v2138_v12 = vld [vmem:[%s2627_s11 + $0x5] ss:$0 sm:$0xff]  ;;  %v2140_v41 = vld [vmem:[%s2627_s11 + $0x15] ss:$0 sm:$0xff] }
  0x63   : > { %v849_v45 = vsub.f32 %v2662_v17, %v2133_v53  ;;  %v850_v58 = vsub.f32 %v2665_v18, %v2133_v53  ;;  %v856_v61 = vsub.f32 %v2671_v24, %v2135_v62  ;;  %v857_v44 = vsub.f32 %v2674_v25, %v2135_v62 }
  0x64   : > { %v823_v50 = vadd.f32 %v821_v33, %v819_v27  ;;  %v825_v8 = vmul.f32 %v817_v32, %v817_v32  ;;  %v863_v63 = vsub.f32 %v2680_v30, %v2137_v19  ;;  %v864_v57 = vsub.f32 %v2683_v31, %v2137_v19 }
  0x65   : > { %v2319_v47 = vpop.eup %2318  ;;  %v2964_v16 = vadd.f32 %v581_v3, %v475_v36  ;;  %vm726_vm8 = vcmp.eq.f32.partialorder %v2899_v9, inf  ;;  %v729_v21 = vand.u32 2147483648, %v2899_v9  ;;  %vm733_vm9 = vcmp.eq.f32.partialorder %v2917_v7, inf }
  0x66   : > { %v2969_v22 = vmul.f32 %v679_v48, %v679_v48  ;;  %v2971_v23 = vmul.f32 %v680_v49, %v680_v49  ;;  %vm728_vm10 = vcmp.eq.f32.partialorder %v2899_v9, 0.0  ;;  %v736_v14 = vand.u32 2147483648, %v2917_v7 }
  0x67   : > { %v826_v28 = vadd.f32 %v824_v56, %v822_v52  ;;  %v2321_v35 = vpop.eup %2320  ;;  %v865_v38 = vmul.f32 %v849_v45, %v849_v45  ;;  %v866_v39 = vmul.f32 %v850_v58, %v850_v58  ;;  %v867_v42 = vmul.f32 %v856_v61, %v856_v61  ;;  %v2142_v61 = vld [vmem:[%s2627_s11 + $0x25] ss:$0 sm:$0xff] }
  0x68   : > { %v868_v51 = vmul.f32 %v857_v44, %v857_v44  ;;  %vm735_vm11 = vcmp.eq.f32.partialorder %v2917_v7, 0.0  ;;  %vm773_vm12 = vcmp.eq.f32.partialorder %v2920_v15, inf  ;;  %v827_v13 = vadd.f32 %v825_v8, %v823_v50 }
  0x69   : > { %v871_v29 = vmul.f32 %v863_v63, %v863_v63  ;;  %v872_v32 = vmul.f32 %v864_v57, %v864_v57  ;;  %v2323_v27 = vpop.eup %2322  ;;  %v725_v33 = vmul.f32 %v2319_v47, %v2899_v9  ;;  %v772_v53 = vmul.f32 %v2321_v35, %v2920_v15 }
  0x6a   : > { %v869_v62 = vadd.f32 %v867_v42, %v865_v38  ;;  %v870_v36 = vadd.f32 %v868_v51, %v866_v39  ;;  %v2325_v3 = vpop.eup %2324  ;;  %vm775_vm13 = vcmp.eq.f32.partialorder %v2920_v15, 0.0  ;;  %v2982_v19 = vadd.f32 3e-08, %v826_v28 }
  0x6b   : > { %v908_v48 = vsub.f32 %v2635_v0, %v2138_v12  ;;  %v915_v49 = vsub.f32 %v2644_v5, %v2140_v41  ;;  %v909_v45 = vsub.f32 %v2638_v1, %v2138_v12  ;;  %v916_v58 = vsub.f32 %v2647_v6, %v2140_v41 }
  0x6c   : > { %v873_v52 = vadd.f32 %v871_v29, %v869_v62  ;;  %v874_v56 = vadd.f32 %v872_v32, %v870_v36  ;;  %v732_v44 = vmul.f32 %v2323_v27, %v2917_v7  ;;  %v776_v50 = vand.u32 2147483648, %v2920_v15 }
  0x6d   : > { %vm780_vm14 = vcmp.eq.f32.partialorder %v2928_v26, inf  ;;  %v2992_v8 = vadd.f32 3e-08, %v827_v13  ;;  %v727_v63 = vsel %vm726_vm8, %v2899_v9, %v725_v33  ;;  %v774_v57 = vsel %vm773_vm12, %v2920_v15, %v772_v53  ;;  %v2143_v53 = vld [vmem:[%s2632_s14 + $0x5] ss:$0 sm:$0xff] }
  0x6e   : > { %v779_v47 = vmul.f32 %v2325_v3, %v2928_v26  ;;  %v3001_v28 = vadd.f32 3e-08, %v873_v52  ;;  %v3003_v35 = vadd.f32 3e-08, %v874_v56  ;;  %v922_v38 = vsub.f32 %v2653_v10, %v2142_v61  ;;  %v2147_v9 = vld [vmem:[%s2632_s14 + $0x25] ss:$0 sm:$0xff] }
  0x6f   : > { %v924_v39 = vmul.f32 %v908_v48, %v908_v48  ;;  %v926_v42 = vmul.f32 %v915_v49, %v915_v49  ;;  %vm782_vm15 = vcmp.eq.f32.partialorder %v2928_v26, 0.0  ;;  %2326 = vrsqrt.f32 %v2982_v19  ;;  %v2145_v48 = vld [vmem:[%s2632_s14 + $0x15] ss:$0 sm:$0xff] }
  0x70   : > { %v925_v51 = vmul.f32 %v909_v45, %v909_v45  ;;  %v927_v12 = vmul.f32 %v916_v58, %v916_v58  ;;  %v734_v41 = vsel %vm733_vm9, %v2917_v7, %v732_v44  ;;  %v783_v13 = vand.u32 2147483648, %v2928_v26 }
  0x71   : > { %2328 = vrsqrt.f32 %v2992_v8  ;;  %v923_v29 = vsub.f32 %v2656_v11, %v2142_v61  ;;  %v730_v32 = vsel %vm728_vm10, %v729_v21, %v727_v63  ;;  %v777_v27 = vsel %vm775_vm13, %v776_v50, %v774_v57 }
  0x72   : > { %v781_v33 = vsel %vm780_vm14, %v2928_v26, %v779_v47  ;;  %2330 = vrsqrt.f32 %v3001_v28  ;;  %v584_v62 = vadd.f32 %v2955_v4, %v2951_v20  ;;  %v928_v36 = vadd.f32 %v926_v42, %v924_v39 }
  0x73   : > { %2332 = vrsqrt.f32 %v3003_v35  ;;  %v930_v3 = vmul.f32 %v922_v38, %v922_v38  ;;  %v687_v15 = vmul.f32 %v2754_v60, %v2969_v22  ;;  %v688_v21 = vmul.f32 %v2754_v60, %v2971_v23 }
  0x74   : > { %v737_v49 = vsel %vm735_vm11, %v736_v14, %v734_v41  ;;  %v929_v52 = vadd.f32 %v927_v12, %v925_v51  ;;  %v784_v20 = vsel %vm782_vm15, %v783_v13, %v781_v33  ;;  %v785_v4 = vsub.f32 %v730_v32, %v777_v27 }
  0x75   : > { %v931_v56 = vmul.f32 %v923_v29, %v923_v29  ;;  %v955_v45 = vsub.f32 %v2662_v17, %v2143_v53  ;;  %v956_v58 = vsub.f32 %v2665_v18, %v2143_v53  ;;  %v962_v22 = vsub.f32 %v2671_v24, %v2145_v48 }
  0x76   : > { %v963_v61 = vsub.f32 %v2674_v25, %v2145_v48  ;;  %v969_v60 = vsub.f32 %v2680_v30, %v2147_v9  ;;  %v932_v23 = vadd.f32 %v930_v3, %v928_v36  ;;  %v970_v7 = vsub.f32 %v2683_v31, %v2147_v9  ;;  %v2148_v3 = vld [vmem:[%s2627_s11 + $0x6] ss:$0 sm:$0xff] }
  0x77   : > { %v933_v44 = vadd.f32 %v931_v56, %v929_v52  ;;  %v971_v14 = vmul.f32 %v955_v45, %v955_v45  ;;  %v972_v50 = vmul.f32 %v956_v58, %v956_v58  ;;  %v973_v26 = vmul.f32 %v962_v22, %v962_v22 }
  0x78   : > { %v974_v63 = vmul.f32 %v963_v61, %v963_v61  ;;  %v977_v57 = vmul.f32 %v969_v60, %v969_v60  ;;  %v689_v47 = vadd.f32 %v687_v15, %v2964_v16  ;;  %v690_v38 = vadd.f32 %v688_v21, %v584_v62  ;;  %v2150_v21 = vld [vmem:[%s2627_s11 + $0x16] ss:$0 sm:$0xff] }
  0x79   : > { %v786_v39 = vsub.f32 %v737_v49, %v784_v20  ;;  %v3048_v42 = vrot.slane %v2730_v40, %v897_v54  ;;  %v2327_v51 = vpop.eup %2326  ;;  %v787_v12 = vmul.f32 %v785_v4, %v785_v4  ;;  %v975_v41 = vadd.f32 %v973_v26, %v971_v14 }
  0x7a   : > { %v976_v13 = vadd.f32 %v974_v63, %v972_v50  ;;  %v978_v29 = vmul.f32 %v970_v7, %v970_v7  ;;  %vm832_vm0 = vcmp.eq.f32.partialorder %v2982_v19, inf  ;;  %vm834_vm1 = vcmp.eq.f32.partialorder %v2982_v19, 0.0  ;;  %v2153_v50 = vld [vmem:[%s2632_s14 + $0x6] ss:$0 sm:$0xff] }
  0x7b   : > { %v2329_v32 = vpop.eup %2328  ;;  %v835_v16 = vand.u32 2147483648, %v2982_v19  ;;  %v3053_v27 = vadd.f32 3e-08, %v932_v23  ;;  %vm839_vm2 = vcmp.eq.f32.partialorder %v2992_v8, inf  ;;  %v3056_v53 = vadd.f32 3e-08, %v933_v44 }
  0x7c   : > { %v2331_v33 = vpop.eup %2330  ;;  %v979_v62 = vadd.f32 %v977_v57, %v975_v41  ;;  %v980_v36 = vadd.f32 %v978_v29, %v976_v13  ;;  %v788_v9 = vmul.f32 %v786_v39, %v786_v39  ;;  %vm841_vm3 = vcmp.eq.f32.partialorder %v2992_v8, 0.0  ;;  %v2152_v44 = vld [vmem:[%s2627_s11 + $0x26] ss:$0 sm:$0xff]  ;;  %v2155_v39 = vld [vmem:[%s2632_s14 + $0x16] ss:$0 sm:$0xff] }
  0x7d   : > { %v2333_v48 = vpop.eup %2332  ;;  %v842_v15 = vand.u32 2147483648, %v2992_v8  ;;  %vm879_vm4 = vcmp.eq.f32.partialorder %v3001_v28, inf  ;;  %v793_v49 = vmul.f32 %v2764_v2, %v787_v12  ;;  %vm881_vm5 = vcmp.eq.f32.partialorder %v3001_v28, 0.0 }
  0x7e   : > { %v3065_v52 = vadd.f32 3e-08, %v979_v62  ;;  %v3067_v20 = vadd.f32 3e-08, %v980_v36  ;;  %v831_v4 = vmul.f32 %v2327_v51, %v2982_v19  ;;  %v838_v56 = vmul.f32 %v2329_v32, %v2992_v8 }
  0x7f   : > { %v878_v45 = vmul.f32 %v2331_v33, %v3001_v28  ;;  %2334 = vrsqrt.f32 %v3053_v27  ;;  %v885_v58 = vmul.f32 %v2333_v48, %v3003_v35  ;;  %vm886_vm6 = vcmp.eq.f32.partialorder %v3003_v35, inf }
  0x80   : > { %2336 = vrsqrt.f32 %v3056_v53  ;;  %v1014_v22 = vsub.f32 %v2635_v0, %v2148_v3  ;;  %v1015_v61 = vsub.f32 %v2638_v1, %v2148_v3  ;;  %v1021_v60 = vsub.f32 %v2644_v5, %v2150_v21  ;;  %v2157_v3 = vld [vmem:[%s2632_s14 + $0x26] ss:$0 sm:$0xff] }
  0x81   : > { %2338 = vrsqrt.f32 %v3065_v52  ;;  %v1022_v23 = vsub.f32 %v2647_v6, %v2150_v21  ;;  %v794_v7 = vmul.f32 %v2764_v2, %v788_v9  ;;  %v882_v14 = vand.u32 2147483648, %v3001_v28 }
  0x82   : > { %vm888_vm7 = vcmp.eq.f32.partialorder %v3003_v35, 0.0  ;;  %2340 = vrsqrt.f32 %v3067_v20  ;;  %v833_v0 = vsel %vm832_vm0, %v2982_v19, %v831_v4  ;;  %v840_v1 = vsel %vm839_vm2, %v2992_v8, %v838_v56 }
  0x83   : > { %v880_v5 = vsel %vm879_vm4, %v3001_v28, %v878_v45  ;;  %v889_v6 = vand.u32 2147483648, %v3003_v35  ;;  %v887_v2 = vsel %vm886_vm6, %v3003_v35, %v885_v58  ;;  %v1028_v26 = vsub.f32 %v2653_v10, %v2152_v44 }
  0x84   : > { %v1029_v63 = vsub.f32 %v2656_v11, %v2152_v44  ;;  %v1030_v57 = vmul.f32 %v1014_v22, %v1014_v22  ;;  %v1031_v51 = vmul.f32 %v1015_v61, %v1015_v61  ;;  %v1032_v12 = vmul.f32 %v1021_v60, %v1021_v60 }
  0x85   : > { %v1033_v41 = vmul.f32 %v1022_v23, %v1022_v23  ;;  %v1061_v13 = vsub.f32 %v2662_v17, %v2153_v50  ;;  %v3104_v29 = vadd.f32 %v793_v49, %v689_v47  ;;  %v3106_v32 = vadd.f32 %v794_v7, %v690_v38 }
  0x86   : > { %v836_v33 = vsel %vm834_vm1, %v835_v16, %v833_v0  ;;  %v843_v10 = vsel %vm841_vm3, %v842_v15, %v840_v1  ;;  %vm938_vm8 = vcmp.eq.f32.partialorder %v3053_v27, inf  ;;  %v941_v11 = vand.u32 2147483648, %v3053_v27 }
  0x87   : > { %v1062_v62 = vsub.f32 %v2665_v18, %v2153_v50  ;;  %v1068_v36 = vsub.f32 %v2671_v24, %v2155_v39  ;;  %v883_v17 = vsel %vm881_vm5, %v882_v14, %v880_v5  ;;  %v890_v47 = vsel %vm888_vm7, %v889_v6, %v887_v2  ;;  %v2158_v14 = vld [vmem:[%s2627_s11 + $0x7] ss:$0 sm:$0xff] }
  0x88   : > { %v1036_v19 = vmul.f32 %v1028_v26, %v1028_v26  ;;  %v1069_v38 = vsub.f32 %v2674_v25, %v2155_v39  ;;  %vm940_vm9 = vcmp.eq.f32.partialorder %v3053_v27, 0.0  ;;  %v1034_v16 = vadd.f32 %v1032_v12, %v1030_v57  ;;  %v2160_v26 = vld [vmem:[%s2627_s11 + $0x17] ss:$0 sm:$0xff] }
  0x89   : > { %v2335_v8 = vpop.eup %2334  ;;  %v1035_v48 = vadd.f32 %v1033_v41, %v1031_v51  ;;  %v1037_v9 = vmul.f32 %v1029_v63, %v1029_v63  ;;  %v1077_v15 = vmul.f32 %v1061_v13, %v1061_v13  ;;  %v1075_v24 = vsub.f32 %v2680_v30, %v2157_v3  ;;  %v3146_v51 = vld [vmem:[%s2627_s11] sm:$0xff] }
  0x8a   : > { %v2337_v18 = vpop.eup %2336  ;;  %v1078_v21 = vmul.f32 %v1062_v62, %v1062_v62  ;;  %v1079_v49 = vmul.f32 %v1068_v36, %v1068_v36  ;;  %v1080_v28 = vmul.f32 %v1069_v38, %v1069_v38  ;;  %v891_v56 = vsub.f32 %v836_v33, %v883_v17  ;;  %v2162_v41 = vld [vmem:[%s2627_s11 + $0x27] ss:$0 sm:$0xff]  ;;  %v3168_v38 = vld [vmem:[%s2627_s11 + $0x18] sm:$0x3f] }
  0x8b   : > { %v2339_v4 = vpop.eup %2338  ;;  %vm945_vm10 = vcmp.eq.f32.partialorder %v3056_v53, inf  ;;  %vm947_vm11 = vcmp.eq.f32.partialorder %v3056_v53, 0.0  ;;  %v1076_v25 = vsub.f32 %v2683_v31, %v2157_v3  ;;  %v892_v45 = vsub.f32 %v843_v10, %v890_v47  ;;  %v3160_v3 = vld [vmem:[%s2627_s11 + $0x8] sm:$0x3f]  ;;  %v3164_v47 = vld [vmem:[%s2627_s11 + $0x10] sm:$0xff] }
  0x8c   : > { %v2341_v35 = vpop.eup %2340  ;;  %v948_v58 = vand.u32 2147483648, %v3056_v53  ;;  %vm985_vm12 = vcmp.eq.f32.partialorder %v3065_v52, inf  ;;  %vm987_vm13 = vcmp.eq.f32.partialorder %v3065_v52, 0.0  ;;  %v937_v30 = vmul.f32 %v2335_v8, %v3053_v27 }
  0x8d   : > { %v944_v22 = vmul.f32 %v2337_v18, %v3056_v53  ;;  %v1038_v61 = vadd.f32 %v1036_v19, %v1034_v16  ;;  %v1081_v60 = vadd.f32 %v1079_v49, %v1077_v15  ;;  %v984_v23 = vmul.f32 %v2339_v4, %v3065_v52  ;;  %v3181_v18 = vld [vmem:[%s2627_s11 + $0x28] sm:$0x3f] }
  0x8e   : > { %v1039_v44 = vadd.f32 %v1037_v9, %v1035_v48  ;;  %v1082_v31 = vadd.f32 %v1080_v28, %v1078_v21  ;;  %v1083_v7 = vmul.f32 %v1075_v24, %v1075_v24  ;;  %v893_v50 = vmul.f32 %v891_v56, %v891_v56  ;;  %v3177_v9 = vld [vmem:[%s2627_s11 + $0x20] sm:$0xff] }
  0x8f   : > { %v988_v0 = vand.u32 2147483648, %v3065_v52  ;;  %v991_v1 = vmul.f32 %v2341_v35, %v3067_v20  ;;  %v1084_v5 = vmul.f32 %v1076_v25, %v1076_v25  ;;  %v894_v6 = vmul.f32 %v892_v45, %v892_v45 }
  0x90   : > { %vm992_vm14 = vcmp.eq.f32.partialorder %v3067_v20, inf  ;;  %vm994_vm15 = vcmp.eq.f32.partialorder %v3067_v20, 0.0  ;;  %v995_v2 = vand.u32 2147483648, %v3067_v20  ;;  %v939_v63 = vsel %vm938_vm8, %v3053_v27, %v937_v30  ;;  %v2163_v27 = vld [vmem:[%s2632_s14 + $0x7] ss:$0 sm:$0xff] }
  0x91   : > { %v3143_v57 = vadd.f32 3e-08, %v1038_v61  ;;  %v1085_v39 = vadd.f32 %v1083_v7, %v1081_v60  ;;  %v1120_v12 = vsub.f32 %v3146_v51, %v2158_v14  ;;  %v946_v13 = vsel %vm945_vm10, %v3056_v53, %v944_v22  ;;  %v2165_v30 = vld [vmem:[%s2632_s14 + $0x17] ss:$0 sm:$0xff]  ;;  %v2167_v60 = vld [vmem:[%s2632_s14 + $0x27] ss:$0 sm:$0xff] }
  0x92   : > { %v986_v33 = vsel %vm985_vm12, %v3065_v52, %v984_v23  ;;  %v3156_v10 = vadd.f32 3e-08, %v1039_v44  ;;  %v1086_v62 = vadd.f32 %v1084_v5, %v1082_v31  ;;  %v993_v36 = vsel %vm992_vm14, %v3067_v20, %v991_v1  ;;  %v3207_v31 = vld [vmem:[%s2632_s14 + $0x8] sm:$0x3f] }
  0x93   : > { %v1121_v17 = vsub.f32 %v3160_v3, %v2158_v14  ;;  %v1127_v19 = vsub.f32 %v3164_v47, %v2160_v26  ;;  %v1128_v8 = vsub.f32 %v3168_v38, %v2160_v26  ;;  %v899_v16 = vmul.f32 %v3048_v42, %v893_v50  ;;  %v3211_v14 = vld [vmem:[%s2632_s14 + $0x10] sm:$0xff] }
  0x94   : > { %v942_v48 = vsel %vm940_vm9, %v941_v11, %v939_v63  ;;  %v1134_v15 = vsub.f32 %v3177_v9, %v2162_v41  ;;  %v1135_v24 = vsub.f32 %v3181_v18, %v2162_v41  ;;  %v989_v21 = vsel %vm987_vm13, %v988_v0, %v986_v33  ;;  %v3215_v0 = vld [vmem:[%s2632_s14 + $0x18] sm:$0x3f]  ;;  %v3223_v63 = vld [vmem:[%s2632_s14 + $0x28] sm:$0x3f] }
  0x95   : > { %2342 = vrsqrt.f32 %v3143_v57  ;;  %v3187_v49 = vadd.f32 3e-08, %v1085_v39  ;;  %v1136_v28 = vmul.f32 %v1120_v12, %v1120_v12  ;;  %v949_v11 = vsel %vm947_vm11, %v948_v58, %v946_v13  ;;  %v3200_v58 = vld [vmem:[%s2632_s14] sm:$0xff] }
  0x96   : > { %v996_v4 = vsel %vm994_vm15, %v995_v2, %v993_v36  ;;  %2344 = vrsqrt.f32 %v3156_v10  ;;  %v3195_v56 = vadd.f32 3e-08, %v1086_v62  ;;  %v900_v52 = vmul.f32 %v3048_v42, %v894_v6  ;;  %v3219_v2 = vld [vmem:[%s2632_s14 + $0x20] sm:$0xff] }
  0x97   : > { %v1137_v25 = vmul.f32 %v1121_v17, %v1121_v17  ;;  %v1138_v35 = vmul.f32 %v1127_v19, %v1127_v19  ;;  %v1139_v45 = vmul.f32 %v1128_v8, %v1128_v8  ;;  %v997_v22 = vsub.f32 %v942_v48, %v989_v21 }
  0x98   : > { %v1142_v61 = vmul.f32 %v1134_v15, %v1134_v15  ;;  %v1143_v53 = vmul.f32 %v1135_v24, %v1135_v24  ;;  %v1167_v20 = vsub.f32 %v3200_v58, %v2163_v27  ;;  %v998_v23 = vsub.f32 %v949_v11, %v996_v4 }
  0x99   : > { %2346 = vrsqrt.f32 %v3187_v49  ;;  %v1140_v42 = vadd.f32 %v1138_v35, %v1136_v28  ;;  %v1141_v44 = vadd.f32 %v1139_v45, %v1137_v25  ;;  %v1168_v7 = vsub.f32 %v3207_v31, %v2163_v27  ;;  %v2170_v35 = vld [vmem:[%s2627_s11 + $0x18] ss:$0 sm:$0xff] }
  0x9a   : > { %2348 = vrsqrt.f32 %v3195_v56  ;;  %v1174_v50 = vsub.f32 %v3211_v14, %v2165_v30  ;;  %v1175_v1 = vsub.f32 %v3215_v0, %v2165_v30  ;;  %v1181_v26 = vsub.f32 %v3219_v2, %v2167_v60 }
  0x9b   : > { %v1144_v5 = vadd.f32 %v1142_v61, %v1140_v42  ;;  %v1145_v6 = vadd.f32 %v1143_v53, %v1141_v44  ;;  %v1182_v39 = vsub.f32 %v3223_v63, %v2167_v60  ;;  %v1183_v12 = vmul.f32 %v1167_v20, %v1167_v20 }
  0x9c   : > { %v1184_v41 = vmul.f32 %v1168_v7, %v1168_v7  ;;  %v1185_v13 = vmul.f32 %v1174_v50, %v1174_v50  ;;  %v1186_v33 = vmul.f32 %v1175_v1, %v1175_v1  ;;  %v999_v62 = vmul.f32 %v997_v22, %v997_v22 }
  0x9d   : > { %v1004_v36 = vrot.slane %v2730_v40, %v1003_v55  ;;  %v1189_v17 = vmul.f32 %v1181_v26, %v1181_v26  ;;  %v3229_v19 = vadd.f32 3e-08, %v1144_v5  ;;  %v1190_v15 = vmul.f32 %v1182_v39, %v1182_v39 }
  0x9e   : > { %v1187_v8 = vadd.f32 %v1185_v13, %v1183_v12  ;;  %v1188_v48 = vadd.f32 %v1186_v33, %v1184_v41  ;;  %v901_v21 = vadd.f32 %v899_v16, %v3104_v29  ;;  %v3233_v28 = vadd.f32 %v900_v52, %v3106_v32  ;;  %v2168_v52 = vld [vmem:[%s2627_s11 + $0x8] ss:$0 sm:$0xff] }
  0x9f   : > { %v2343_v24 = vpop.eup %2342  ;;  %v1000_v11 = vmul.f32 %v998_v23, %v998_v23  ;;  %vm1044_vm0 = vcmp.eq.f32.partialorder %v3143_v57, inf  ;;  %v1109_v40 = vsub.s32 6, %v2697_v59  ;;  %v3237_v4 = vadd.f32 3e-08, %v1145_v6  ;;  %v3254_v23 = vld [vmem:[%s2721_s24] sm:$0xff] }
  0xa0   : > { %v2345_v27 = vpop.eup %2344  ;;  %vm1046_vm1 = vcmp.eq.f32.partialorder %v3143_v57, 0.0  ;;  %v1047_v25 = vand.u32 2147483648, %v3143_v57  ;;  %vm1051_vm2 = vcmp.eq.f32.partialorder %v3156_v10, inf  ;;  %v1191_v29 = vadd.f32 %v1189_v17, %v1187_v8  ;;  %v2172_v6 = vld [vmem:[%s2627_s11 + $0x28] ss:$0 sm:$0xff] }
  0xa1   : > { %v1005_v16 = vmul.f32 %v1004_v36, %v999_v62  ;;  %vm1053_vm3 = vcmp.eq.f32.partialorder %v3156_v10, 0.0  ;;  %2350 = vrsqrt.f32 %v3229_v19  ;;  %v1192_v32 = vadd.f32 %v1190_v15, %v1188_v48  ;;  %v2173_v62 = vld [vmem:[%s2632_s14 + $0x8] ss:$0 sm:$0xff]  ;;  %v2175_v15 = vld [vmem:[%s2632_s14 + $0x18] ss:$0 sm:$0xff] }
  0xa2   : > { %v1043_v30 = vmul.f32 %v2343_v24, %v3143_v57  ;;  %v1050_v22 = vmul.f32 %v2345_v27, %v3156_v10  ;;  %v1054_v61 = vand.u32 2147483648, %v3156_v10  ;;  %v3249_v53 = vadd.f32 3e-08, %v1191_v29 }
  0xa3   : > { %v2347_v45 = vpop.eup %2346  ;;  %v3251_v60 = vmul.f32 %v1004_v36, %v1000_v11  ;;  %v3257_v42 = vrot.slane %v3254_v23, %v1109_v40  ;;  %2352 = vrsqrt.f32 %v3237_v4  ;;  %v3260_v44 = vadd.f32 3e-08, %v1192_v32 }
  0xa4   : > { %v2349_v20 = vpop.eup %2348  ;;  %vm1091_vm4 = vcmp.eq.f32.partialorder %v3187_v49, inf  ;;  %2354 = vrsqrt.f32 %v3249_v53  ;;  %v1226_v7 = vsub.f32 %v3146_v51, %v2168_v52  ;;  %v1233_v50 = vsub.f32 %v3164_v47, %v2170_v35 }
  0xa5   : > { %v3266_v1 = vadd.f32 %v1005_v16, %v901_v21  ;;  %vm1093_vm5 = vcmp.eq.f32.partialorder %v3187_v49, 0.0  ;;  %v1094_v5 = vand.u32 2147483648, %v3187_v49  ;;  %2356 = vrsqrt.f32 %v3260_v44 }
  0xa6   : > { %v1045_v26 = vsel %vm1044_vm0, %v3143_v57, %v1043_v30  ;;  %v1052_v39 = vsel %vm1051_vm2, %v3156_v10, %v1050_v22  ;;  %v1090_v12 = vmul.f32 %v2347_v45, %v3187_v49  ;;  %v1097_v41 = vmul.f32 %v2349_v20, %v3195_v56 }
  0xa7   : > { %vm1098_vm6 = vcmp.eq.f32.partialorder %v3195_v56, inf  ;;  %vm1100_vm7 = vcmp.eq.f32.partialorder %v3195_v56, 0.0  ;;  %v1101_v13 = vand.u32 2147483648, %v3195_v56  ;;  %v1227_v33 = vsub.f32 %v3160_v3, %v2168_v52 }
  0xa8   : > { %v1234_v36 = vsub.f32 %v3168_v38, %v2170_v35  ;;  %v1240_v17 = vsub.f32 %v3177_v9, %v2172_v6  ;;  %v1242_v8 = vmul.f32 %v1226_v7, %v1226_v7  ;;  %v1244_v48 = vmul.f32 %v1233_v50, %v1233_v50 }
  0xa9   : > { %v1048_v24 = vsel %vm1046_vm1, %v1047_v25, %v1045_v26  ;;  %v1055_v21 = vsel %vm1053_vm3, %v1054_v61, %v1052_v39  ;;  %vm1150_vm8 = vcmp.eq.f32.partialorder %v3229_v19, inf  ;;  %v1153_v27 = vand.u32 2147483648, %v3229_v19  ;;  %v2177_v25 = vld [vmem:[%s2632_s14 + $0x28] ss:$0 sm:$0xff] }
  0xaa   : > { %v1092_v11 = vsel %vm1091_vm4, %v3187_v49, %v1090_v12  ;;  %v1099_v40 = vsel %vm1098_vm6, %v3195_v56, %v1097_v41  ;;  %vm1152_vm9 = vcmp.eq.f32.partialorder %v3229_v19, 0.0  ;;  %vm1157_vm10 = vcmp.eq.f32.partialorder %v3237_v4, inf }
  0xab   : > { %v1273_v57 = vsub.f32 %v3200_v58, %v2173_v62  ;;  %v2351_v29 = vpop.eup %2350  ;;  %v1241_v10 = vsub.f32 %v3181_v18, %v2172_v6  ;;  %v1274_v16 = vsub.f32 %v3207_v31, %v2173_v62  ;;  %v1280_v32 = vsub.f32 %v3211_v14, %v2175_v15 }
  0xac   : > { %v1281_v52 = vsub.f32 %v3215_v0, %v2175_v15  ;;  %v1243_v35 = vmul.f32 %v1227_v33, %v1227_v33  ;;  %v1245_v45 = vmul.f32 %v1234_v36, %v1234_v36  ;;  %v1246_v30 = vadd.f32 %v1244_v48, %v1242_v8 }
  0xad   : > { %v1248_v22 = vmul.f32 %v1240_v17, %v1240_v17  ;;  %v2353_v61 = vpop.eup %2352  ;;  %v1095_v20 = vsel %vm1093_vm5, %v1094_v5, %v1092_v11  ;;  %v1102_v7 = vsel %vm1100_vm7, %v1101_v13, %v1099_v40  ;;  %vm1159_vm11 = vcmp.eq.f32.partialorder %v3237_v4, 0.0 }
  0xae   : > { %v1160_v50 = vand.u32 2147483648, %v3237_v4  ;;  %v1287_v6 = vsub.f32 %v3219_v2, %v2177_v25  ;;  %v2355_v26 = vpop.eup %2354  ;;  %v1149_v39 = vmul.f32 %v2351_v29, %v3229_v19  ;;  %vm1197_vm12 = vcmp.eq.f32.partialorder %v3249_v53, inf }
  0xaf   : > { %v1288_v12 = vsub.f32 %v3223_v63, %v2177_v25  ;;  %v1289_v41 = vmul.f32 %v1273_v57, %v1273_v57  ;;  %v2357_v33 = vpop.eup %2356  ;;  %v1196_v49 = vmul.f32 %v2355_v26, %v3249_v53  ;;  %v1290_v5 = vmul.f32 %v1274_v16, %v1274_v16 }
  0xb0   : > { %v1291_v56 = vmul.f32 %v1280_v32, %v1280_v32  ;;  %v1292_v13 = vmul.f32 %v1281_v52, %v1281_v52  ;;  %v1103_v62 = vsub.f32 %v1048_v24, %v1095_v20  ;;  %v1247_v36 = vadd.f32 %v1245_v45, %v1243_v35  ;;  %v2178_v32 = vld [vmem:[%s2627_s11 + $0x9] ss:$0 sm:$0xff]  ;;  %v2180_v52 = vld [vmem:[%s2627_s11 + $0x19] ss:$0 sm:$0xff] }
  0xb1   : > { %v1249_v17 = vmul.f32 %v1241_v10, %v1241_v10  ;;  %v1250_v8 = vadd.f32 %v1248_v22, %v1246_v30  ;;  %v1156_v48 = vmul.f32 %v2353_v61, %v3237_v4  ;;  %vm1199_vm13 = vcmp.eq.f32.partialorder %v3249_v53, 0.0 }
  0xb2   : > { %v1200_v15 = vand.u32 2147483648, %v3249_v53  ;;  %v1295_v11 = vmul.f32 %v1287_v6, %v1287_v6  ;;  %v1151_v40 = vsel %vm1150_vm8, %v3229_v19, %v1149_v39  ;;  %v1198_v24 = vsel %vm1197_vm12, %v3249_v53, %v1196_v49 }
  0xb3   : > { %v1203_v57 = vmul.f32 %v2357_v33, %v3260_v44  ;;  %v1296_v25 = vmul.f32 %v1288_v12, %v1288_v12  ;;  %v1104_v29 = vsub.f32 %v1055_v21, %v1102_v7  ;;  %vm1204_vm14 = vcmp.eq.f32.partialorder %v3260_v44, inf  ;;  %v2182_v33 = vld [vmem:[%s2627_s11 + $0x29] ss:$0 sm:$0xff] }
  0xb4   : > { %v1293_v10 = vadd.f32 %v1291_v56, %v1289_v41  ;;  %v1294_v16 = vadd.f32 %v1292_v13, %v1290_v5  ;;  %vm1206_vm15 = vcmp.eq.f32.partialorder %v3260_v44, 0.0  ;;  %v1207_v35 = vand.u32 2147483648, %v3260_v44 }
  0xb5   : > { %v1251_v45 = vadd.f32 %v1249_v17, %v1247_v36  ;;  %v3332_v30 = vadd.f32 3e-08, %v1250_v8  ;;  %v1154_v22 = vsel %vm1152_vm9, %v1153_v27, %v1151_v40  ;;  %v1158_v21 = vsel %vm1157_vm10, %v3237_v4, %v1156_v48  ;;  %v2183_v17 = vld [vmem:[%s2632_s14 + $0x9] ss:$0 sm:$0xff] }
  0xb6   : > { %v1201_v61 = vsel %vm1199_vm13, %v1200_v15, %v1198_v24  ;;  %v1297_v20 = vadd.f32 %v1295_v11, %v1293_v10  ;;  %v1205_v7 = vsel %vm1204_vm14, %v3260_v44, %v1203_v57  ;;  %v1298_v6 = vadd.f32 %v1296_v25, %v1294_v16  ;;  %v2187_v57 = vld [vmem:[%s2632_s14 + $0x29] ss:$0 sm:$0xff] }
  0xb7   : > { %v1332_v26 = vsub.f32 %v3146_v51, %v2178_v32  ;;  %v1339_v39 = vsub.f32 %v3164_v47, %v2180_v52  ;;  %v1105_v12 = vmul.f32 %v1103_v62, %v1103_v62  ;;  %v1106_v41 = vmul.f32 %v1104_v29, %v1104_v29 }
  0xb8   : > { %v1215_v19 = vsub.s32 7, %v2697_v59  ;;  %v3345_v27 = vadd.f32 3e-08, %v1297_v20  ;;  %v1008_v53 = vadd.f32 %v3251_v60, %v3233_v28  ;;  %v1161_v49 = vsel %vm1159_vm11, %v1160_v50, %v1158_v21  ;;  %v2185_v50 = vld [vmem:[%s2632_s14 + $0x19] ss:$0 sm:$0xff] }
  0xb9   : > { %v3352_v5 = vadd.f32 3e-08, %v1251_v45  ;;  %2358 = vrsqrt.f32 %v3332_v30  ;;  %v1208_v56 = vsel %vm1206_vm15, %v1207_v35, %v1205_v7  ;;  %v1209_v13 = vsub.f32 %v1154_v22, %v1201_v61  ;;  %v3379_v20 = vld [vmem:[%s2721_s24 + $0x8] sm:$0x3f] }
  0xba   : > { %v1333_v62 = vsub.f32 %v3160_v3, %v2178_v32  ;;  %v1340_v36 = vsub.f32 %v3168_v38, %v2180_v52  ;;  %v3360_v8 = vadd.f32 3e-08, %v1298_v6  ;;  %v1346_v28 = vsub.f32 %v3177_v9, %v2182_v33 }
  0xbb   : > { %v1348_v4 = vmul.f32 %v1332_v26, %v1332_v26  ;;  %v1350_v60 = vmul.f32 %v1339_v39, %v1339_v39  ;;  %v1111_v48 = vmul.f32 %v3257_v42, %v1105_v12  ;;  %v1112_v15 = vmul.f32 %v3257_v42, %v1106_v41 }
  0xbc   : > { %v1216_v44 = vrot.slane %v3254_v23, %v1215_v19  ;;  %2360 = vrsqrt.f32 %v3345_v27  ;;  %v1210_v11 = vsub.f32 %v1161_v49, %v1208_v56  ;;  %v1347_v40 = vsub.f32 %v3181_v18, %v2182_v33 }
  0xbd   : > { %2362 = vrsqrt.f32 %v3352_v5  ;;  %v1379_v24 = vsub.f32 %v3200_v58, %v2183_v17  ;;  %v1349_v25 = vmul.f32 %v1333_v62, %v1333_v62  ;;  %v1351_v29 = vmul.f32 %v1340_v36, %v1340_v36 }
  0xbe   : > { %v1380_v10 = vsub.f32 %v3207_v31, %v2183_v17  ;;  %v1386_v16 = vsub.f32 %v3211_v14, %v2185_v50  ;;  %v1211_v42 = vmul.f32 %v1209_v13, %v1209_v13  ;;  %2364 = vrsqrt.f32 %v3360_v8 }
  0xbf   : > { %v1352_v32 = vadd.f32 %v1350_v60, %v1348_v4  ;;  %v1354_v52 = vmul.f32 %v1346_v28, %v1346_v28  ;;  %v1387_v35 = vsub.f32 %v3215_v0, %v2185_v50  ;;  %v1393_v45 = vsub.f32 %v3219_v2, %v2187_v57  ;;  %v2188_v50 = vld [vmem:[%s2627_s11 + $0xa] ss:$0 sm:$0xff] }
  0xc0   : > { %v1394_v22 = vsub.f32 %v3223_v63, %v2187_v57  ;;  %v1395_v21 = vmul.f32 %v1379_v24, %v1379_v24  ;;  %v1397_v61 = vmul.f32 %v1386_v16, %v1386_v16  ;;  %v1113_v7 = vadd.f32 %v1111_v48, %v3266_v1  ;;  %v2190_v48 = vld [vmem:[%s2627_s11 + $0x1a] ss:$0 sm:$0xff] }
  0xc1   : > { %v1353_v6 = vadd.f32 %v1351_v29, %v1349_v25  ;;  %v1355_v26 = vmul.f32 %v1347_v40, %v1347_v40  ;;  %v1396_v39 = vmul.f32 %v1380_v10, %v1380_v10  ;;  %v1114_v41 = vadd.f32 %v1112_v15, %v1008_v53 }
  0xc2   : > { %v1212_v19 = vmul.f32 %v1210_v11, %v1210_v11  ;;  %v1217_v33 = vmul.f32 %v1216_v44, %v1211_v42  ;;  %v1356_v49 = vadd.f32 %v1354_v52, %v1352_v32  ;;  %v1398_v56 = vmul.f32 %v1387_v35, %v1387_v35  ;;  %v2192_v32 = vld [vmem:[%s2627_s11 + $0x2a] ss:$0 sm:$0xff] }
  0xc3   : > { %v2359_v12 = vpop.eup %2358  ;;  %v1399_v13 = vadd.f32 %v1397_v61, %v1395_v21  ;;  %v1401_v62 = vmul.f32 %v1393_v45, %v1393_v45  ;;  %v1402_v36 = vmul.f32 %v1394_v22, %v1394_v22  ;;  %vm1256_vm0 = vcmp.eq.f32.partialorder %v3332_v30, inf }
  0xc4   : > { %vm1258_vm1 = vcmp.eq.f32.partialorder %v3332_v30, 0.0  ;;  %v1259_v1 = vand.u32 2147483648, %v3332_v30  ;;  %v3388_v17 = vrot.slane %v3379_v20, %v473_v34  ;;  %vm1263_vm2 = vcmp.eq.f32.partialorder %v3352_v5, inf }
  0xc5   : > { %v1357_v28 = vadd.f32 %v1355_v26, %v1353_v6  ;;  %v1400_v4 = vadd.f32 %v1398_v56, %v1396_v39  ;;  %v1403_v60 = vadd.f32 %v1401_v62, %v1399_v13  ;;  %v1218_v11 = vmul.f32 %v1216_v44, %v1212_v19  ;;  %v2193_v56 = vld [vmem:[%s2632_s14 + $0xa] ss:$0 sm:$0xff] }
  0xc6   : > { %v2361_v53 = vpop.eup %2360  ;;  %vm1265_vm3 = vcmp.eq.f32.partialorder %v3352_v5, 0.0  ;;  %v1266_v40 = vand.u32 2147483648, %v3352_v5  ;;  %v3395_v24 = vadd.f32 3e-08, %v1356_v49  ;;  %v3397_v57 = vadd.f32 %v1217_v33, %v1113_v7 }
  0xc7   : > { %v2363_v15 = vpop.eup %2362  ;;  %v1255_v34 = vmul.f32 %v2359_v12, %v3332_v30  ;;  %v1404_v25 = vadd.f32 %v1402_v36, %v1400_v4  ;;  %v3400_v29 = vadd.f32 3e-08, %v1403_v60  ;;  %v1302_v16 = vmul.f32 %v2361_v53, %v3345_v27  ;;  %v2197_v4 = vld [vmem:[%s2632_s14 + $0x2a] ss:$0 sm:$0xff] }
  0xc8   : > { %v2365_v10 = vpop.eup %2364  ;;  %vm1303_vm4 = vcmp.eq.f32.partialorder %v3345_v27, inf  ;;  %v1438_v44 = vsub.f32 %v3146_v51, %v2188_v50  ;;  %v1445_v42 = vsub.f32 %v3164_v47, %v2190_v48  ;;  %vm1305_vm5 = vcmp.eq.f32.partialorder %v3345_v27, 0.0 }
  0xc9   : > { %v1306_v52 = vand.u32 2147483648, %v3345_v27  ;;  %vm1310_vm6 = vcmp.eq.f32.partialorder %v3360_v8, inf  ;;  %v3410_v35 = vadd.f32 3e-08, %v1357_v28  ;;  %v1262_v45 = vmul.f32 %v2363_v15, %v3352_v5  ;;  %v2195_v28 = vld [vmem:[%s2632_s14 + $0x1a] ss:$0 sm:$0xff] }
  0xca   : > { %2366 = vrsqrt.f32 %v3395_v24  ;;  %v1439_v22 = vsub.f32 %v3160_v3, %v2188_v50  ;;  %v1446_v21 = vsub.f32 %v3168_v38, %v2190_v48  ;;  %v1257_v61 = vsel %vm1256_vm0, %v3332_v30, %v1255_v34 }
  0xcb   : > { %v1309_v7 = vmul.f32 %v2365_v10, %v3360_v8  ;;  %v3420_v6 = vadd.f32 3e-08, %v1404_v25  ;;  %2368 = vrsqrt.f32 %v3400_v29  ;;  %v1304_v26 = vsel %vm1303_vm4, %v3345_v27, %v1302_v16 }
  0xcc   : > { %v1452_v39 = vsub.f32 %v3177_v9, %v2192_v32  ;;  %v1454_v12 = vmul.f32 %v1438_v44, %v1438_v44  ;;  %v1456_v19 = vmul.f32 %v1445_v42, %v1445_v42  ;;  %v3427_v33 = vadd.f32 %v1218_v11, %v1114_v41 }
  0xcd   : > { %vm1312_vm7 = vcmp.eq.f32.partialorder %v3360_v8, 0.0  ;;  %v1313_v49 = vand.u32 2147483648, %v3360_v8  ;;  %2370 = vrsqrt.f32 %v3410_v35  ;;  %v1264_v13 = vsel %vm1263_vm2, %v3352_v5, %v1262_v45 }
  0xce   : > { %v1453_v62 = vsub.f32 %v3181_v18, %v2192_v32  ;;  %v1455_v36 = vmul.f32 %v1439_v22, %v1439_v22  ;;  %v1457_v53 = vmul.f32 %v1446_v21, %v1446_v21  ;;  %v1260_v41 = vsel %vm1258_vm1, %v1259_v1, %v1257_v61 }
  0xcf   : > { %v1307_v60 = vsel %vm1305_vm5, %v1306_v52, %v1304_v26  ;;  %v1311_v50 = vsel %vm1310_vm6, %v3360_v8, %v1309_v7  ;;  %2372 = vrsqrt.f32 %v3420_v6  ;;  %v1458_v48 = vadd.f32 %v1456_v19, %v1454_v12 }
  0xd0   : > { %v1460_v15 = vmul.f32 %v1452_v39, %v1452_v39  ;;  %v1485_v11 = vsub.f32 %v3200_v58, %v2193_v56  ;;  %v1486_v34 = vsub.f32 %v3207_v31, %v2193_v56  ;;  %v1267_v25 = vsel %vm1265_vm3, %v1266_v40, %v1264_v13  ;;  %v2200_v56 = vld [vmem:[%s2627_s11 + $0x1b] ss:$0 sm:$0xff] }
  0xd1   : > { %v1492_v30 = vsub.f32 %v3211_v14, %v2195_v28  ;;  %v1493_v27 = vsub.f32 %v3215_v0, %v2195_v28  ;;  %v1499_v1 = vsub.f32 %v3219_v2, %v2197_v4  ;;  %vm1362_vm8 = vcmp.eq.f32.partialorder %v3395_v24, inf }
  0xd2   : > { %v1459_v10 = vadd.f32 %v1457_v53, %v1455_v36  ;;  %v1461_v16 = vmul.f32 %v1453_v62, %v1453_v62  ;;  %v1500_v44 = vsub.f32 %v3223_v63, %v2197_v4  ;;  %v1314_v42 = vsel %vm1312_vm7, %v1313_v49, %v1311_v50  ;;  %v2198_v49 = vld [vmem:[%s2627_s11 + $0xb] ss:$0 sm:$0xff] }
  0xd3   : > { %v1315_v32 = vsub.f32 %v1260_v41, %v1307_v60  ;;  %v1501_v52 = vmul.f32 %v1485_v11, %v1485_v11  ;;  %v1502_v45 = vmul.f32 %v1486_v34, %v1486_v34  ;;  %vm1364_vm9 = vcmp.eq.f32.partialorder %v3395_v24, 0.0 }
  0xd4   : > { %v2367_v5 = vpop.eup %2366  ;;  %v1365_v40 = vand.u32 2147483648, %v3395_v24  ;;  %vm1369_vm10 = vcmp.eq.f32.partialorder %v3410_v35, inf  ;;  %v1462_v22 = vadd.f32 %v1460_v15, %v1458_v48  ;;  %v1372_v61 = vand.u32 2147483648, %v3410_v35 }
  0xd5   : > { %v2369_v21 = vpop.eup %2368  ;;  %v1503_v7 = vmul.f32 %v1492_v30, %v1492_v30  ;;  %v1504_v26 = vmul.f32 %v1493_v27, %v1493_v27  ;;  %v1507_v8 = vmul.f32 %v1499_v1, %v1499_v1  ;;  %v1316_v39 = vsub.f32 %v1267_v25, %v1314_v42  ;;  %v2202_v1 = vld [vmem:[%s2627_s11 + $0x2b] ss:$0 sm:$0xff] }
  0xd6   : > { %vm1371_vm11 = vcmp.eq.f32.partialorder %v3410_v35, 0.0  ;;  %vm1409_vm12 = vcmp.eq.f32.partialorder %v3400_v29, inf  ;;  %v1463_v12 = vadd.f32 %v1461_v16, %v1459_v10  ;;  %v1508_v19 = vmul.f32 %v1500_v44, %v1500_v44 }
  0xd7   : > { %v2371_v13 = vpop.eup %2370  ;;  %v1317_v62 = vmul.f32 %v1315_v32, %v1315_v32  ;;  %v1361_v36 = vmul.f32 %v2367_v5, %v3395_v24  ;;  %v1505_v53 = vadd.f32 %v1503_v7, %v1501_v52  ;;  %v1506_v28 = vadd.f32 %v1504_v26, %v1502_v45 }
  0xd8   : > { %v1408_v4 = vmul.f32 %v2369_v21, %v3400_v29  ;;  %vm1411_vm13 = vcmp.eq.f32.partialorder %v3400_v29, 0.0  ;;  %v1412_v41 = vand.u32 2147483648, %v3400_v29  ;;  %v3470_v60 = vadd.f32 3e-08, %v1462_v22 }
  0xd9   : > { %v2373_v50 = vpop.eup %2372  ;;  %v1509_v48 = vadd.f32 %v1507_v8, %v1505_v53  ;;  %v1510_v15 = vadd.f32 %v1508_v19, %v1506_v28  ;;  %v1544_v11 = vsub.f32 %v3146_v51, %v2198_v49  ;;  %v1551_v34 = vsub.f32 %v3164_v47, %v2200_v56 }
  0xda   : > { %v1318_v25 = vmul.f32 %v1316_v39, %v1316_v39  ;;  %v1368_v30 = vmul.f32 %v2371_v13, %v3410_v35  ;;  %vm1416_vm14 = vcmp.eq.f32.partialorder %v3420_v6, inf  ;;  %v3476_v27 = vadd.f32 3e-08, %v1463_v12 }
  0xdb   : > { %v1363_v10 = vsel %vm1362_vm8, %v3395_v24, %v1361_v36  ;;  %v3482_v16 = vadd.f32 3e-08, %v1509_v48  ;;  %v1545_v44 = vsub.f32 %v3160_v3, %v2198_v49  ;;  %v1552_v42 = vsub.f32 %v3168_v38, %v2200_v56  ;;  %v2203_v49 = vld [vmem:[%s2632_s14 + $0xb] ss:$0 sm:$0xff]  ;;  %v2205_v56 = vld [vmem:[%s2632_s14 + $0x1b] ss:$0 sm:$0xff] }
  0xdc   : > { %v1410_v32 = vsel %vm1409_vm12, %v3400_v29, %v1408_v4  ;;  %v1415_v52 = vmul.f32 %v2373_v50, %v3420_v6  ;;  %vm1418_vm15 = vcmp.eq.f32.partialorder %v3420_v6, 0.0  ;;  %v3491_v45 = vadd.f32 3e-08, %v1510_v15  ;;  %v2207_v36 = vld [vmem:[%s2632_s14 + $0x2b] ss:$0 sm:$0xff] }
  0xdd   : > { %2374 = vrsqrt.f32 %v3470_v60  ;;  %v1558_v5 = vsub.f32 %v3177_v9, %v2202_v1  ;;  %v1560_v22 = vmul.f32 %v1544_v11, %v1544_v11  ;;  %v1562_v21 = vmul.f32 %v1551_v34, %v1551_v34 }
  0xde   : > { %v1366_v7 = vsel %vm1364_vm9, %v1365_v40, %v1363_v10  ;;  %v1370_v26 = vsel %vm1369_vm10, %v3410_v35, %v1368_v30  ;;  %v1419_v8 = vand.u32 2147483648, %v3420_v6  ;;  %2376 = vrsqrt.f32 %v3476_v27 }
  0xdf   : > { %v1413_v39 = vsel %vm1411_vm13, %v1412_v41, %v1410_v32  ;;  %2378 = vrsqrt.f32 %v3482_v16  ;;  %v1561_v12 = vmul.f32 %v1545_v44, %v1545_v44  ;;  %v1563_v19 = vmul.f32 %v1552_v42, %v1552_v42 }
  0xe0   : > { %v1323_v24 = vmul.f32 %v3388_v17, %v1317_v62  ;;  %v1417_v40 = vsel %vm1416_vm14, %v3420_v6, %v1415_v52  ;;  %2380 = vrsqrt.f32 %v3491_v45  ;;  %v1559_v13 = vsub.f32 %v3181_v18, %v2202_v1 }
  0xe1   : > { %v1324_v29 = vmul.f32 %v3388_v17, %v1318_v25  ;;  %v1373_v53 = vsel %vm1371_vm11, %v1372_v61, %v1370_v26  ;;  %v1564_v28 = vadd.f32 %v1562_v21, %v1560_v22  ;;  %v1566_v4 = vmul.f32 %v1558_v5, %v1558_v5  ;;  %v2208_v26 = vld [vmem:[%s2627_s11 + $0xc] ss:$0 sm:$0xff] }
  0xe2   : > { %v1421_v41 = vsub.f32 %v1366_v7, %v1413_v39  ;;  %v1591_v50 = vsub.f32 %v3200_v58, %v2203_v49  ;;  %v1592_v62 = vsub.f32 %v3207_v31, %v2203_v49  ;;  %v1598_v48 = vsub.f32 %v3211_v14, %v2205_v56 }
  0xe3   : > { %v1420_v15 = vsel %vm1418_vm15, %v1419_v8, %v1417_v40  ;;  %v1565_v11 = vadd.f32 %v1563_v19, %v1561_v12  ;;  %v1599_v34 = vsub.f32 %v3215_v0, %v2205_v56  ;;  %v1605_v17 = vsub.f32 %v3219_v2, %v2207_v36 }
  0xe4   : > { %v1567_v25 = vmul.f32 %v1559_v13, %v1559_v13  ;;  %v1606_v35 = vsub.f32 %v3223_v63, %v2207_v36  ;;  %v1607_v61 = vmul.f32 %v1591_v50, %v1591_v50  ;;  %v1609_v30 = vmul.f32 %v1598_v48, %v1598_v48 }
  0xe5   : > { %v1568_v1 = vadd.f32 %v1566_v4, %v1564_v28  ;;  %v1608_v10 = vmul.f32 %v1592_v62, %v1592_v62  ;;  %v1610_v44 = vmul.f32 %v1599_v34, %v1599_v34  ;;  %v1613_v42 = vmul.f32 %v1605_v17, %v1605_v17 }
  0xe6   : > { %v1422_v32 = vsub.f32 %v1373_v53, %v1420_v15  ;;  %v3528_v6 = vrot.slane %v3379_v20, %v579_v37  ;;  %v1611_v52 = vadd.f32 %v1609_v30, %v1607_v61  ;;  %v3531_v22 = vadd.f32 %v1323_v24, %v3397_v57  ;;  %v2210_v24 = vld [vmem:[%s2627_s11 + $0x1c] ss:$0 sm:$0xff] }
  0xe7   : > { %v2375_v5 = vpop.eup %2374  ;;  %v3534_v21 = vadd.f32 %v1324_v29, %v3427_v33  ;;  %vm1468_vm0 = vcmp.eq.f32.partialorder %v3470_v60, inf  ;;  %v1614_v7 = vmul.f32 %v1606_v35, %v1606_v35  ;;  %v1471_v39 = vand.u32 2147483648, %v3470_v60 }
  0xe8   : > { %v2377_v8 = vpop.eup %2376  ;;  %vm1475_vm1 = vcmp.eq.f32.partialorder %v3476_v27, inf  ;;  %v1478_v37 = vand.u32 2147483648, %v3476_v27  ;;  %v1569_v12 = vadd.f32 %v1567_v25, %v1565_v11  ;;  %v1423_v49 = vmul.f32 %v1421_v41, %v1421_v41  ;;  %v2212_v41 = vld [vmem:[%s2627_s11 + $0x2c] ss:$0 sm:$0xff] }
  0xe9   : > { %v2379_v19 = vpop.eup %2378  ;;  %v3541_v57 = vadd.f32 3e-08, %v1568_v1  ;;  %v1612_v56 = vadd.f32 %v1610_v44, %v1608_v10  ;;  %v1615_v33 = vadd.f32 %v1613_v42, %v1611_v52  ;;  %v1424_v13 = vmul.f32 %v1422_v32, %v1422_v32  ;;  %v2213_v10 = vld [vmem:[%s2632_s14 + $0xc] ss:$0 sm:$0xff] }
  0xea   : > { %v2381_v40 = vpop.eup %2380  ;;  %vm1470_vm2 = vcmp.eq.f32.partialorder %v3470_v60, 0.0  ;;  %vm1477_vm3 = vcmp.eq.f32.partialorder %v3476_v27, 0.0  ;;  %vm1515_vm4 = vcmp.eq.f32.partialorder %v3482_v16, inf  ;;  %vm1517_vm5 = vcmp.eq.f32.partialorder %v3482_v16, 0.0 }
  0xeb   : > { %v1650_v36 = vsub.f32 %v3146_v51, %v2208_v26  ;;  %v1467_v29 = vmul.f32 %v2375_v5, %v3470_v60  ;;  %v1518_v53 = vand.u32 2147483648, %v3482_v16  ;;  %v1616_v28 = vadd.f32 %v1614_v7, %v1612_v56 }
  0xec   : > { %v3551_v4 = vadd.f32 3e-08, %v1615_v33  ;;  %v1474_v50 = vmul.f32 %v2377_v8, %v3476_v27  ;;  %v3555_v62 = vadd.f32 3e-08, %v1569_v12  ;;  %v1651_v48 = vsub.f32 %v3160_v3, %v2208_v26  ;;  %v2215_v8 = vld [vmem:[%s2632_s14 + $0x1c] ss:$0 sm:$0xff] }
  0xed   : > { %v1657_v15 = vsub.f32 %v3164_v47, %v2210_v24  ;;  %v1514_v11 = vmul.f32 %v2379_v19, %v3482_v16  ;;  %v1521_v34 = vmul.f32 %v2381_v40, %v3491_v45  ;;  %2382 = vrsqrt.f32 %v3541_v57 }
  0xee   : > { %v1658_v17 = vsub.f32 %v3168_v38, %v2210_v24  ;;  %vm1522_vm6 = vcmp.eq.f32.partialorder %v3491_v45, inf  ;;  %v1664_v25 = vsub.f32 %v3177_v9, %v2212_v41  ;;  %v1665_v35 = vsub.f32 %v3181_v18, %v2212_v41 }
  0xef   : > { %v1666_v61 = vmul.f32 %v1650_v36, %v1650_v36  ;;  %vm1524_vm7 = vcmp.eq.f32.partialorder %v3491_v45, 0.0  ;;  %v1525_v30 = vand.u32 2147483648, %v3491_v45  ;;  %v3568_v1 = vadd.f32 3e-08, %v1616_v28 }
  0xf0   : > { %2384 = vrsqrt.f32 %v3551_v4  ;;  %v1469_v44 = vsel %vm1468_vm0, %v3470_v60, %v1467_v29  ;;  %v1476_v42 = vsel %vm1475_vm1, %v3476_v27, %v1474_v50  ;;  %v1667_v32 = vmul.f32 %v1651_v48, %v1651_v48  ;;  %v2217_v29 = vld [vmem:[%s2632_s14 + $0x2c] ss:$0 sm:$0xff] }
  0xf1   : > { %v1668_v52 = vmul.f32 %v1657_v15, %v1657_v15  ;;  %v1516_v5 = vsel %vm1515_vm4, %v3482_v16, %v1514_v11  ;;  %v1523_v7 = vsel %vm1522_vm6, %v3491_v45, %v1521_v34  ;;  %2386 = vrsqrt.f32 %v3555_v62 }
  0xf2   : > { %v1669_v26 = vmul.f32 %v1658_v17, %v1658_v17  ;;  %v1672_v19 = vmul.f32 %v1664_v25, %v1664_v25  ;;  %v1673_v56 = vmul.f32 %v1665_v35, %v1665_v35  ;;  %v1697_v33 = vsub.f32 %v3200_v58, %v2213_v10 }
  0xf3   : > { %v1670_v12 = vadd.f32 %v1668_v52, %v1666_v61  ;;  %v3588_v24 = vrot.slane %v3379_v20, %v685_v43  ;;  %2388 = vrsqrt.f32 %v3568_v1  ;;  %v1698_v36 = vsub.f32 %v3207_v31, %v2213_v10 }
  0xf4   : > { %v1671_v40 = vadd.f32 %v1669_v26, %v1667_v32  ;;  %v1429_v28 = vmul.f32 %v3528_v6, %v1423_v49  ;;  %v3595_v41 = vmul.f32 %v3528_v6, %v1424_v13  ;;  %v1704_v50 = vsub.f32 %v3211_v14, %v2215_v8  ;;  %v2218_v32 = vld [vmem:[%s2627_s11 + $0xd] ss:$0 sm:$0xff] }
  0xf5   : > { %v1705_v48 = vsub.f32 %v3215_v0, %v2215_v8  ;;  %v1472_v15 = vsel %vm1470_vm2, %v1471_v39, %v1469_v44  ;;  %v1479_v43 = vsel %vm1477_vm3, %v1478_v37, %v1476_v42  ;;  %v1519_v11 = vsel %vm1517_vm5, %v1518_v53, %v1516_v5 }
  0xf6   : > { %v1526_v34 = vsel %vm1524_vm7, %v1525_v30, %v1523_v7  ;;  %v1674_v49 = vadd.f32 %v1672_v19, %v1670_v12  ;;  %v1675_v17 = vadd.f32 %v1673_v56, %v1671_v40  ;;  %v1711_v6 = vsub.f32 %v3219_v2, %v2217_v29  ;;  %v2220_v19 = vld [vmem:[%s2627_s11 + $0x1d] ss:$0 sm:$0xff] }
  0xf7   : > { %v1713_v13 = vmul.f32 %v1697_v33, %v1697_v33  ;;  %v2383_v25 = vpop.eup %2382  ;;  %v1712_v35 = vsub.f32 %v3223_v63, %v2217_v29  ;;  %v1714_v61 = vmul.f32 %v1698_v36, %v1698_v36  ;;  %v1715_v60 = vmul.f32 %v1704_v50, %v1704_v50 }
  0xf8   : > { %v1716_v39 = vmul.f32 %v1705_v48, %v1705_v48  ;;  %v3610_v27 = vadd.f32 %v1429_v28, %v3531_v22  ;;  %v1527_v16 = vsub.f32 %v1472_v15, %v1519_v11  ;;  %vm1574_vm8 = vcmp.eq.f32.partialorder %v3541_v57, inf  ;;  %v2222_v28 = vld [vmem:[%s2627_s11 + $0x2d] ss:$0 sm:$0xff] }
  0xf9   : > { %v3616_v45 = vrot.slane %v3379_v20, %v791_v46  ;;  %vm1576_vm9 = vcmp.eq.f32.partialorder %v3541_v57, 0.0  ;;  %v1577_v53 = vand.u32 2147483648, %v3541_v57  ;;  %vm1581_vm10 = vcmp.eq.f32.partialorder %v3555_v62, inf }
  0xfa   : > { %v2385_v37 = vpop.eup %2384  ;;  %v1584_v30 = vand.u32 2147483648, %v3555_v62  ;;  %v1528_v22 = vsub.f32 %v1479_v43, %v1526_v34  ;;  %v1573_v10 = vmul.f32 %v2383_v25, %v3541_v57  ;;  %v3623_v44 = vadd.f32 3e-08, %v1674_v49 }
  0xfb   : > { %v1717_v42 = vadd.f32 %v1715_v60, %v1713_v13  ;;  %v2387_v52 = vpop.eup %2386  ;;  %vm1583_vm11 = vcmp.eq.f32.partialorder %v3555_v62, 0.0  ;;  %v3627_v46 = vadd.f32 3e-08, %v1675_v17  ;;  %v1718_v5 = vadd.f32 %v1716_v39, %v1714_v61  ;;  %v2223_v61 = vld [vmem:[%s2632_s14 + $0xd] ss:$0 sm:$0xff] }
  0xfc   : > { %v1719_v7 = vmul.f32 %v1711_v6, %v1711_v6  ;;  %v1720_v26 = vmul.f32 %v1712_v35, %v1712_v35  ;;  %v1529_v8 = vmul.f32 %v1527_v16, %v1527_v16  ;;  %v1620_v12 = vmul.f32 %v2385_v37, %v3551_v4 }
  0xfd   : > { %vm1621_vm12 = vcmp.eq.f32.partialorder %v3551_v4, inf  ;;  %vm1623_vm13 = vcmp.eq.f32.partialorder %v3551_v4, 0.0  ;;  %v2389_v56 = vpop.eup %2388  ;;  %v1624_v33 = vand.u32 2147483648, %v3551_v4  ;;  %v1756_v29 = vsub.f32 %v3146_v51, %v2218_v32 }
  0xfe   : > { %v1721_v40 = vadd.f32 %v1719_v7, %v1717_v42  ;;  %v1722_v36 = vadd.f32 %v1720_v26, %v1718_v5  ;;  %v1575_v50 = vsel %vm1574_vm8, %v3541_v57, %v1573_v10  ;;  %v1580_v48 = vmul.f32 %v2387_v52, %v3555_v62 }
  0xff   : > { %2390 = vrsqrt.f32 %v3623_v44  ;;  %v1757_v15 = vsub.f32 %v3160_v3, %v2218_v32  ;;  %v1763_v51 = vsub.f32 %v3164_v47, %v2220_v19  ;;  %v1622_v34 = vsel %vm1621_vm12, %v3551_v4, %v1620_v12  ;;  %v2227_v32 = vld [vmem:[%s2632_s14 + $0x2d] ss:$0 sm:$0xff] }
 0x100   : > { %2392 = vrsqrt.f32 %v3627_v46  ;;  %v3643_v43 = vadd.f32 3e-08, %v1721_v40  ;;  %v3645_v11 = vadd.f32 3e-08, %v1722_v36  ;;  %v1627_v49 = vmul.f32 %v2389_v56, %v3568_v1 }
 0x101   : > { %v1764_v17 = vsub.f32 %v3168_v38, %v2220_v19  ;;  %v1770_v6 = vsub.f32 %v3177_v9, %v2222_v28  ;;  %vm1628_vm14 = vcmp.eq.f32.partialorder %v3568_v1, inf  ;;  %v1771_v3 = vsub.f32 %v3181_v18, %v2222_v28 }
 0x102   : > { %2394 = vrsqrt.f32 %v3643_v43  ;;  %v1772_v13 = vmul.f32 %v1756_v29, %v1756_v29  ;;  %v3657_v25 = vmul.f32 %v1528_v22, %v1528_v22  ;;  %v1631_v47 = vand.u32 2147483648, %v3568_v1  ;;  %v2225_v22 = vld [vmem:[%s2632_s14 + $0x1d] ss:$0 sm:$0xff]  ;;  %s1888_s14 = scalar_lea.sflag [#allocation5], %s3748_s25 }
 0x103   : > { %2396 = vrsqrt.f32 %v3645_v11  ;;  %v1773_v35 = vmul.f32 %v1757_v15, %v1757_v15  ;;  %v1578_v38 = vsel %vm1576_vm9, %v1577_v53, %v1575_v50  ;;  %v1582_v9 = vsel %vm1581_vm10, %v3555_v62, %v1580_v48 }
 0x104   : > { %v1625_v18 = vsel %vm1623_vm13, %v1624_v33, %v1622_v34  ;;  %v1774_v60 = vmul.f32 %v1763_v51, %v1763_v51  ;;  %v1629_v39 = vsel %vm1628_vm14, %v3568_v1, %v1627_v49  ;;  %vm1630_vm15 = vcmp.eq.f32.partialorder %v3568_v1, 0.0 }
 0x105   : > { %v1775_v16 = vmul.f32 %v1764_v17, %v1764_v17  ;;  %v1778_v37 = vmul.f32 %v1770_v6, %v1770_v6  ;;  %v3673_v10 = vmul.f32 %v3588_v24, %v1529_v8  ;;  %v1779_v53 = vmul.f32 %v1771_v3, %v1771_v3 }
 0x106   : > { %v1776_v57 = vadd.f32 %v1774_v60, %v1772_v13  ;;  %v1803_v42 = vsub.f32 %v3200_v58, %v2223_v61  ;;  %v1585_v4 = vsel %vm1583_vm11, %v1584_v30, %v1582_v9  ;;  %v1633_v52 = vsub.f32 %v1578_v38, %v1625_v18 }
 0x107   : > { %v1777_v5 = vadd.f32 %v1775_v16, %v1773_v35  ;;  %v1804_v7 = vsub.f32 %v3207_v31, %v2223_v61  ;;  %v1632_v26 = vsel %vm1630_vm15, %v1631_v47, %v1629_v39  ;;  %v1810_v12 = vsub.f32 %v3211_v14, %v2225_v22 }
 0x108   : > { %v1780_v1 = vadd.f32 %v1778_v37, %v1776_v57  ;;  %v1811_v19 = vsub.f32 %v3215_v0, %v2225_v22  ;;  %v1817_v33 = vsub.f32 %v3219_v2, %v2227_v32  ;;  %v1818_v58 = vsub.f32 %v3223_v63, %v2227_v32 }
 0x109   : > { %v2391_v8 = vpop.eup %2390  ;;  %v1781_v56 = vadd.f32 %v1779_v53, %v1777_v5  ;;  %v1819_v40 = vmul.f32 %v1803_v42, %v1803_v42  ;;  %v1820_v30 = vmul.f32 %v1804_v7, %v1804_v7  ;;  %v1821_v29 = vmul.f32 %v1810_v12, %v1810_v12 }
 0x10a   : > { %v2393_v36 = vpop.eup %2392  ;;  %v3684_v62 = vadd.f32 3e-08, %v1780_v1  ;;  %v1822_v28 = vmul.f32 %v1811_v19, %v1811_v19  ;;  %vm1680_vm0 = vcmp.eq.f32.partialorder %v3623_v44, inf  ;;  %vm1682_vm1 = vcmp.eq.f32.partialorder %v3623_v44, 0.0 }
 0x10b   : > { %v1683_v31 = vand.u32 2147483648, %v3623_v44  ;;  %v3689_v14 = vadd.f32 3e-08, %v1781_v56  ;;  %vm1687_vm2 = vcmp.eq.f32.partialorder %v3627_v46, inf  ;;  %v1825_v2 = vmul.f32 %v1817_v33, %v1817_v33 }
 0x10c   : > { %v2395_v0 = vpop.eup %2394  ;;  %2398 = vrsqrt.f32 %v3684_v62  ;;  %v1826_v63 = vmul.f32 %v1818_v58, %v1818_v58  ;;  %v1634_v48 = vsub.f32 %v1585_v4, %v1632_v26  ;;  %vm1689_vm3 = vcmp.eq.f32.partialorder %v3627_v46, 0.0 }
 0x10d   : > { %v2397_v50 = vpop.eup %2396  ;;  %v1690_v15 = vand.u32 2147483648, %v3627_v46  ;;  %2400 = vrsqrt.f32 %v3689_v14  ;;  %v1635_v51 = vmul.f32 %v1633_v52, %v1633_v52  ;;  %v1679_v34 = vmul.f32 %v2391_v8, %v3623_v44 }
 0x10e   : > { %v1823_v49 = vadd.f32 %v1821_v29, %v1819_v40  ;;  %v1824_v17 = vadd.f32 %v1822_v28, %v1820_v30  ;;  %v1686_v6 = vmul.f32 %v2393_v36, %v3627_v46  ;;  %v1726_v3 = vmul.f32 %v2395_v0, %v3643_v43 }
 0x10f   : > { %v1733_v13 = vmul.f32 %v2397_v50, %v3645_v11  ;;  %vm1860_vm4 = vcmask 1045504   ;;  %vm1727_vm5 = vcmp.eq.f32.partialorder %v3643_v43, inf  ;;  %vm1734_vm6 = vcmp.eq.f32.partialorder %v3645_v11, inf }
 0x110   : > { %v1827_v47 = vadd.f32 %v1825_v2, %v1823_v49  ;;  %v1828_v35 = vadd.f32 %v1826_v63, %v1824_v17  ;;  %vm1729_vm7 = vcmp.eq.f32.partialorder %v3643_v43, 0.0  ;;  %v1730_v61 = vand.u32 2147483648, %v3643_v43  ;;  %v3770_v49 = vld [vmem:[%s354_s8] sm:$0x1] }
 0x111   : > { %v1737_v38 = vand.u32 2147483648, %v3645_v11  ;;  %v1871_v9 = vsel %vm1860_vm4, %v3379_v20, 0.0  ;;  %v1681_v18 = vsel %vm1680_vm0, %v3623_v44, %v1679_v34  ;;  %v1688_v37 = vsel %vm1687_vm2, %v3627_v46, %v1686_v6 }
 0x112   : > { %v3710_v60 = vadd.f32 3e-08, %v1827_v47  ;;  %v3712_v39 = vadd.f32 3e-08, %v1828_v35  ;;  %v1872_v16 = vadd.f32 %v3254_v23, %v1871_v9  ;;  %v1728_v22 = vsel %vm1727_vm5, %v3643_v43, %v1726_v3 }
 0x113   : > { %v1735_v57 = vsel %vm1734_vm6, %v3645_v11, %v1733_v13  ;;  %vm1736_vm8 = vcmp.eq.f32.partialorder %v3645_v11, 0.0  ;;  %v1432_v53 = vadd.f32 %v3595_v41, %v3534_v21  ;;  %v1536_v42 = vmul.f32 %v3588_v24, %v3657_v25 }
 0x114   : > { %2402 = vrsqrt.f32 %v3710_v60  ;;  %v1684_v23 = vsel %vm1682_vm1, %v1683_v31, %v1681_v18  ;;  %v1691_v4 = vsel %vm1689_vm3, %v1690_v15, %v1688_v37  ;;  %v1731_v11 = vsel %vm1729_vm7, %v1730_v61, %v1728_v22 }
 0x115   : > { %2404 = vrsqrt.f32 %v3712_v39  ;;  %v1738_v52 = vsel %vm1736_vm8, %v1737_v38, %v1735_v57  ;;  %v1873_v5 = vrot.slane %v1872_v16, 4  ;;  %v1537_v21 = vadd.f32 %v3673_v10, %v3610_v27 }
 0x116   : > { %v2399_v32 = vpop.eup %2398  ;;  %v1636_v41 = vmul.f32 %v1634_v48, %v1634_v48  ;;  %v1641_v24 = vmul.f32 %v3616_v45, %v1635_v51  ;;  %v1739_v25 = vsub.f32 %v1684_v23, %v1731_v11  ;;  %v1740_v26 = vsub.f32 %v1691_v4, %v1738_v52 }
 0x117   : > { %v2401_v7 = vpop.eup %2400  ;;  %v1874_v44 = vadd.f32 %v1873_v5, %v1872_v16  ;;  %v1785_v1 = vmul.f32 %v2399_v32, %v3684_v62  ;;  %v1538_v46 = vadd.f32 %v1536_v42, %v1432_v53  ;;  %vm1786_vm9 = vcmp.eq.f32.partialorder %v3684_v62, inf }
 0x118   : > { %v1792_v43 = vmul.f32 %v2401_v7, %v3689_v14  ;;  %v1642_v19 = vmul.f32 %v3616_v45, %v1636_v41  ;;  %v1643_v8 = vadd.f32 %v1641_v24, %v1537_v21  ;;  %v1746_v27 = vrot.slane %v3379_v20, %v897_v54 }
 0x119   : > { %v1875_v12 = vrot.slane %v1874_v44, 2  ;;  %vm1793_vm10 = vcmp.eq.f32.partialorder %v3689_v14, inf  ;;  %vm1788_vm11 = vcmp.eq.f32.partialorder %v3684_v62, 0.0  ;;  %v1789_v10 = vand.u32 2147483648, %v3684_v62 }
 0x11a   : > { %vm1795_vm12 = vcmp.eq.f32.partialorder %v3689_v14, 0.0  ;;  %v1741_v33 = vmul.f32 %v1739_v25, %v1739_v25  ;;  %v1742_v58 = vmul.f32 %v1740_v26, %v1740_v26  ;;  %v1787_v45 = vsel %vm1786_vm9, %v3684_v62, %v1785_v1 }
 0x11b   : > { %v1876_v56 = vadd.f32 %v1875_v12, %v1874_v44  ;;  %v1796_v40 = vand.u32 2147483648, %v3689_v14  ;;  %v1794_v54 = vsel %vm1793_vm10, %v3689_v14, %v1792_v43  ;;  %vm1833_vm13 = vcmp.eq.f32.partialorder %v3710_v60, inf }
 0x11c   : > { %v1836_v30 = vand.u32 2147483648, %v3710_v60  ;;  %vm1835_vm14 = vcmp.eq.f32.partialorder %v3710_v60, 0.0  ;;  %vm1840_vm15 = vcmp.eq.f32.partialorder %v3712_v39, inf  ;;  %v1843_v0 = vand.u32 2147483648, %v3712_v39 }
 0x11d   : > { %v1877_v29 = vrot.slane %v1876_v56, 1  ;;  %v1790_v2 = vsel %vm1788_vm11, %v1789_v10, %v1787_v45  ;;  %vm1842_vm0 = vcmp.eq.f32.partialorder %v3712_v39, 0.0  ;;  %v1644_v48 = vadd.f32 %v1642_v19, %v1538_v46 }
 0x11e   : > { %v2403_v36 = vpop.eup %2402  ;;  %v1747_v15 = vmul.f32 %v1746_v27, %v1741_v33  ;;  %v1797_v51 = vsel %vm1795_vm12, %v1796_v40, %v1794_v54  ;;  %v1748_v17 = vmul.f32 %v1746_v27, %v1742_v58  ;;  %v1852_v35 = vrot.slane %v3379_v20, %v1003_v55 }
 0x11f   : > { %v2405_v28 = vpop.eup %2404  ;;  %v1832_v31 = vmul.f32 %v2403_v36, %v3710_v60  ;;  %v1878_v50 = vadd.f32 %v1877_v29, %v1876_v56 }
 0x120   : > { %v1839_v63 = vmul.f32 %v2405_v28, %v3712_v39  ;;  %v1749_v38 = vadd.f32 %v1747_v15, %v1643_v8  ;;  %v1750_v18 = vadd.f32 %v1748_v17, %v1644_v48 }
 0x121   : > { %v1834_v34 = vsel %vm1833_vm13, %v3710_v60, %v1832_v31  ;;  %v1879_v3 = vmul.f32 %v1878_v50, %v1878_v50 }
 0x122   : > { %v1837_v6 = vsel %vm1835_vm14, %v1836_v30, %v1834_v34  ;;  %v1841_v62 = vsel %vm1840_vm15, %v3712_v39, %v1839_v63 }
 0x123   : > { %v1844_v13 = vsel %vm1842_vm0, %v1843_v0, %v1841_v62  ;;  %v1845_v47 = vsub.f32 %v1790_v2, %v1837_v6  ;;  %v1880_v61 = vmul.f32 %v1879_v3, %v3770_v49 }
 0x124   : > { %v1846_v14 = vsub.f32 %v1797_v51, %v1844_v13 }
 0x125   : > { %v1847_v9 = vmul.f32 %v1845_v47, %v1845_v47  ;;  %v1881_v39 = vmax.f32 %v1880_v61, 1.0 }
 0x126   : > { %v1848_v60 = vmul.f32 %v1846_v14, %v1846_v14 }
 0x127   : > { %v1853_v59 = vmul.f32 %v1852_v35, %v1847_v9  ;;  %1882 = vst [vmem:[%s321_s9] sm:$0x1] %v1881_v39 }
 0x128   : > { %v1854_v55 = vmul.f32 %v1852_v35, %v1848_v60 }
 0x129   : > { %v1855_v16 = vadd.f32 %v1853_v59, %v1749_v38 }
 0x12a   : > { %2433 = shalt.err (!%p2430_p5)
}
 0x12b   : > { %s2434_s29 = scalar_lea.hbm %s3784_s13, 16  ;;  %s2438_s11 = scalar_lea.hbm %s3873_s5, 32 }
 0x12c   : > { %p2435_p6 = scmp.ne.s32.totalorder %s3784_s13, %s2434_s29  ;;  %p2439_p10 = scmp.lt.u32.totalorder %s3784_s13, %s3873_s5 }
 0x12d   : > { %p2440_p11 = scmp.lt.u32.totalorder %s2438_s11, %s2434_s29  ;;  %p2442_p13 = scmp.lt.u32.totalorder %s2434_s29, %s3784_s13 }
 0x12e   : > { %p2436_p7 = pnand %p2435_p6, %p2604_p4 }
 0x12f   : > { %p2441_p12 = por %p2440_p11, %p2439_p10 }
 0x130   : > { %p2437_p9 = pneg %p2436_p7 }
 0x131   : > { %p2443_p0 = por %p2442_p13, %p2441_p12 }
 0x133   : > { %p2444_p1 = pnand %p2443_p0, %p2437_p9 }
 0x135   : > { %2447 = shalt.err (!%p2444_p1)
}
 0x136   : > { %2235 = dma.vmem_to_hbm [thread:$0]  (%p2604_p4), %s3786_s10, 16, %s3784_s13, %s1888_s14   ;;  %v1856_v37 = vadd.f32 %v1854_v55, %v1750_v18  ;;  %v2419_v22 = vld [vmem:[%s2721_s24] sm:$0xff] }
 0x137   : > { %v1858_v57 = vmul.f32 %v2419_v22, %v1855_v16  ;;  %s315_s15 = scalar_lea.vmem [#allocation2], %s3748_s25  ;;  %s3820_s13 = scalar_lea.hbm %s3872_s4, %s2228_s7 }
 0x138   : > { %v1859_v53 = vmul.f32 %v1856_v37, %v3379_v20  ;;  %s1901_s17 = sshll.u32 %s315_s15, 4  ;;  %s1884_s14 = scalar_lea.sflag [#allocation3], %s3748_s25  ;;  %s3822_s17 = int_to_ptr.vmem [resolvable:$true] %s1901_s17 }
 0x139   : > { %s2448_s27 = scalar_lea.vmem %s3822_s17, 16  ;;  %s2533_s29 = smov [#allocation2]  }
 0x13a   : > { %v1861_v42 = vsel %vm1860_vm4, %v1859_v53, 0.0  ;;  %p2449_p2 = scmp.ne.s32.totalorder %s3822_s17, %s2448_s27  ;;  %s2452_s8 = sshll.u32 %s2533_s29, 4  ;;  %s2453_s8 = int_to_ptr.vmem [resolvable:$false] %s2452_s8 }
 0x13b   : > { %v1862_v23 = vadd.f32 %v1861_v42, %v1858_v57  ;;  %s2454_s21 = scalar_lea.vmem %s2453_s8, 32  ;;  %p2455_p6 = scmp.lt.s32.totalorder %s3822_s17, %s2453_s8 }
 0x13c   : > { %p2450_p3 = pnand %p2449_p2, %p2604_p4  ;;  %p2456_p7 = scmp.lt.s32.totalorder %s2454_s21, %s2448_s27 }
 0x13d   : > { %v1863_v32 = vrot.slane %v1862_v23, 4 }
 0x13e   : > { %p2451_p5 = pneg %p2450_p3  ;;  %p2457_p9 = por %p2456_p7, %p2455_p6 }
 0x13f   : > { %v1864_v4 = vadd.f32 %v1863_v32, %v1862_v23 }
 0x140   : > { %p2458_p10 = pnand %p2457_p9, %p2451_p5 }
 0x141   : > { %v1865_v11 = vrot.slane %v1864_v4, 2 }
 0x143   : > { %v1866_v52 = vadd.f32 %v1865_v11, %v1864_v4 }
 0x145   : > { %v1867_v5 = vrot.slane %v1866_v52, 1 }
 0x147   : > { %v1868_v7 = vadd.f32 %v1867_v5, %v1866_v52 }
 0x149   : > { %v1869_v21 = vmul.f32 %v1868_v7, %v3770_v49 }
 0x14b   : > { %1870 = vst [vmem:[%s315_s15] sm:$0x1] %v1869_v21 }
 0x14c   : > { %2461 = shalt.err (!%p2458_p10)
}
 0x14d   : > { %s2462_s25 = scalar_lea.hbm %s3820_s13, 16  ;;  %s2466_s11 = scalar_lea.hbm %s3872_s4, 32 }
 0x14e   : > { %p2463_p11 = scmp.ne.s32.totalorder %s3820_s13, %s2462_s25  ;;  %p2467_p0 = scmp.lt.u32.totalorder %s3820_s13, %s3872_s4 }
 0x14f   : > { %p2468_p1 = scmp.lt.u32.totalorder %s2466_s11, %s2462_s25  ;;  %p2470_p3 = scmp.lt.u32.totalorder %s2462_s25, %s3820_s13 }
 0x150   : > { %p2464_p12 = pnand %p2463_p11, %p2604_p4 }
 0x151   : > { %p2469_p2 = por %p2468_p1, %p2467_p0 }
 0x152   : > { %p2465_p13 = pneg %p2464_p12 }
 0x153   : > { %p2471_p5 = por %p2470_p3, %p2469_p2 }
 0x155   : > { %p2472_p6 = pnand %p2471_p5, %p2465_p13 }
 0x157   : > { %2475 = shalt.err (!%p2472_p6)
}
 0x158   : > { %2234 = dma.vmem_to_hbm [thread:$0]  (%p2604_p4), %s3822_s17, 16, %s3820_s13, %s1884_s14  }
 0x159 PF: > { %p2245_p7 = scmp.ge.s32.totalorder %s2530_s23, 2  ;;  %s1927_s15 = sand.u32 1, %s2510_s18  }
 0x15a   : > { %s1928_s24 = scalar_lea.sflag [#allocation3], %s1927_s15 }
 0x15b   : > { %p2239_p9 = pnand %p2245_p7, %p2611_p8 }
 0x15d   : > { %2501 = dma.done.wait (!%p2239_p9), %s1928_s24, 16  }
 0x15e   : > { %2503 = vsyncadd (!%p2239_p9), %s1928_s24, 4294967280  ;;  %s1936_s10 = scalar_lea.sflag [#allocation5], %s1927_s15 }
 0x15f   : > { %2505 = dma.done.wait (!%p2239_p9), %s1936_s10, 16  }
 0x160   : > { %2507 = vsyncadd (!%p2239_p9), %s1936_s10, 4294967280  ;;  %s22_s23 = sadd.s32 1, %s2530_s23   ;;  %s3876_s18 = smov %s2514_s19 }
 0x161   : > { %p19_p10 = scmp.ge.s32.totalorder %s22_s23, 4   ;;  %s3877_s19 = smov %s2518_s20 }
 0x162   : > { %s3878_s20 = smov %s2617_s6  ;;  %s3879_s21 = smov %s2526_s22 }
 0x163   : > { %s3880_s22 = smov %s3882_s26  ;;  %21 = sbr.rel (!%p19_p10) target bundleno = 6 (0x6), region = 101 }
 0x16a   :  { %1940 = vsyncpa [#allocation3], 1 }
 0x16b   :  { %1942 = vsyncpa [#allocation3 + $0x1], 1 }
 0x16c   :  { %1943 = vsyncpa [#allocation5], 1 }
 0x16d   :  { %1945 = vsyncpa [#allocation5 + $0x1], 1 }

</bundles_post_ra>
